<compile_context>
chip_gen: v6e
topology: v6e:2x2x1
jax: 0.10.0
libtpu: 0.0.40
codegen_flags: <defaults>
</compile_context>

<pallas_src>
import jax
import jax.numpy as jnp
from jax.experimental import pallas as pl
from jax.experimental.pallas import tpu as pltpu


# --------------------------------------------------------------------------
# Fused kernel: conv1/2/3 (+ReLU+pool) + flatten + fc+BN+ReLU + out + LogSoftmax
# --------------------------------------------------------------------------
def fused_cnn_kernel(x_ref, w1_ref, b1_ref, w2_ref, w3_ref,
                     wfc_ref, bfc_ref, bns_ref, bnb_ref, wout_ref, bout_ref,
                     o_ref,
                     pad1_ref, pad2_ref, pad3_ref, feat_ref):
    f32 = jnp.float32
    B = x_ref.shape[0]
    n_pos = feat_ref.shape[0]          # spatial positions after conv3+pool (= 2)

    def pool_selectors(l_out):
        # 0/1 matrices selecting even / odd rows: MaxPool1d(2) becomes the max of
        # two tiny MXU matmuls (no sublane-splitting reshape, no strided access).
        l_pool = l_out // 2
        r = jax.lax.broadcasted_iota(jnp.int32, (l_pool, l_out), 0)
        c = jax.lax.broadcasted_iota(jnp.int32, (l_pool, l_out), 1)
        return (c == 2 * r).astype(f32), (c == 2 * r + 1).astype(f32)

    def conv_relu_pool(pad_ref, h_in, w_ref_l, sel, bias=None):
        # pad_ref: (Lin+2, Cin) scratch with zero edge rows (== Conv1d padding=1)
        # h_in:    (Lin, Cin) value      w_ref_l: (K, Cin, Cout)
        k_taps, cin, cout = w_ref_l.shape
        l_in = h_in.shape[0]
        l_out = l_in + 2 - k_taps + 1
        s_even, s_odd = sel
        pad_ref[1:1 + l_in, :] = h_in
        acc = jnp.zeros((l_out, cout), f32)
        for k in range(k_taps):                         # static unroll over taps
            xk = pad_ref[k:k + l_out, :]                # (Lout, Cin)
            wk = w_ref_l[k]                             # (Cin, Cout)
            if cin == 1:
                acc = acc + xk * wk                     # degenerate contraction -> VPU
            else:
                acc = acc + jnp.dot(xk, wk, preferred_element_type=f32)
        # MaxPool1d(2) first; bias-add and ReLU are monotone, so they commute with max
        pooled = jnp.maximum(jnp.dot(s_even, acc, preferred_element_type=f32),
                             jnp.dot(s_odd, acc, preferred_element_type=f32))
        if bias is not None:
            pooled = pooled + bias
        return jnp.maximum(pooled, 0.0)

    # static shape bookkeeping (stride=1, padding=1 convs; pool halves the length)
    k_taps = w1_ref.shape[0]
    l1 = x_ref.shape[1] + 2 - k_taps + 1
    l2 = l1 // 2 + 2 - k_taps + 1
    l3 = l2 // 2 + 2 - k_taps + 1
    sel1, sel2, sel3 = pool_selectors(l1), pool_selectors(l2), pool_selectors(l3)

    # zero the padded-activation scratch once; edge rows stay zero for every sample
    pad1_ref[...] = jnp.zeros(pad1_ref.shape, f32)
    pad2_ref[...] = jnp.zeros(pad2_ref.shape, f32)
    pad3_ref[...] = jnp.zeros(pad3_ref.shape, f32)

    # conv1 bias, broadcast hoisted out of the (unrolled) batch loop
    bias1 = jnp.broadcast_to(b1_ref[...], (l1 // 2, b1_ref.shape[1]))

    for b in range(B):                                  # B is tiny -> static unroll
        h = conv_relu_pool(pad1_ref, x_ref[b], w1_ref, sel1, bias1)   # (14, 64)
        h = conv_relu_pool(pad2_ref, h, w2_ref, sel2)                 # (6, 128)
        h = conv_relu_pool(pad3_ref, h, w3_ref, sel3)                 # (2, 256)
        # stash flattened features; PyTorch's channel-major .view() is absorbed
        # into the pre-permuted fc weight (wfc_ref[l] = rows for spatial pos l)
        for l in range(n_pos):
            feat_ref[l, b:b + 1, :] = h[l:l + 1, :]

    # head: Linear(512->64) + BatchNorm1d(eval, pre-folded) + ReLU
    #       + Linear(64->classes) + LogSoftmax    (Dropout(0.5) = identity in eval)
    hid = jnp.zeros((B, wfc_ref.shape[2]), f32)
    for l in range(n_pos):
        hid = hid + jnp.dot(feat_ref[l], wfc_ref[l], preferred_element_type=f32)
    hid = hid + bfc_ref[...]
    hid = jnp.maximum(hid * bns_ref[...] + bnb_ref[...], 0.0)
    logits = jnp.dot(hid, wout_ref[...], preferred_element_type=f32) + bout_ref[...]
    m = jnp.max(logits, axis=-1, keepdims=True)
    z = logits - m
    o_ref[...] = z - jnp.log(jnp.sum(jnp.exp(z), axis=-1, keepdims=True))


# --------------------------------------------------------------------------
# Wrapper: one pallas_call, everything in VMEM
# --------------------------------------------------------------------------
def cnn_forward(x, kp):
    """x: (B, 1, L) float32, PyTorch Conv1d NCL layout."""
    # TODO(synk): Dropout(0.5) is identity in eval/inference mode (no RNG mask applied).
    B, cin, L = x.shape
    assert cin == 1
    K = kp["w1"].shape[0]
    c1, c2, c3 = kp["w1"].shape[2], kp["w2"].shape[2], kp["w3"].shape[2]
    l1 = L + 2 - K + 1
    assert l1 % 2 == 0
    l2 = l1 // 2 + 2 - K + 1
    assert l2 % 2 == 0
    l3 = l2 // 2 + 2 - K + 1
    assert l3 % 2 == 0
    assert (l3 // 2) * c3 == kp["wfc"].shape[0] * kp["wfc"].shape[1]
    classes = kp["wout"].shape[1]

    x_nlc = jnp.transpose(x, (0, 2, 1))      # (B, L, 1): layout-only since Cin == 1
    args = (x_nlc, kp["w1"], kp["b1"], kp["w2"], kp["w3"],
            kp["wfc"], kp["bfc"], kp["bn_scale"], kp["bn_shift"],
            kp["wout"], kp["bout"])
    vmem = pl.BlockSpec(memory_space=pltpu.MemorySpace.VMEM)

    return pl.pallas_call(
        fused_cnn_kernel,
        out_shape=jax.ShapeDtypeStruct((B, classes), jnp.float32),
        in_specs=[vmem] * len(args),
        out_specs=vmem,
        scratch_shapes=[
            pltpu.VMEM((L + 2, 1), jnp.float32),          # padded input       (32, 1)
            pltpu.VMEM((l1 // 2 + 2, c1), jnp.float32),   # padded pool1 out   (16, 64)
            pltpu.VMEM((l2 // 2 + 2, c2), jnp.float32),   # padded pool2 out   (8, 128)
            pltpu.VMEM((l3 // 2, B, c3), jnp.float32),    # flattened features (2, B, 256)
        ],
    )(*args)


# --------------------------------------------------------------------------
# Parameter construction (PyTorch layout) and kernel-layout preparation
# --------------------------------------------------------------------------
def make_params(key, classes=50):
    ks = jax.random.split(key, 12)
    f32 = jnp.float32
    return {
        "conv1_w": (jax.random.normal(ks[0], (64, 1, 5)) * 0.2).astype(f32),
        "conv1_b": (jax.random.normal(ks[1], (64,)) * 0.1).astype(f32),
        "conv2_w": (jax.random.normal(ks[2], (128, 64, 5)) * 0.05).astype(f32),   # bias=False
        "conv3_w": (jax.random.normal(ks[3], (256, 128, 5)) * 0.05).astype(f32),  # bias=False
        "fc_w": (jax.random.normal(ks[4], (64, 512)) * 0.05).astype(f32),
        "fc_b": (jax.random.normal(ks[5], (64,)) * 0.1).astype(f32),
        "bn_gamma": (1.0 + 0.1 * jax.random.normal(ks[6], (64,))).astype(f32),
        "bn_beta": (0.1 * jax.random.normal(ks[7], (64,))).astype(f32),
        "bn_mean": (0.1 * jax.random.normal(ks[8], (64,))).astype(f32),
        "bn_var": (0.5 + 0.5 * jnp.abs(jax.random.normal(ks[9], (64,)))).astype(f32),
        "out_w": (jax.random.normal(ks[10], (classes, 64)) * 0.1).astype(f32),
        "out_b": (jax.random.normal(ks[11], (classes,)) * 0.1).astype(f32),
    }


def prep_params(p):
    """PyTorch-layout params -> kernel layout (channel-on-lane, BN folded)."""
    c3 = p["conv3_w"].shape[0]
    hid = p["fc_w"].shape[0]
    n_pos = p["fc_w"].shape[1] // c3                     # = 2
    inv = p["bn_gamma"] / jnp.sqrt(p["bn_var"] + 1e-5)
    # fc weight: (64, 512) -> (512, 64) with row index = c*n_pos + l (torch .view
    # order) -> (n_pos, c3, 64) so wfc[l] pairs with the features at position l.
    wfc = p["fc_w"].T.reshape(c3, n_pos, hid).transpose(1, 0, 2)
    return {
        "w1": jnp.transpose(p["conv1_w"], (2, 1, 0)),    # (K, Cin, Cout) = (5, 1, 64)
        "b1": p["conv1_b"].reshape(1, -1),
        "w2": jnp.transpose(p["conv2_w"], (2, 1, 0)),    # (5, 64, 128)
        "w3": jnp.transpose(p["conv3_w"], (2, 1, 0)),    # (5, 128, 256)
        "wfc": wfc,                                      # (2, 256, 64)
        "bfc": p["fc_b"].reshape(1, -1),
        "bn_scale": inv.reshape(1, -1),
        "bn_shift": (p["bn_beta"] - p["bn_mean"] * inv).reshape(1, -1),
        "wout": p["out_w"].T,                            # (64, classes)
        "bout": p["out_b"].reshape(1, -1),
    }


# --------------------------------------------------------------------------
# Pure-JAX reference (PyTorch semantics, NCL layout) for correctness checking
# --------------------------------------------------------------------------
def reference_forward(x, p):
    def conv_stage(h, w, b):                             # w: (Cout, Cin, K)
        hp = jnp.pad(h, ((0, 0), (0, 0), (1, 1)))
        K = w.shape[2]
        l_out = hp.shape[2] - K + 1
        acc = sum(jnp.einsum("oi,bil->bol", w[:, :, k], hp[:, :, k:k + l_out])
                  for k in range(K))
        if b is not None:
            acc = acc + b.reshape(1, -1, 1)
        acc = jnp.maximum(acc, 0.0)
        bsz, c = acc.shape[0], acc.shape[1]
        return jnp.max(acc.reshape(bsz, c, l_out // 2, 2), axis=-1)

    h = conv_stage(x, p["conv1_w"], p["conv1_b"])
    h = conv_stage(h, p["conv2_w"], None)
    h = conv_stage(h, p["conv3_w"], None)
    f = h.reshape(h.shape[0], -1)                        # channel-major flatten (.view)
    z = f @ p["fc_w"].T + p["fc_b"]
    z = (z - p["bn_mean"]) / jnp.sqrt(p["bn_var"] + 1e-5) * p["bn_gamma"] + p["bn_beta"]
    z = jnp.maximum(z, 0.0)
    logits = z @ p["out_w"].T + p["out_b"]
    return jax.nn.log_softmax(logits, axis=-1)


if __name__ == "__main__":
    key = jax.random.PRNGKey(0)
    k_x, k_p = jax.random.split(key)
    # input length 30: 30 ->(conv)28 ->(pool)14 ->12 ->6 ->4 ->2 ; 256*2 = 512 features
    x = jax.random.normal(k_x, (2, 1, 30), dtype=jnp.float32)
    params = make_params(k_p, classes=50)        # PyTorch-layout parameters
    kparams = prep_params(params)                # kernel-layout parameters

    fwd = jax.jit(cnn_forward)
    out = jax.block_until_ready(fwd(x, kparams))                 # (2, 50) log-probs

    with jax.default_matmul_precision("highest"):
        ref = jax.block_until_ready(reference_forward(x, params))

    assert out.shape == (2, 50), out.shape
    err = float(jnp.max(jnp.abs(out - ref)))
    assert jnp.allclose(out, ref, rtol=1e-4, atol=1e-4), err
    print("KERNEL_OK")
</pallas_src>

<mosaic_0001>
module attributes {stable_mosaic.version = 11 : i64} {
  func.func @fused_cnn_kernel(%arg0: memref<2x30x1xf32, #tpu.memory_space<vmem>>, %arg1: memref<5x1x64xf32, #tpu.memory_space<vmem>>, %arg2: memref<1x64xf32, #tpu.memory_space<vmem>>, %arg3: memref<5x64x128xf32, #tpu.memory_space<vmem>>, %arg4: memref<5x128x256xf32, #tpu.memory_space<vmem>>, %arg5: memref<2x256x64xf32, #tpu.memory_space<vmem>>, %arg6: memref<1x64xf32, #tpu.memory_space<vmem>>, %arg7: memref<1x64xf32, #tpu.memory_space<vmem>>, %arg8: memref<1x64xf32, #tpu.memory_space<vmem>>, %arg9: memref<64x50xf32, #tpu.memory_space<vmem>>, %arg10: memref<1x50xf32, #tpu.memory_space<vmem>>, %arg11: memref<2x50xf32, #tpu.memory_space<vmem>>, %arg12: memref<32x1xf32, #tpu.memory_space<vmem>>, %arg13: memref<16x64xf32, #tpu.memory_space<vmem>>, %arg14: memref<8x128xf32, #tpu.memory_space<vmem>>, %arg15: memref<2x2x256xf32, #tpu.memory_space<vmem>>) attributes {dimension_semantics = [], scalar_prefetch = 0 : i64, scratch_operands = 4 : i64, tpu.core_type = #tpu.core_type<tc>} {
    %0 = tpu.iota {dimensions = array<i32: 0>} : vector<14x28xi32>
    %1 = tpu.iota {dimensions = array<i32: 1>} : vector<14x28xi32>
    %c2_i32 = arith.constant 2 : i32
    %2 = vector.broadcast %c2_i32 : i32 to vector<14x28xi32>
    %3 = arith.muli %2, %0 : vector<14x28xi32>
    %4 = arith.cmpi eq, %1, %3 : vector<14x28xi32>
    %5 = arith.extui %4 : vector<14x28xi1> to vector<14x28xi32>
    %6 = arith.sitofp %5 : vector<14x28xi32> to vector<14x28xf32>
    %c2_i32_0 = arith.constant 2 : i32
    %7 = vector.broadcast %c2_i32_0 : i32 to vector<14x28xi32>
    %8 = arith.muli %7, %0 : vector<14x28xi32>
    %c1_i32 = arith.constant 1 : i32
    %9 = vector.broadcast %c1_i32 : i32 to vector<14x28xi32>
    %10 = arith.addi %8, %9 : vector<14x28xi32>
    %11 = arith.cmpi eq, %1, %10 : vector<14x28xi32>
    %12 = arith.extui %11 : vector<14x28xi1> to vector<14x28xi32>
    %13 = arith.sitofp %12 : vector<14x28xi32> to vector<14x28xf32>
    %14 = tpu.iota {dimensions = array<i32: 0>} : vector<6x12xi32>
    %15 = tpu.iota {dimensions = array<i32: 1>} : vector<6x12xi32>
    %c2_i32_1 = arith.constant 2 : i32
    %16 = vector.broadcast %c2_i32_1 : i32 to vector<6x12xi32>
    %17 = arith.muli %16, %14 : vector<6x12xi32>
    %18 = arith.cmpi eq, %15, %17 : vector<6x12xi32>
    %19 = arith.extui %18 : vector<6x12xi1> to vector<6x12xi32>
    %20 = arith.sitofp %19 : vector<6x12xi32> to vector<6x12xf32>
    %c2_i32_2 = arith.constant 2 : i32
    %21 = vector.broadcast %c2_i32_2 : i32 to vector<6x12xi32>
    %22 = arith.muli %21, %14 : vector<6x12xi32>
    %c1_i32_3 = arith.constant 1 : i32
    %23 = vector.broadcast %c1_i32_3 : i32 to vector<6x12xi32>
    %24 = arith.addi %22, %23 : vector<6x12xi32>
    %25 = arith.cmpi eq, %15, %24 : vector<6x12xi32>
    %26 = arith.extui %25 : vector<6x12xi1> to vector<6x12xi32>
    %27 = arith.sitofp %26 : vector<6x12xi32> to vector<6x12xf32>
    %28 = tpu.iota {dimensions = array<i32: 0>} : vector<2x4xi32>
    %29 = tpu.iota {dimensions = array<i32: 1>} : vector<2x4xi32>
    %c2_i32_4 = arith.constant 2 : i32
    %30 = vector.broadcast %c2_i32_4 : i32 to vector<2x4xi32>
    %31 = arith.muli %30, %28 : vector<2x4xi32>
    %32 = arith.cmpi eq, %29, %31 : vector<2x4xi32>
    %33 = arith.extui %32 : vector<2x4xi1> to vector<2x4xi32>
    %34 = arith.sitofp %33 : vector<2x4xi32> to vector<2x4xf32>
    %c2_i32_5 = arith.constant 2 : i32
    %35 = vector.broadcast %c2_i32_5 : i32 to vector<2x4xi32>
    %36 = arith.muli %35, %28 : vector<2x4xi32>
    %c1_i32_6 = arith.constant 1 : i32
    %37 = vector.broadcast %c1_i32_6 : i32 to vector<2x4xi32>
    %38 = arith.addi %36, %37 : vector<2x4xi32>
    %39 = arith.cmpi eq, %29, %38 : vector<2x4xi32>
    %40 = arith.extui %39 : vector<2x4xi1> to vector<2x4xi32>
    %41 = arith.sitofp %40 : vector<2x4xi32> to vector<2x4xf32>
    %cst = arith.constant 0.000000e+00 : f32
    %42 = vector.broadcast %cst : f32 to vector<32x1xf32>
    %c0 = arith.constant 0 : index
    %c0_7 = arith.constant 0 : index
    %43 = vector.load %arg12[%c0, %c0_7] : memref<32x1xf32, #tpu.memory_space<vmem>>, vector<32x1xf32>
    tpu.vector_store %arg12[%c0, %c0_7], %42 {strides = array<i32>} : memref<32x1xf32, #tpu.memory_space<vmem>>, vector<32x1xf32>,
    %cst_8 = arith.constant 0.000000e+00 : f32
    %44 = vector.broadcast %cst_8 : f32 to vector<16x64xf32>
    %c0_9 = arith.constant 0 : index
    %c0_10 = arith.constant 0 : index
    %45 = vector.load %arg13[%c0_9, %c0_10] : memref<16x64xf32, #tpu.memory_space<vmem>>, vector<16x64xf32>
    tpu.vector_store %arg13[%c0_9, %c0_10], %44 {strides = array<i32>} : memref<16x64xf32, #tpu.memory_space<vmem>>, vector<16x64xf32>,
    %cst_11 = arith.constant 0.000000e+00 : f32
    %46 = vector.broadcast %cst_11 : f32 to vector<8x128xf32>
    %c0_12 = arith.constant 0 : index
    %c0_13 = arith.constant 0 : index
    %47 = vector.load %arg14[%c0_12, %c0_13] : memref<8x128xf32, #tpu.memory_space<vmem>>, vector<8x128xf32>
    tpu.vector_store %arg14[%c0_12, %c0_13], %46 {strides = array<i32>} : memref<8x128xf32, #tpu.memory_space<vmem>>, vector<8x128xf32>,
    %c0_14 = arith.constant 0 : index
    %c0_15 = arith.constant 0 : index
    %48 = vector.load %arg2[%c0_14, %c0_15] : memref<1x64xf32, #tpu.memory_space<vmem>>, vector<1x64xf32>
    %49 = vector.shape_cast %48 : vector<1x64xf32> to vector<1x64xf32>
    %50 = vector.broadcast %49 : vector<1x64xf32> to vector<14x64xf32>
    %c0_16 = arith.constant 0 : index
    %c0_17 = arith.constant 0 : index
    %c0_18 = arith.constant 0 : index
    %51 = vector.load %arg0[%c0_16, %c0_17, %c0_18] : memref<2x30x1xf32, #tpu.memory_space<vmem>>, vector<1x30x1xf32>
    %52 = vector.shape_cast %51 : vector<1x30x1xf32> to vector<30x1xf32>
    %c1 = arith.constant 1 : index
    %c0_19 = arith.constant 0 : index
    %53 = vector.load %arg12[%c1, %c0_19] : memref<32x1xf32, #tpu.memory_space<vmem>>, vector<30x1xf32>
    tpu.vector_store %arg12[%c1, %c0_19], %52 {strides = array<i32>} : memref<32x1xf32, #tpu.memory_space<vmem>>, vector<30x1xf32>,
    %cst_20 = arith.constant 0.000000e+00 : f32
    %54 = vector.broadcast %cst_20 : f32 to vector<28x64xf32>
    %c0_21 = arith.constant 0 : index
    %c0_22 = arith.constant 0 : index
    %55 = vector.load %arg12[%c0_21, %c0_22] : memref<32x1xf32, #tpu.memory_space<vmem>>, vector<28x1xf32>
    %c0_23 = arith.constant 0 : index
    %c0_24 = arith.constant 0 : index
    %c0_25 = arith.constant 0 : index
    %56 = vector.load %arg1[%c0_23, %c0_24, %c0_25] : memref<5x1x64xf32, #tpu.memory_space<vmem>>, vector<1x1x64xf32>
    %57 = vector.shape_cast %56 : vector<1x1x64xf32> to vector<1x64xf32>
    %58 = vector.broadcast %55 : vector<28x1xf32> to vector<28x64xf32>
    %59 = vector.broadcast %57 : vector<1x64xf32> to vector<28x64xf32>
    %60 = arith.mulf %58, %59 : vector<28x64xf32>
    %61 = arith.addf %54, %60 : vector<28x64xf32>
    %c1_26 = arith.constant 1 : index
    %c0_27 = arith.constant 0 : index
    %62 = vector.load %arg12[%c1_26, %c0_27] : memref<32x1xf32, #tpu.memory_space<vmem>>, vector<28x1xf32>
    %c1_28 = arith.constant 1 : index
    %c0_29 = arith.constant 0 : index
    %c0_30 = arith.constant 0 : index
    %63 = vector.load %arg1[%c1_28, %c0_29, %c0_30] : memref<5x1x64xf32, #tpu.memory_space<vmem>>, vector<1x1x64xf32>
    %64 = vector.shape_cast %63 : vector<1x1x64xf32> to vector<1x64xf32>
    %65 = vector.broadcast %62 : vector<28x1xf32> to vector<28x64xf32>
    %66 = vector.broadcast %64 : vector<1x64xf32> to vector<28x64xf32>
    %67 = arith.mulf %65, %66 : vector<28x64xf32>
    %68 = arith.addf %61, %67 : vector<28x64xf32>
    %c2 = arith.constant 2 : index
    %c0_31 = arith.constant 0 : index
    %69 = vector.load %arg12[%c2, %c0_31] : memref<32x1xf32, #tpu.memory_space<vmem>>, vector<28x1xf32>
    %c2_32 = arith.constant 2 : index
    %c0_33 = arith.constant 0 : index
    %c0_34 = arith.constant 0 : index
    %70 = vector.load %arg1[%c2_32, %c0_33, %c0_34] : memref<5x1x64xf32, #tpu.memory_space<vmem>>, vector<1x1x64xf32>
    %71 = vector.shape_cast %70 : vector<1x1x64xf32> to vector<1x64xf32>
    %72 = vector.broadcast %69 : vector<28x1xf32> to vector<28x64xf32>
    %73 = vector.broadcast %71 : vector<1x64xf32> to vector<28x64xf32>
    %74 = arith.mulf %72, %73 : vector<28x64xf32>
    %75 = arith.addf %68, %74 : vector<28x64xf32>
    %c3 = arith.constant 3 : index
    %c0_35 = arith.constant 0 : index
    %76 = vector.load %arg12[%c3, %c0_35] : memref<32x1xf32, #tpu.memory_space<vmem>>, vector<28x1xf32>
    %c3_36 = arith.constant 3 : index
    %c0_37 = arith.constant 0 : index
    %c0_38 = arith.constant 0 : index
    %77 = vector.load %arg1[%c3_36, %c0_37, %c0_38] : memref<5x1x64xf32, #tpu.memory_space<vmem>>, vector<1x1x64xf32>
    %78 = vector.shape_cast %77 : vector<1x1x64xf32> to vector<1x64xf32>
    %79 = vector.broadcast %76 : vector<28x1xf32> to vector<28x64xf32>
    %80 = vector.broadcast %78 : vector<1x64xf32> to vector<28x64xf32>
    %81 = arith.mulf %79, %80 : vector<28x64xf32>
    %82 = arith.addf %75, %81 : vector<28x64xf32>
    %c4 = arith.constant 4 : index
    %c0_39 = arith.constant 0 : index
    %83 = vector.load %arg12[%c4, %c0_39] : memref<32x1xf32, #tpu.memory_space<vmem>>, vector<28x1xf32>
    %c4_40 = arith.constant 4 : index
    %c0_41 = arith.constant 0 : index
    %c0_42 = arith.constant 0 : index
    %84 = vector.load %arg1[%c4_40, %c0_41, %c0_42] : memref<5x1x64xf32, #tpu.memory_space<vmem>>, vector<1x1x64xf32>
    %85 = vector.shape_cast %84 : vector<1x1x64xf32> to vector<1x64xf32>
    %86 = vector.broadcast %83 : vector<28x1xf32> to vector<28x64xf32>
    %87 = vector.broadcast %85 : vector<1x64xf32> to vector<28x64xf32>
    %88 = arith.mulf %86, %87 : vector<28x64xf32>
    %89 = arith.addf %82, %88 : vector<28x64xf32>
    %cst_43 = arith.constant dense<0.000000e+00> : vector<14x64xf32>
    %90 = tpu.matmul %6, %89, %cst_43 {dimension_numbers = #tpu.dot_dimension_numbers<[1], [0], [0], [1], [0, 0, 1, 1], [], []>} : vector<14x28xf32>, vector<28x64xf32>, vector<14x64xf32> -> vector<14x64xf32>
    %cst_44 = arith.constant dense<0.000000e+00> : vector<14x64xf32>
    %91 = tpu.matmul %13, %89, %cst_44 {dimension_numbers = #tpu.dot_dimension_numbers<[1], [0], [0], [1], [0, 0, 1, 1], [], []>} : vector<14x28xf32>, vector<28x64xf32>, vector<14x64xf32> -> vector<14x64xf32>
    %92 = arith.maximumf %90, %91 : vector<14x64xf32>
    %93 = arith.addf %92, %50 : vector<14x64xf32>
    %cst_45 = arith.constant 0.000000e+00 : f32
    %94 = vector.broadcast %cst_45 : f32 to vector<14x64xf32>
    %95 = arith.maximumf %93, %94 : vector<14x64xf32>
    %c1_46 = arith.constant 1 : index
    %c0_47 = arith.constant 0 : index
    %96 = vector.load %arg13[%c1_46, %c0_47] : memref<16x64xf32, #tpu.memory_space<vmem>>, vector<14x64xf32>
    tpu.vector_store %arg13[%c1_46, %c0_47], %95 {strides = array<i32>} : memref<16x64xf32, #tpu.memory_space<vmem>>, vector<14x64xf32>,
    %cst_48 = arith.constant 0.000000e+00 : f32
    %97 = vector.broadcast %cst_48 : f32 to vector<12x128xf32>
    %c0_49 = arith.constant 0 : index
    %c0_50 = arith.constant 0 : index
    %98 = vector.load %arg13[%c0_49, %c0_50] : memref<16x64xf32, #tpu.memory_space<vmem>>, vector<12x64xf32>
    %c0_51 = arith.constant 0 : index
    %c0_52 = arith.constant 0 : index
    %c0_53 = arith.constant 0 : index
    %99 = vector.load %arg3[%c0_51, %c0_52, %c0_53] : memref<5x64x128xf32, #tpu.memory_space<vmem>>, vector<1x64x128xf32>
    %100 = vector.shape_cast %99 : vector<1x64x128xf32> to vector<64x128xf32>
    %cst_54 = arith.constant dense<0.000000e+00> : vector<12x128xf32>
    %101 = tpu.matmul %98, %100, %cst_54 {dimension_numbers = #tpu.dot_dimension_numbers<[1], [0], [0], [1], [0, 0, 1, 1], [], []>} : vector<12x64xf32>, vector<64x128xf32>, vector<12x128xf32> -> vector<12x128xf32>
    %102 = arith.addf %97, %101 : vector<12x128xf32>
    %c1_55 = arith.constant 1 : index
    %c0_56 = arith.constant 0 : index
    %103 = vector.load %arg13[%c1_55, %c0_56] : memref<16x64xf32, #tpu.memory_space<vmem>>, vector<12x64xf32>
    %c1_57 = arith.constant 1 : index
    %c0_58 = arith.constant 0 : index
    %c0_59 = arith.constant 0 : index
    %104 = vector.load %arg3[%c1_57, %c0_58, %c0_59] : memref<5x64x128xf32, #tpu.memory_space<vmem>>, vector<1x64x128xf32>
    %105 = vector.shape_cast %104 : vector<1x64x128xf32> to vector<64x128xf32>
    %cst_60 = arith.constant dense<0.000000e+00> : vector<12x128xf32>
    %106 = tpu.matmul %103, %105, %cst_60 {dimension_numbers = #tpu.dot_dimension_numbers<[1], [0], [0], [1], [0, 0, 1, 1], [], []>} : vector<12x64xf32>, vector<64x128xf32>, vector<12x128xf32> -> vector<12x128xf32>
    %107 = arith.addf %102, %106 : vector<12x128xf32>
    %c2_61 = arith.constant 2 : index
    %c0_62 = arith.constant 0 : index
    %108 = vector.load %arg13[%c2_61, %c0_62] : memref<16x64xf32, #tpu.memory_space<vmem>>, vector<12x64xf32>
    %c2_63 = arith.constant 2 : index
    %c0_64 = arith.constant 0 : index
    %c0_65 = arith.constant 0 : index
    %109 = vector.load %arg3[%c2_63, %c0_64, %c0_65] : memref<5x64x128xf32, #tpu.memory_space<vmem>>, vector<1x64x128xf32>
    %110 = vector.shape_cast %109 : vector<1x64x128xf32> to vector<64x128xf32>
    %cst_66 = arith.constant dense<0.000000e+00> : vector<12x128xf32>
    %111 = tpu.matmul %108, %110, %cst_66 {dimension_numbers = #tpu.dot_dimension_numbers<[1], [0], [0], [1], [0, 0, 1, 1], [], []>} : vector<12x64xf32>, vector<64x128xf32>, vector<12x128xf32> -> vector<12x128xf32>
    %112 = arith.addf %107, %111 : vector<12x128xf32>
    %c3_67 = arith.constant 3 : index
    %c0_68 = arith.constant 0 : index
    %113 = vector.load %arg13[%c3_67, %c0_68] : memref<16x64xf32, #tpu.memory_space<vmem>>, vector<12x64xf32>
    %c3_69 = arith.constant 3 : index
    %c0_70 = arith.constant 0 : index
    %c0_71 = arith.constant 0 : index
    %114 = vector.load %arg3[%c3_69, %c0_70, %c0_71] : memref<5x64x128xf32, #tpu.memory_space<vmem>>, vector<1x64x128xf32>
    %115 = vector.shape_cast %114 : vector<1x64x128xf32> to vector<64x128xf32>
    %cst_72 = arith.constant dense<0.000000e+00> : vector<12x128xf32>
    %116 = tpu.matmul %113, %115, %cst_72 {dimension_numbers = #tpu.dot_dimension_numbers<[1], [0], [0], [1], [0, 0, 1, 1], [], []>} : vector<12x64xf32>, vector<64x128xf32>, vector<12x128xf32> -> vector<12x128xf32>
    %117 = arith.addf %112, %116 : vector<12x128xf32>
    %c4_73 = arith.constant 4 : index
    %c0_74 = arith.constant 0 : index
    %118 = vector.load %arg13[%c4_73, %c0_74] : memref<16x64xf32, #tpu.memory_space<vmem>>, vector<12x64xf32>
    %c4_75 = arith.constant 4 : index
    %c0_76 = arith.constant 0 : index
    %c0_77 = arith.constant 0 : index
    %119 = vector.load %arg3[%c4_75, %c0_76, %c0_77] : memref<5x64x128xf32, #tpu.memory_space<vmem>>, vector<1x64x128xf32>
    %120 = vector.shape_cast %119 : vector<1x64x128xf32> to vector<64x128xf32>
    %cst_78 = arith.constant dense<0.000000e+00> : vector<12x128xf32>
    %121 = tpu.matmul %118, %120, %cst_78 {dimension_numbers = #tpu.dot_dimension_numbers<[1], [0], [0], [1], [0, 0, 1, 1], [], []>} : vector<12x64xf32>, vector<64x128xf32>, vector<12x128xf32> -> vector<12x128xf32>
    %122 = arith.addf %117, %121 : vector<12x128xf32>
    %cst_79 = arith.constant dense<0.000000e+00> : vector<6x128xf32>
    %123 = tpu.matmul %20, %122, %cst_79 {dimension_numbers = #tpu.dot_dimension_numbers<[1], [0], [0], [1], [0, 0, 1, 1], [], []>} : vector<6x12xf32>, vector<12x128xf32>, vector<6x128xf32> -> vector<6x128xf32>
    %cst_80 = arith.constant dense<0.000000e+00> : vector<6x128xf32>
    %124 = tpu.matmul %27, %122, %cst_80 {dimension_numbers = #tpu.dot_dimension_numbers<[1], [0], [0], [1], [0, 0, 1, 1], [], []>} : vector<6x12xf32>, vector<12x128xf32>, vector<6x128xf32> -> vector<6x128xf32>
    %125 = arith.maximumf %123, %124 : vector<6x128xf32>
    %cst_81 = arith.constant 0.000000e+00 : f32
    %126 = vector.broadcast %cst_81 : f32 to vector<6x128xf32>
    %127 = arith.maximumf %125, %126 : vector<6x128xf32>
    %c1_82 = arith.constant 1 : index
    %c0_83 = arith.constant 0 : index
    %128 = vector.load %arg14[%c1_82, %c0_83] : memref<8x128xf32, #tpu.memory_space<vmem>>, vector<6x128xf32>
    tpu.vector_store %arg14[%c1_82, %c0_83], %127 {strides = array<i32>} : memref<8x128xf32, #tpu.memory_space<vmem>>, vector<6x128xf32>,
    %cst_84 = arith.constant 0.000000e+00 : f32
    %129 = vector.broadcast %cst_84 : f32 to vector<4x256xf32>
    %c0_85 = arith.constant 0 : index
    %c0_86 = arith.constant 0 : index
    %130 = vector.load %arg14[%c0_85, %c0_86] : memref<8x128xf32, #tpu.memory_space<vmem>>, vector<4x128xf32>
    %c0_87 = arith.constant 0 : index
    %c0_88 = arith.constant 0 : index
    %c0_89 = arith.constant 0 : index
    %131 = vector.load %arg4[%c0_87, %c0_88, %c0_89] : memref<5x128x256xf32, #tpu.memory_space<vmem>>, vector<1x128x256xf32>
    %132 = vector.shape_cast %131 : vector<1x128x256xf32> to vector<128x256xf32>
    %cst_90 = arith.constant dense<0.000000e+00> : vector<4x256xf32>
    %133 = tpu.matmul %130, %132, %cst_90 {dimension_numbers = #tpu.dot_dimension_numbers<[1], [0], [0], [1], [0, 0, 1, 1], [], []>} : vector<4x128xf32>, vector<128x256xf32>, vector<4x256xf32> -> vector<4x256xf32>
    %134 = arith.addf %129, %133 : vector<4x256xf32>
    %c1_91 = arith.constant 1 : index
    %c0_92 = arith.constant 0 : index
    %135 = vector.load %arg14[%c1_91, %c0_92] : memref<8x128xf32, #tpu.memory_space<vmem>>, vector<4x128xf32>
    %c1_93 = arith.constant 1 : index
    %c0_94 = arith.constant 0 : index
    %c0_95 = arith.constant 0 : index
    %136 = vector.load %arg4[%c1_93, %c0_94, %c0_95] : memref<5x128x256xf32, #tpu.memory_space<vmem>>, vector<1x128x256xf32>
    %137 = vector.shape_cast %136 : vector<1x128x256xf32> to vector<128x256xf32>
    %cst_96 = arith.constant dense<0.000000e+00> : vector<4x256xf32>
    %138 = tpu.matmul %135, %137, %cst_96 {dimension_numbers = #tpu.dot_dimension_numbers<[1], [0], [0], [1], [0, 0, 1, 1], [], []>} : vector<4x128xf32>, vector<128x256xf32>, vector<4x256xf32> -> vector<4x256xf32>
    %139 = arith.addf %134, %138 : vector<4x256xf32>
    %c2_97 = arith.constant 2 : index
    %c0_98 = arith.constant 0 : index
    %140 = vector.load %arg14[%c2_97, %c0_98] : memref<8x128xf32, #tpu.memory_space<vmem>>, vector<4x128xf32>
    %c2_99 = arith.constant 2 : index
    %c0_100 = arith.constant 0 : index
    %c0_101 = arith.constant 0 : index
    %141 = vector.load %arg4[%c2_99, %c0_100, %c0_101] : memref<5x128x256xf32, #tpu.memory_space<vmem>>, vector<1x128x256xf32>
    %142 = vector.shape_cast %141 : vector<1x128x256xf32> to vector<128x256xf32>
    %cst_102 = arith.constant dense<0.000000e+00> : vector<4x256xf32>
    %143 = tpu.matmul %140, %142, %cst_102 {dimension_numbers = #tpu.dot_dimension_numbers<[1], [0], [0], [1], [0, 0, 1, 1], [], []>} : vector<4x128xf32>, vector<128x256xf32>, vector<4x256xf32> -> vector<4x256xf32>
    %144 = arith.addf %139, %143 : vector<4x256xf32>
    %c3_103 = arith.constant 3 : index
    %c0_104 = arith.constant 0 : index
    %145 = vector.load %arg14[%c3_103, %c0_104] : memref<8x128xf32, #tpu.memory_space<vmem>>, vector<4x128xf32>
    %c3_105 = arith.constant 3 : index
    %c0_106 = arith.constant 0 : index
    %c0_107 = arith.constant 0 : index
    %146 = vector.load %arg4[%c3_105, %c0_106, %c0_107] : memref<5x128x256xf32, #tpu.memory_space<vmem>>, vector<1x128x256xf32>
    %147 = vector.shape_cast %146 : vector<1x128x256xf32> to vector<128x256xf32>
    %cst_108 = arith.constant dense<0.000000e+00> : vector<4x256xf32>
    %148 = tpu.matmul %145, %147, %cst_108 {dimension_numbers = #tpu.dot_dimension_numbers<[1], [0], [0], [1], [0, 0, 1, 1], [], []>} : vector<4x128xf32>, vector<128x256xf32>, vector<4x256xf32> -> vector<4x256xf32>
    %149 = arith.addf %144, %148 : vector<4x256xf32>
    %c4_109 = arith.constant 4 : index
    %c0_110 = arith.constant 0 : index
    %150 = vector.load %arg14[%c4_109, %c0_110] : memref<8x128xf32, #tpu.memory_space<vmem>>, vector<4x128xf32>
    %c4_111 = arith.constant 4 : index
    %c0_112 = arith.constant 0 : index
    %c0_113 = arith.constant 0 : index
    %151 = vector.load %arg4[%c4_111, %c0_112, %c0_113] : memref<5x128x256xf32, #tpu.memory_space<vmem>>, vector<1x128x256xf32>
    %152 = vector.shape_cast %151 : vector<1x128x256xf32> to vector<128x256xf32>
    %cst_114 = arith.constant dense<0.000000e+00> : vector<4x256xf32>
    %153 = tpu.matmul %150, %152, %cst_114 {dimension_numbers = #tpu.dot_dimension_numbers<[1], [0], [0], [1], [0, 0, 1, 1], [], []>} : vector<4x128xf32>, vector<128x256xf32>, vector<4x256xf32> -> vector<4x256xf32>
    %154 = arith.addf %149, %153 : vector<4x256xf32>
    %cst_115 = arith.constant dense<0.000000e+00> : vector<2x256xf32>
    %155 = tpu.matmul %34, %154, %cst_115 {dimension_numbers = #tpu.dot_dimension_numbers<[1], [0], [0], [1], [0, 0, 1, 1], [], []>} : vector<2x4xf32>, vector<4x256xf32>, vector<2x256xf32> -> vector<2x256xf32>
    %cst_116 = arith.constant dense<0.000000e+00> : vector<2x256xf32>
    %156 = tpu.matmul %41, %154, %cst_116 {dimension_numbers = #tpu.dot_dimension_numbers<[1], [0], [0], [1], [0, 0, 1, 1], [], []>} : vector<2x4xf32>, vector<4x256xf32>, vector<2x256xf32> -> vector<2x256xf32>
    %157 = arith.maximumf %155, %156 : vector<2x256xf32>
    %cst_117 = arith.constant 0.000000e+00 : f32
    %158 = vector.broadcast %cst_117 : f32 to vector<2x256xf32>
    %159 = arith.maximumf %157, %158 : vector<2x256xf32>
    %160 = vector.extract_strided_slice %159 {offsets = [0, 0], sizes = [1, 256], strides = [1, 1]} : vector<2x256xf32> to vector<1x256xf32>
    %c0_118 = arith.constant 0 : index
    %c0_119 = arith.constant 0 : index
    %c0_120 = arith.constant 0 : index
    %161 = vector.load %arg15[%c0_118, %c0_119, %c0_120] : memref<2x2x256xf32, #tpu.memory_space<vmem>>, vector<1x1x256xf32>
    %162 = vector.shape_cast %161 : vector<1x1x256xf32> to vector<1x256xf32>
    %163 = vector.shape_cast %160 : vector<1x256xf32> to vector<1x1x256xf32>
    tpu.vector_store %arg15[%c0_118, %c0_119, %c0_120], %163 {strides = array<i32>} : memref<2x2x256xf32, #tpu.memory_space<vmem>>, vector<1x1x256xf32>,
    %164 = vector.extract_strided_slice %159 {offsets = [1, 0], sizes = [1, 256], strides = [1, 1]} : vector<2x256xf32> to vector<1x256xf32>
    %c1_121 = arith.constant 1 : index
    %c0_122 = arith.constant 0 : index
    %c0_123 = arith.constant 0 : index
    %165 = vector.load %arg15[%c1_121, %c0_122, %c0_123] : memref<2x2x256xf32, #tpu.memory_space<vmem>>, vector<1x1x256xf32>
    %166 = vector.shape_cast %165 : vector<1x1x256xf32> to vector<1x256xf32>
    %167 = vector.shape_cast %164 : vector<1x256xf32> to vector<1x1x256xf32>
    tpu.vector_store %arg15[%c1_121, %c0_122, %c0_123], %167 {strides = array<i32>} : memref<2x2x256xf32, #tpu.memory_space<vmem>>, vector<1x1x256xf32>,
    %c1_124 = arith.constant 1 : index
    %c0_125 = arith.constant 0 : index
    %c0_126 = arith.constant 0 : index
    %168 = vector.load %arg0[%c1_124, %c0_125, %c0_126] : memref<2x30x1xf32, #tpu.memory_space<vmem>>, vector<1x30x1xf32>
    %169 = vector.shape_cast %168 : vector<1x30x1xf32> to vector<30x1xf32>
    %c1_127 = arith.constant 1 : index
    %c0_128 = arith.constant 0 : index
    %170 = vector.load %arg12[%c1_127, %c0_128] : memref<32x1xf32, #tpu.memory_space<vmem>>, vector<30x1xf32>
    tpu.vector_store %arg12[%c1_127, %c0_128], %169 {strides = array<i32>} : memref<32x1xf32, #tpu.memory_space<vmem>>, vector<30x1xf32>,
    %cst_129 = arith.constant 0.000000e+00 : f32
    %171 = vector.broadcast %cst_129 : f32 to vector<28x64xf32>
    %c0_130 = arith.constant 0 : index
    %c0_131 = arith.constant 0 : index
    %172 = vector.load %arg12[%c0_130, %c0_131] : memref<32x1xf32, #tpu.memory_space<vmem>>, vector<28x1xf32>
    %c0_132 = arith.constant 0 : index
    %c0_133 = arith.constant 0 : index
    %c0_134 = arith.constant 0 : index
    %173 = vector.load %arg1[%c0_132, %c0_133, %c0_134] : memref<5x1x64xf32, #tpu.memory_space<vmem>>, vector<1x1x64xf32>
    %174 = vector.shape_cast %173 : vector<1x1x64xf32> to vector<1x64xf32>
    %175 = vector.broadcast %172 : vector<28x1xf32> to vector<28x64xf32>
    %176 = vector.broadcast %174 : vector<1x64xf32> to vector<28x64xf32>
    %177 = arith.mulf %175, %176 : vector<28x64xf32>
    %178 = arith.addf %171, %177 : vector<28x64xf32>
    %c1_135 = arith.constant 1 : index
    %c0_136 = arith.constant 0 : index
    %179 = vector.load %arg12[%c1_135, %c0_136] : memref<32x1xf32, #tpu.memory_space<vmem>>, vector<28x1xf32>
    %c1_137 = arith.constant 1 : index
    %c0_138 = arith.constant 0 : index
    %c0_139 = arith.constant 0 : index
    %180 = vector.load %arg1[%c1_137, %c0_138, %c0_139] : memref<5x1x64xf32, #tpu.memory_space<vmem>>, vector<1x1x64xf32>
    %181 = vector.shape_cast %180 : vector<1x1x64xf32> to vector<1x64xf32>
    %182 = vector.broadcast %179 : vector<28x1xf32> to vector<28x64xf32>
    %183 = vector.broadcast %181 : vector<1x64xf32> to vector<28x64xf32>
    %184 = arith.mulf %182, %183 : vector<28x64xf32>
    %185 = arith.addf %178, %184 : vector<28x64xf32>
    %c2_140 = arith.constant 2 : index
    %c0_141 = arith.constant 0 : index
    %186 = vector.load %arg12[%c2_140, %c0_141] : memref<32x1xf32, #tpu.memory_space<vmem>>, vector<28x1xf32>
    %c2_142 = arith.constant 2 : index
    %c0_143 = arith.constant 0 : index
    %c0_144 = arith.constant 0 : index
    %187 = vector.load %arg1[%c2_142, %c0_143, %c0_144] : memref<5x1x64xf32, #tpu.memory_space<vmem>>, vector<1x1x64xf32>
    %188 = vector.shape_cast %187 : vector<1x1x64xf32> to vector<1x64xf32>
    %189 = vector.broadcast %186 : vector<28x1xf32> to vector<28x64xf32>
    %190 = vector.broadcast %188 : vector<1x64xf32> to vector<28x64xf32>
    %191 = arith.mulf %189, %190 : vector<28x64xf32>
    %192 = arith.addf %185, %191 : vector<28x64xf32>
    %c3_145 = arith.constant 3 : index
    %c0_146 = arith.constant 0 : index
    %193 = vector.load %arg12[%c3_145, %c0_146] : memref<32x1xf32, #tpu.memory_space<vmem>>, vector<28x1xf32>
    %c3_147 = arith.constant 3 : index
    %c0_148 = arith.constant 0 : index
    %c0_149 = arith.constant 0 : index
    %194 = vector.load %arg1[%c3_147, %c0_148, %c0_149] : memref<5x1x64xf32, #tpu.memory_space<vmem>>, vector<1x1x64xf32>
    %195 = vector.shape_cast %194 : vector<1x1x64xf32> to vector<1x64xf32>
    %196 = vector.broadcast %193 : vector<28x1xf32> to vector<28x64xf32>
    %197 = vector.broadcast %195 : vector<1x64xf32> to vector<28x64xf32>
    %198 = arith.mulf %196, %197 : vector<28x64xf32>
    %199 = arith.addf %192, %198 : vector<28x64xf32>
    %c4_150 = arith.constant 4 : index
    %c0_151 = arith.constant 0 : index
    %200 = vector.load %arg12[%c4_150, %c0_151] : memref<32x1xf32, #tpu.memory_space<vmem>>, vector<28x1xf32>
    %c4_152 = arith.constant 4 : index
    %c0_153 = arith.constant 0 : index
    %c0_154 = arith.constant 0 : index
    %201 = vector.load %arg1[%c4_152, %c0_153, %c0_154] : memref<5x1x64xf32, #tpu.memory_space<vmem>>, vector<1x1x64xf32>
    %202 = vector.shape_cast %201 : vector<1x1x64xf32> to vector<1x64xf32>
    %203 = vector.broadcast %200 : vector<28x1xf32> to vector<28x64xf32>
    %204 = vector.broadcast %202 : vector<1x64xf32> to vector<28x64xf32>
    %205 = arith.mulf %203, %204 : vector<28x64xf32>
    %206 = arith.addf %199, %205 : vector<28x64xf32>
    %cst_155 = arith.constant dense<0.000000e+00> : vector<14x64xf32>
    %207 = tpu.matmul %6, %206, %cst_155 {dimension_numbers = #tpu.dot_dimension_numbers<[1], [0], [0], [1], [0, 0, 1, 1], [], []>} : vector<14x28xf32>, vector<28x64xf32>, vector<14x64xf32> -> vector<14x64xf32>
    %cst_156 = arith.constant dense<0.000000e+00> : vector<14x64xf32>
    %208 = tpu.matmul %13, %206, %cst_156 {dimension_numbers = #tpu.dot_dimension_numbers<[1], [0], [0], [1], [0, 0, 1, 1], [], []>} : vector<14x28xf32>, vector<28x64xf32>, vector<14x64xf32> -> vector<14x64xf32>
    %209 = arith.maximumf %207, %208 : vector<14x64xf32>
    %210 = arith.addf %209, %50 : vector<14x64xf32>
    %cst_157 = arith.constant 0.000000e+00 : f32
    %211 = vector.broadcast %cst_157 : f32 to vector<14x64xf32>
    %212 = arith.maximumf %210, %211 : vector<14x64xf32>
    %c1_158 = arith.constant 1 : index
    %c0_159 = arith.constant 0 : index
    %213 = vector.load %arg13[%c1_158, %c0_159] : memref<16x64xf32, #tpu.memory_space<vmem>>, vector<14x64xf32>
    tpu.vector_store %arg13[%c1_158, %c0_159], %212 {strides = array<i32>} : memref<16x64xf32, #tpu.memory_space<vmem>>, vector<14x64xf32>,
    %cst_160 = arith.constant 0.000000e+00 : f32
    %214 = vector.broadcast %cst_160 : f32 to vector<12x128xf32>
    %c0_161 = arith.constant 0 : index
    %c0_162 = arith.constant 0 : index
    %215 = vector.load %arg13[%c0_161, %c0_162] : memref<16x64xf32, #tpu.memory_space<vmem>>, vector<12x64xf32>
    %c0_163 = arith.constant 0 : index
    %c0_164 = arith.constant 0 : index
    %c0_165 = arith.constant 0 : index
    %216 = vector.load %arg3[%c0_163, %c0_164, %c0_165] : memref<5x64x128xf32, #tpu.memory_space<vmem>>, vector<1x64x128xf32>
    %217 = vector.shape_cast %216 : vector<1x64x128xf32> to vector<64x128xf32>
    %cst_166 = arith.constant dense<0.000000e+00> : vector<12x128xf32>
    %218 = tpu.matmul %215, %217, %cst_166 {dimension_numbers = #tpu.dot_dimension_numbers<[1], [0], [0], [1], [0, 0, 1, 1], [], []>} : vector<12x64xf32>, vector<64x128xf32>, vector<12x128xf32> -> vector<12x128xf32>
    %219 = arith.addf %214, %218 : vector<12x128xf32>
    %c1_167 = arith.constant 1 : index
    %c0_168 = arith.constant 0 : index
    %220 = vector.load %arg13[%c1_167, %c0_168] : memref<16x64xf32, #tpu.memory_space<vmem>>, vector<12x64xf32>
    %c1_169 = arith.constant 1 : index
    %c0_170 = arith.constant 0 : index
    %c0_171 = arith.constant 0 : index
    %221 = vector.load %arg3[%c1_169, %c0_170, %c0_171] : memref<5x64x128xf32, #tpu.memory_space<vmem>>, vector<1x64x128xf32>
    %222 = vector.shape_cast %221 : vector<1x64x128xf32> to vector<64x128xf32>
    %cst_172 = arith.constant dense<0.000000e+00> : vector<12x128xf32>
    %223 = tpu.matmul %220, %222, %cst_172 {dimension_numbers = #tpu.dot_dimension_numbers<[1], [0], [0], [1], [0, 0, 1, 1], [], []>} : vector<12x64xf32>, vector<64x128xf32>, vector<12x128xf32> -> vector<12x128xf32>
    %224 = arith.addf %219, %223 : vector<12x128xf32>
    %c2_173 = arith.constant 2 : index
    %c0_174 = arith.constant 0 : index
    %225 = vector.load %arg13[%c2_173, %c0_174] : memref<16x64xf32, #tpu.memory_space<vmem>>, vector<12x64xf32>
    %c2_175 = arith.constant 2 : index
    %c0_176 = arith.constant 0 : index
    %c0_177 = arith.constant 0 : index
    %226 = vector.load %arg3[%c2_175, %c0_176, %c0_177] : memref<5x64x128xf32, #tpu.memory_space<vmem>>, vector<1x64x128xf32>
    %227 = vector.shape_cast %226 : vector<1x64x128xf32> to vector<64x128xf32>
    %cst_178 = arith.constant dense<0.000000e+00> : vector<12x128xf32>
    %228 = tpu.matmul %225, %227, %cst_178 {dimension_numbers = #tpu.dot_dimension_numbers<[1], [0], [0], [1], [0, 0, 1, 1], [], []>} : vector<12x64xf32>, vector<64x128xf32>, vector<12x128xf32> -> vector<12x128xf32>
    %229 = arith.addf %224, %228 : vector<12x128xf32>
    %c3_179 = arith.constant 3 : index
    %c0_180 = arith.constant 0 : index
    %230 = vector.load %arg13[%c3_179, %c0_180] : memref<16x64xf32, #tpu.memory_space<vmem>>, vector<12x64xf32>
    %c3_181 = arith.constant 3 : index
    %c0_182 = arith.constant 0 : index
    %c0_183 = arith.constant 0 : index
    %231 = vector.load %arg3[%c3_181, %c0_182, %c0_183] : memref<5x64x128xf32, #tpu.memory_space<vmem>>, vector<1x64x128xf32>
    %232 = vector.shape_cast %231 : vector<1x64x128xf32> to vector<64x128xf32>
    %cst_184 = arith.constant dense<0.000000e+00> : vector<12x128xf32>
    %233 = tpu.matmul %230, %232, %cst_184 {dimension_numbers = #tpu.dot_dimension_numbers<[1], [0], [0], [1], [0, 0, 1, 1], [], []>} : vector<12x64xf32>, vector<64x128xf32>, vector<12x128xf32> -> vector<12x128xf32>
    %234 = arith.addf %229, %233 : vector<12x128xf32>
    %c4_185 = arith.constant 4 : index
    %c0_186 = arith.constant 0 : index
    %235 = vector.load %arg13[%c4_185, %c0_186] : memref<16x64xf32, #tpu.memory_space<vmem>>, vector<12x64xf32>
    %c4_187 = arith.constant 4 : index
    %c0_188 = arith.constant 0 : index
    %c0_189 = arith.constant 0 : index
    %236 = vector.load %arg3[%c4_187, %c0_188, %c0_189] : memref<5x64x128xf32, #tpu.memory_space<vmem>>, vector<1x64x128xf32>
    %237 = vector.shape_cast %236 : vector<1x64x128xf32> to vector<64x128xf32>
    %cst_190 = arith.constant dense<0.000000e+00> : vector<12x128xf32>
    %238 = tpu.matmul %235, %237, %cst_190 {dimension_numbers = #tpu.dot_dimension_numbers<[1], [0], [0], [1], [0, 0, 1, 1], [], []>} : vector<12x64xf32>, vector<64x128xf32>, vector<12x128xf32> -> vector<12x128xf32>
    %239 = arith.addf %234, %238 : vector<12x128xf32>
    %cst_191 = arith.constant dense<0.000000e+00> : vector<6x128xf32>
    %240 = tpu.matmul %20, %239, %cst_191 {dimension_numbers = #tpu.dot_dimension_numbers<[1], [0], [0], [1], [0, 0, 1, 1], [], []>} : vector<6x12xf32>, vector<12x128xf32>, vector<6x128xf32> -> vector<6x128xf32>
    %cst_192 = arith.constant dense<0.000000e+00> : vector<6x128xf32>
    %241 = tpu.matmul %27, %239, %cst_192 {dimension_numbers = #tpu.dot_dimension_numbers<[1], [0], [0], [1], [0, 0, 1, 1], [], []>} : vector<6x12xf32>, vector<12x128xf32>, vector<6x128xf32> -> vector<6x128xf32>
    %242 = arith.maximumf %240, %241 : vector<6x128xf32>
    %cst_193 = arith.constant 0.000000e+00 : f32
    %243 = vector.broadcast %cst_193 : f32 to vector<6x128xf32>
    %244 = arith.maximumf %242, %243 : vector<6x128xf32>
    %c1_194 = arith.constant 1 : index
    %c0_195 = arith.constant 0 : index
    %245 = vector.load %arg14[%c1_194, %c0_195] : memref<8x128xf32, #tpu.memory_space<vmem>>, vector<6x128xf32>
    tpu.vector_store %arg14[%c1_194, %c0_195], %244 {strides = array<i32>} : memref<8x128xf32, #tpu.memory_space<vmem>>, vector<6x128xf32>,
    %cst_196 = arith.constant 0.000000e+00 : f32
    %246 = vector.broadcast %cst_196 : f32 to vector<4x256xf32>
    %c0_197 = arith.constant 0 : index
    %c0_198 = arith.constant 0 : index
    %247 = vector.load %arg14[%c0_197, %c0_198] : memref<8x128xf32, #tpu.memory_space<vmem>>, vector<4x128xf32>
    %c0_199 = arith.constant 0 : index
    %c0_200 = arith.constant 0 : index
    %c0_201 = arith.constant 0 : index
    %248 = vector.load %arg4[%c0_199, %c0_200, %c0_201] : memref<5x128x256xf32, #tpu.memory_space<vmem>>, vector<1x128x256xf32>
    %249 = vector.shape_cast %248 : vector<1x128x256xf32> to vector<128x256xf32>
    %cst_202 = arith.constant dense<0.000000e+00> : vector<4x256xf32>
    %250 = tpu.matmul %247, %249, %cst_202 {dimension_numbers = #tpu.dot_dimension_numbers<[1], [0], [0], [1], [0, 0, 1, 1], [], []>} : vector<4x128xf32>, vector<128x256xf32>, vector<4x256xf32> -> vector<4x256xf32>
    %251 = arith.addf %246, %250 : vector<4x256xf32>
    %c1_203 = arith.constant 1 : index
    %c0_204 = arith.constant 0 : index
    %252 = vector.load %arg14[%c1_203, %c0_204] : memref<8x128xf32, #tpu.memory_space<vmem>>, vector<4x128xf32>
    %c1_205 = arith.constant 1 : index
    %c0_206 = arith.constant 0 : index
    %c0_207 = arith.constant 0 : index
    %253 = vector.load %arg4[%c1_205, %c0_206, %c0_207] : memref<5x128x256xf32, #tpu.memory_space<vmem>>, vector<1x128x256xf32>
    %254 = vector.shape_cast %253 : vector<1x128x256xf32> to vector<128x256xf32>
    %cst_208 = arith.constant dense<0.000000e+00> : vector<4x256xf32>
    %255 = tpu.matmul %252, %254, %cst_208 {dimension_numbers = #tpu.dot_dimension_numbers<[1], [0], [0], [1], [0, 0, 1, 1], [], []>} : vector<4x128xf32>, vector<128x256xf32>, vector<4x256xf32> -> vector<4x256xf32>
    %256 = arith.addf %251, %255 : vector<4x256xf32>
    %c2_209 = arith.constant 2 : index
    %c0_210 = arith.constant 0 : index
    %257 = vector.load %arg14[%c2_209, %c0_210] : memref<8x128xf32, #tpu.memory_space<vmem>>, vector<4x128xf32>
    %c2_211 = arith.constant 2 : index
    %c0_212 = arith.constant 0 : index
    %c0_213 = arith.constant 0 : index
    %258 = vector.load %arg4[%c2_211, %c0_212, %c0_213] : memref<5x128x256xf32, #tpu.memory_space<vmem>>, vector<1x128x256xf32>
    %259 = vector.shape_cast %258 : vector<1x128x256xf32> to vector<128x256xf32>
    %cst_214 = arith.constant dense<0.000000e+00> : vector<4x256xf32>
    %260 = tpu.matmul %257, %259, %cst_214 {dimension_numbers = #tpu.dot_dimension_numbers<[1], [0], [0], [1], [0, 0, 1, 1], [], []>} : vector<4x128xf32>, vector<128x256xf32>, vector<4x256xf32> -> vector<4x256xf32>
    %261 = arith.addf %256, %260 : vector<4x256xf32>
    %c3_215 = arith.constant 3 : index
    %c0_216 = arith.constant 0 : index
    %262 = vector.load %arg14[%c3_215, %c0_216] : memref<8x128xf32, #tpu.memory_space<vmem>>, vector<4x128xf32>
    %c3_217 = arith.constant 3 : index
    %c0_218 = arith.constant 0 : index
    %c0_219 = arith.constant 0 : index
    %263 = vector.load %arg4[%c3_217, %c0_218, %c0_219] : memref<5x128x256xf32, #tpu.memory_space<vmem>>, vector<1x128x256xf32>
    %264 = vector.shape_cast %263 : vector<1x128x256xf32> to vector<128x256xf32>
    %cst_220 = arith.constant dense<0.000000e+00> : vector<4x256xf32>
    %265 = tpu.matmul %262, %264, %cst_220 {dimension_numbers = #tpu.dot_dimension_numbers<[1], [0], [0], [1], [0, 0, 1, 1], [], []>} : vector<4x128xf32>, vector<128x256xf32>, vector<4x256xf32> -> vector<4x256xf32>
    %266 = arith.addf %261, %265 : vector<4x256xf32>
    %c4_221 = arith.constant 4 : index
    %c0_222 = arith.constant 0 : index
    %267 = vector.load %arg14[%c4_221, %c0_222] : memref<8x128xf32, #tpu.memory_space<vmem>>, vector<4x128xf32>
    %c4_223 = arith.constant 4 : index
    %c0_224 = arith.constant 0 : index
    %c0_225 = arith.constant 0 : index
    %268 = vector.load %arg4[%c4_223, %c0_224, %c0_225] : memref<5x128x256xf32, #tpu.memory_space<vmem>>, vector<1x128x256xf32>
    %269 = vector.shape_cast %268 : vector<1x128x256xf32> to vector<128x256xf32>
    %cst_226 = arith.constant dense<0.000000e+00> : vector<4x256xf32>
    %270 = tpu.matmul %267, %269, %cst_226 {dimension_numbers = #tpu.dot_dimension_numbers<[1], [0], [0], [1], [0, 0, 1, 1], [], []>} : vector<4x128xf32>, vector<128x256xf32>, vector<4x256xf32> -> vector<4x256xf32>
    %271 = arith.addf %266, %270 : vector<4x256xf32>
    %cst_227 = arith.constant dense<0.000000e+00> : vector<2x256xf32>
    %272 = tpu.matmul %34, %271, %cst_227 {dimension_numbers = #tpu.dot_dimension_numbers<[1], [0], [0], [1], [0, 0, 1, 1], [], []>} : vector<2x4xf32>, vector<4x256xf32>, vector<2x256xf32> -> vector<2x256xf32>
    %cst_228 = arith.constant dense<0.000000e+00> : vector<2x256xf32>
    %273 = tpu.matmul %41, %271, %cst_228 {dimension_numbers = #tpu.dot_dimension_numbers<[1], [0], [0], [1], [0, 0, 1, 1], [], []>} : vector<2x4xf32>, vector<4x256xf32>, vector<2x256xf32> -> vector<2x256xf32>
    %274 = arith.maximumf %272, %273 : vector<2x256xf32>
    %cst_229 = arith.constant 0.000000e+00 : f32
    %275 = vector.broadcast %cst_229 : f32 to vector<2x256xf32>
    %276 = arith.maximumf %274, %275 : vector<2x256xf32>
    %277 = vector.extract_strided_slice %276 {offsets = [0, 0], sizes = [1, 256], strides = [1, 1]} : vector<2x256xf32> to vector<1x256xf32>
    %c0_230 = arith.constant 0 : index
    %c1_231 = arith.constant 1 : index
    %c0_232 = arith.constant 0 : index
    %278 = vector.load %arg15[%c0_230, %c1_231, %c0_232] : memref<2x2x256xf32, #tpu.memory_space<vmem>>, vector<1x1x256xf32>
    %279 = vector.shape_cast %278 : vector<1x1x256xf32> to vector<1x256xf32>
    %280 = vector.shape_cast %277 : vector<1x256xf32> to vector<1x1x256xf32>
    tpu.vector_store %arg15[%c0_230, %c1_231, %c0_232], %280 {strides = array<i32>} : memref<2x2x256xf32, #tpu.memory_space<vmem>>, vector<1x1x256xf32>,
    %281 = vector.extract_strided_slice %276 {offsets = [1, 0], sizes = [1, 256], strides = [1, 1]} : vector<2x256xf32> to vector<1x256xf32>
    %c1_233 = arith.constant 1 : index
    %c1_234 = arith.constant 1 : index
    %c0_235 = arith.constant 0 : index
    %282 = vector.load %arg15[%c1_233, %c1_234, %c0_235] : memref<2x2x256xf32, #tpu.memory_space<vmem>>, vector<1x1x256xf32>
    %283 = vector.shape_cast %282 : vector<1x1x256xf32> to vector<1x256xf32>
    %284 = vector.shape_cast %281 : vector<1x256xf32> to vector<1x1x256xf32>
    tpu.vector_store %arg15[%c1_233, %c1_234, %c0_235], %284 {strides = array<i32>} : memref<2x2x256xf32, #tpu.memory_space<vmem>>, vector<1x1x256xf32>,
    %cst_236 = arith.constant 0.000000e+00 : f32
    %285 = vector.broadcast %cst_236 : f32 to vector<2x64xf32>
    %c0_237 = arith.constant 0 : index
    %c0_238 = arith.constant 0 : index
    %c0_239 = arith.constant 0 : index
    %286 = vector.load %arg15[%c0_237, %c0_238, %c0_239] : memref<2x2x256xf32, #tpu.memory_space<vmem>>, vector<1x2x256xf32>
    %287 = vector.shape_cast %286 : vector<1x2x256xf32> to vector<2x256xf32>
    %c0_240 = arith.constant 0 : index
    %c0_241 = arith.constant 0 : index
    %c0_242 = arith.constant 0 : index
    %288 = vector.load %arg5[%c0_240, %c0_241, %c0_242] : memref<2x256x64xf32, #tpu.memory_space<vmem>>, vector<1x256x64xf32>
    %289 = vector.shape_cast %288 : vector<1x256x64xf32> to vector<256x64xf32>
    %cst_243 = arith.constant dense<0.000000e+00> : vector<2x64xf32>
    %290 = tpu.matmul %287, %289, %cst_243 {dimension_numbers = #tpu.dot_dimension_numbers<[1], [0], [0], [1], [0, 0, 1, 1], [], []>} : vector<2x256xf32>, vector<256x64xf32>, vector<2x64xf32> -> vector<2x64xf32>
    %291 = arith.addf %285, %290 : vector<2x64xf32>
    %c1_244 = arith.constant 1 : index
    %c0_245 = arith.constant 0 : index
    %c0_246 = arith.constant 0 : index
    %292 = vector.load %arg15[%c1_244, %c0_245, %c0_246] : memref<2x2x256xf32, #tpu.memory_space<vmem>>, vector<1x2x256xf32>
    %293 = vector.shape_cast %292 : vector<1x2x256xf32> to vector<2x256xf32>
    %c1_247 = arith.constant 1 : index
    %c0_248 = arith.constant 0 : index
    %c0_249 = arith.constant 0 : index
    %294 = vector.load %arg5[%c1_247, %c0_248, %c0_249] : memref<2x256x64xf32, #tpu.memory_space<vmem>>, vector<1x256x64xf32>
    %295 = vector.shape_cast %294 : vector<1x256x64xf32> to vector<256x64xf32>
    %cst_250 = arith.constant dense<0.000000e+00> : vector<2x64xf32>
    %296 = tpu.matmul %293, %295, %cst_250 {dimension_numbers = #tpu.dot_dimension_numbers<[1], [0], [0], [1], [0, 0, 1, 1], [], []>} : vector<2x256xf32>, vector<256x64xf32>, vector<2x64xf32> -> vector<2x64xf32>
    %297 = arith.addf %291, %296 : vector<2x64xf32>
    %c0_251 = arith.constant 0 : index
    %c0_252 = arith.constant 0 : index
    %298 = vector.load %arg6[%c0_251, %c0_252] : memref<1x64xf32, #tpu.memory_space<vmem>>, vector<1x64xf32>
    %299 = vector.broadcast %298 : vector<1x64xf32> to vector<2x64xf32>
    %300 = arith.addf %297, %299 : vector<2x64xf32>
    %c0_253 = arith.constant 0 : index
    %c0_254 = arith.constant 0 : index
    %301 = vector.load %arg7[%c0_253, %c0_254] : memref<1x64xf32, #tpu.memory_space<vmem>>, vector<1x64xf32>
    %302 = vector.broadcast %301 : vector<1x64xf32> to vector<2x64xf32>
    %303 = arith.mulf %300, %302 : vector<2x64xf32>
    %c0_255 = arith.constant 0 : index
    %c0_256 = arith.constant 0 : index
    %304 = vector.load %arg8[%c0_255, %c0_256] : memref<1x64xf32, #tpu.memory_space<vmem>>, vector<1x64xf32>
    %305 = vector.broadcast %304 : vector<1x64xf32> to vector<2x64xf32>
    %306 = arith.addf %303, %305 : vector<2x64xf32>
    %cst_257 = arith.constant 0.000000e+00 : f32
    %307 = vector.broadcast %cst_257 : f32 to vector<2x64xf32>
    %308 = arith.maximumf %306, %307 : vector<2x64xf32>
    %c0_258 = arith.constant 0 : index
    %c0_259 = arith.constant 0 : index
    %309 = vector.load %arg9[%c0_258, %c0_259] : memref<64x50xf32, #tpu.memory_space<vmem>>, vector<64x50xf32>
    %cst_260 = arith.constant dense<0.000000e+00> : vector<2x50xf32>
    %310 = tpu.matmul %308, %309, %cst_260 {dimension_numbers = #tpu.dot_dimension_numbers<[1], [0], [0], [1], [0, 0, 1, 1], [], []>} : vector<2x64xf32>, vector<64x50xf32>, vector<2x50xf32> -> vector<2x50xf32>
    %c0_261 = arith.constant 0 : index
    %c0_262 = arith.constant 0 : index
    %311 = vector.load %arg10[%c0_261, %c0_262] : memref<1x50xf32, #tpu.memory_space<vmem>>, vector<1x50xf32>
    %312 = vector.broadcast %311 : vector<1x50xf32> to vector<2x50xf32>
    %313 = arith.addf %310, %312 : vector<2x50xf32>
    %cst_263 = arith.constant dense<0xFF800000> : vector<2xf32>
    %314 = vector.multi_reduction <maximumf>, %313, %cst_263 [1] : vector<2x50xf32> to vector<2xf32>
    %315 = vector.shape_cast %314 : vector<2xf32> to vector<2x1xf32>
    %316 = vector.broadcast %315 : vector<2x1xf32> to vector<2x50xf32>
    %317 = arith.subf %313, %316 : vector<2x50xf32>
    %318 = math.exp %317 : vector<2x50xf32>
    %cst_264 = arith.constant dense<0.000000e+00> : vector<2xf32>
    %319 = vector.multi_reduction <add>, %318, %cst_264 [1] : vector<2x50xf32> to vector<2xf32>
    %320 = vector.shape_cast %319 : vector<2xf32> to vector<2x1xf32>
    %321 = math.log %320 : vector<2x1xf32>
    %322 = vector.broadcast %321 : vector<2x1xf32> to vector<2x50xf32>
    %323 = arith.subf %317, %322 : vector<2x50xf32>
    %c0_265 = arith.constant 0 : index
    %c0_266 = arith.constant 0 : index
    %324 = vector.load %arg11[%c0_265, %c0_266] : memref<2x50xf32, #tpu.memory_space<vmem>>, vector<2x50xf32>
    tpu.vector_store %arg11[%c0_265, %c0_266], %323 {strides = array<i32>} : memref<2x50xf32, #tpu.memory_space<vmem>>, vector<2x50xf32>,
    return
  }
}

</mosaic_0001>

<bundles_post_ra>
// kernel: cnn_forward.1
= control target key start
LH: loop header
LB: loop body
LE: loop exit
PB: predicated region body
PF: predicated region fallthrough
CT: control target
= control target key end

     0   :  { %16 = vsyncpa [#allocation7], 0  ;;  %s5461_s0 = inlined_call_operand.vmem [shape: f32[2,30,1], index: 0, kind: input, shape index: {}]   ;;  %s5462_s1 = inlined_call_operand.vmem [shape: f32[5,1,64], index: 1, kind: input, shape index: {}]   ;;  %s5463_s2 = inlined_call_operand.vmem [shape: f32[1,64], index: 2, kind: input, shape index: {}]   ;;  %s5464_s3 = inlined_call_operand.vmem [shape: f32[5,64,128], index: 3, kind: input, shape index: {}]   ;;  %s5465_s4 = inlined_call_operand.hbm [shape: f32[5,128,256], index: 4, kind: input, shape index: {}]   ;;  %s5466_s5 = inlined_call_operand.vmem [shape: f32[2,256,64], index: 5, kind: input, shape index: {}]   ;;  %s5467_s6 = inlined_call_operand.vmem [shape: f32[1,64], index: 6, kind: input, shape index: {}]   ;;  %s5468_s7 = inlined_call_operand.vmem [shape: f32[1,64], index: 7, kind: input, shape index: {}]   ;;  %s5469_s8 = inlined_call_operand.vmem [shape: f32[1,64], index: 8, kind: input, shape index: {}]   ;;  %s5470_s9 = inlined_call_operand.vmem [shape: f32[64,50], index: 9, kind: input, shape index: {}]   ;;  %s5471_s10 = inlined_call_operand.vmem [shape: f32[1,50], index: 10, kind: input, shape index: {}]   ;;  %s5472_s11 = inlined_call_operand.hbm [shape: f32[2,50], index: 11, kind: output, shape index: {}]  }
   0x1   :  { %17 = vsyncpa [#allocation8], 0  ;;  %s4601_s17 = smov [#allocation6]  }
   0x2   :  { %s31_s18 = sshll.u32 %s4601_s17, 4  ;;  %s32_s18 = int_to_ptr.vmem [resolvable:$true] %s31_s18 }
   0x3   :  { %s4565_s19 = scalar_lea.vmem %s32_s18, 20480  ;;  %p4570_p1 = scmp.lt.s32.totalorder %s32_s18, %s32_s18 }
   0x4   :  { %p4566_p0 = scmp.ne.s32.totalorder %s32_s18, %s4565_s19  ;;  %p4571_p2 = scmp.lt.s32.totalorder %s4565_s19, %s4565_s19 }
   0x6   :  { %p4572_p3 = por %p4571_p2, %p4570_p1 }
   0x8   :  { %p4573_p4 = pnand %p4572_p3, %p4566_p0 }
   0xa   :  { %4576 = shalt.err (!%p4573_p4)
}
   0xb   :  { %s4602_s20 = smov 256   ;;  %s4603_s21 = smov 16  }
   0xc   :  { %37 = dma.hbm_to_vmem [thread:$0]  %s5465_s4, 20480, %s32_s18, [#allocation7], %s4602_s20, %s4602_s20, %s4603_s21  }
   0xd   :  { %4597 = dma.done.wait [#allocation7], 20480  }
   0xe   :  { %4598 = vsyncadd [#allocation7], 4294946816  ;;  %vm74_vm0 = vcmask 7168   ;;  %v4604_v0 = vmov 0   ;;  %v4605_v1 = vmov 0.0   ;;  %vm97_vm1 = vcmask 5120  }
   0xf   :  { %4551 = vset.pattern.permute.xlu1 %v4604_v0  ;;  %4550 = vset.pattern.permute.xlu0 %v4604_v0  ;;  %77 = vst.msk [vmem:[#allocation2 + $0x10] sm:$0xff] %vm74_vm0, %v4605_v1  ;;  %78 = vst.msk [vmem:[#allocation2 + $0x18] sm:$0xff] %vm74_vm0, %v4605_v1  ;;  %v92_v2 = vld [vmem:[%s5461_s0 + $0x10] sm:$0xff]  ;;  %v93_v3 = vld [vmem:[%s5461_s0 + $0x18] sm:$0x3f]  ;;  %v53_v30 = vlaneseq  ;;  %vm298_vm4 = vcmask 228352  }
  0x10   :  { %75 = vst.msk [vmem:[#allocation2] sm:$0xff] %vm74_vm0, %v4605_v1  ;;  %76 = vst.msk [vmem:[#allocation2 + $0x8] sm:$0xff] %vm74_vm0, %v4605_v1  ;;  %v91_v4 = vld [vmem:[%s5461_s0 + $0x8] sm:$0xff]  ;;  %v90_v5 = vld [vmem:[%s5461_s0] sm:$0xff]  ;;  %vm305_vm7 = vcmask 1043456   ;;  %vm79_vm8 = vcmask 523264  }
  0x11   :  { %82 = vst [vmem:[#allocation4] sm:$0xff] %v4605_v1  ;;  %96 = vst.msk [vmem:[#allocation2 + $0x11] sm:$0xff] %vm74_vm0, %v92_v2  ;;  %v3939_v8 = vld [vmem:[%s5461_s0 + $0x38] sm:$0x3f]  ;;  %v3936_v11 = vld [vmem:[%s5461_s0 + $0x20] sm:$0xff]  ;;  %v4714_v31 = vshrl.u32 %v53_v30, 7 }
  0x12   :  { %98 = vst.msk [vmem:[#allocation2 + $0x19] sm:$0x3f] %vm97_vm1, %v93_v3  ;;  %v3938_v12 = vld [vmem:[%s5461_s0 + $0x30] sm:$0xff]  ;;  %v3937_v13 = vld [vmem:[%s5461_s0 + $0x28] sm:$0xff]  ;;  %v4719_v35 = vand.u32 127, %v53_v30  ;;  %vm472_vm9 = vcmask 521216  }
  0x13   :  { %95 = vst.msk [vmem:[#allocation2 + $0x9] sm:$0xff] %vm74_vm0, %v91_v4  ;;  %94 = vst.msk [vmem:[#allocation2 + $0x1] sm:$0xff] %vm74_vm0, %v90_v5  ;;  %v55_v32 = vadd.s32 8, %v4714_v31  ;;  %v58_v33 = vmul.u32 2, %v4714_v31  ;;  %vm4606_vm10 = vmmov 0   ;;  %vm939_vm11 = vcmask 97280  }
  0x14   :  { %81 = vst.msk [vmem:[#allocation3 + $0x8] sm:$0xff] %vm79_vm8, %v4605_v1  ;;  %80 = vst.msk [vmem:[#allocation3] sm:$0xff] %vm79_vm8, %v4605_v1  ;;  %vm1620_vm12 = vcmask 31744   ;;  %vm5089_vm13 = vcmp.lt.s32.totalorder %v53_v30, 256  ;;  %v4556_v30 = vld [vmem:[%s5463_s2] ss:$0 sm:$0xff] }
  0x15   :  { %v59_v34 = vmul.u32 2, %v55_v32  ;;  %v66_v36 = vadd.s32 1, %v58_v33  ;;  %vm60_vm2 = vcmp.eq.s32.totalorder %v4719_v35, %v58_v33  ;;  %vm3834_vm14 = vcmask 402432  }
  0x16   :  { %v4726_v40 = vsel %vm60_vm2, 1.0, %v4605_v1 }
  0x17   :  { %v4721_v37 = vadd.s32 1, %v59_v34  ;;  %vm68_vm3 = vcmp.eq.s32.totalorder %v4719_v35, %v66_v36  ;;  %4269 = vmatprep.mubr.msk.f32.mxu0 %vm298_vm4, %v4726_v40  ;;  %vm4736_vm5 = vcmp.eq.s32.totalorder %v4719_v35, %v59_v34 }
  0x18   :  { %v140_v10 = vld [vmem:[#allocation2 + $0x11] sm:$0xff]  ;;  %v4729_v41 = vsel %vm68_vm3, 1.0, %v4605_v1 }
  0x19   :  { %v102_v6 = vld [vmem:[#allocation2 + $0x18] sm:$0xf]  ;;  %v261_v23 = vld [vmem:[#allocation2 + $0x1c] sm:$0xf]  ;;  %4280 = vmatprep.mubr.msk.f32.mxu1 %vm298_vm4, %v4729_v41  ;;  %vm69_vm6 = vcmp.eq.s32.totalorder %v4719_v35, %v4721_v37 }
  0x1a   :  { %v101_v7 = vld [vmem:[#allocation2 + $0x10] sm:$0xff]  ;;  %121 = vperm.xlu0 %4550, %v102_v6   ;;  %v141_v9 = vld [vmem:[#allocation2 + $0x19] sm:$0xf]  ;;  %v100_v17 = vld [vmem:[#allocation2 + $0x8] sm:$0xff] }
  0x1b   :  { %116 = vperm.xlu1 %4551, %v101_v7   ;;  %v181_v14 = vld [vmem:[#allocation2 + $0x1a] sm:$0xf]  ;;  %v180_v15 = vld [vmem:[#allocation2 + $0x12] sm:$0xff]  ;;  %v139_v18 = vld [vmem:[#allocation2 + $0x9] sm:$0xff] }
  0x1c   :  { %v221_v16 = vld [vmem:[#allocation2 + $0x1b] sm:$0xf]  ;;  %v99_v19 = vld [vmem:[#allocation2] sm:$0xff]  ;;  %v179_v21 = vld [vmem:[#allocation2 + $0xa] sm:$0xff] }
  0x1d   :  { %v138_v20 = vld [vmem:[#allocation2 + $0x1] sm:$0xff]  ;;  %v220_v22 = vld [vmem:[#allocation2 + $0x13] sm:$0xff]  ;;  %v219_v25 = vld [vmem:[#allocation2 + $0xb] sm:$0xff] }
  0x1e   :  { %161 = vperm.xlu0 %4550, %v141_v9   ;;  %v178_v24 = vld [vmem:[#allocation2 + $0x2] sm:$0xff]  ;;  %v260_v26 = vld [vmem:[#allocation2 + $0x14] sm:$0xff]  ;;  %v259_v28 = vld [vmem:[#allocation2 + $0xc] sm:$0xff] }
  0x1f   :  { %156 = vperm.xlu1 %4551, %v140_v10   ;;  %v218_v27 = vld [vmem:[#allocation2 + $0x3] sm:$0xff]  ;;  %1819 = vst.msk [vmem:[#allocation2 + $0x19] sm:$0x3f] %vm97_vm1, %v3939_v8  ;;  %v4745_v6 = vld [vmem:[%s5462_s1 + $0x1] ss:$0 sm:$0xff] }
  0x20   :  { %v258_v29 = vld [vmem:[#allocation2 + $0x4] sm:$0xff]  ;;  %1818 = vst.msk [vmem:[#allocation2 + $0x11] sm:$0xff] %vm74_vm0, %v3938_v12  ;;  %v4750_v7 = vld [vmem:[%s5462_s1] ss:$0 sm:$0xff]  ;;  %v4755_v8 = vld [vmem:[%s5462_s1 + $0x2] ss:$0 sm:$0xff] }
  0x21   :  { %1816 = vst.msk [vmem:[#allocation2 + $0x1] sm:$0xff] %vm74_vm0, %v3936_v11  ;;  %1817 = vst.msk [vmem:[#allocation2 + $0x9] sm:$0xff] %vm74_vm0, %v3937_v13  ;;  %v4761_v12 = vld [vmem:[%s5462_s1 + $0x3] ss:$0 sm:$0xff] }
  0x22   :  { %201 = vperm.xlu0 %4550, %v181_v14  }
  0x23   :  { %111 = vperm.xlu1 %4551, %v100_v17  }
  0x26   :  { %151 = vperm.xlu0 %4550, %v139_v18   ;;  %v1862_v39 = vld [vmem:[#allocation2 + $0x19] sm:$0xf] }
  0x27   :  { %196 = vperm.xlu1 %4551, %v180_v15   ;;  %v1823_v38 = vld [vmem:[#allocation2 + $0x18] sm:$0xf]  ;;  %v1979_v54 = vld [vmem:[#allocation2 + $0x1c] sm:$0xf] }
  0x28   :  { %v1822_v43 = vld [vmem:[#allocation2 + $0x10] sm:$0xff]  ;;  %v1901_v45 = vld [vmem:[#allocation2 + $0x1a] sm:$0xf]  ;;  %v1821_v46 = vld [vmem:[#allocation2 + $0x8] sm:$0xff] }
  0x29   :  { %v1861_v44 = vld [vmem:[#allocation2 + $0x11] sm:$0xff]  ;;  %v1860_v47 = vld [vmem:[#allocation2 + $0x9] sm:$0xff]  ;;  %v1940_v49 = vld [vmem:[#allocation2 + $0x1b] sm:$0xf] }
  0x2a   :  { %241 = vperm.xlu0 %4550, %v221_v16   ;;  %v1900_v48 = vld [vmem:[#allocation2 + $0x12] sm:$0xff]  ;;  %v1820_v50 = vld [vmem:[#allocation2] sm:$0xff]  ;;  %v1899_v52 = vld [vmem:[#allocation2 + $0xa] sm:$0xff] }
  0x2b   :  { %106 = vperm.xlu1 %4551, %v99_v19   ;;  %v1859_v51 = vld [vmem:[#allocation2 + $0x1] sm:$0xff]  ;;  %v1939_v53 = vld [vmem:[#allocation2 + $0x13] sm:$0xff]  ;;  %v1938_v56 = vld [vmem:[#allocation2 + $0xb] sm:$0xff] }
  0x2c   :  { %v1898_v55 = vld [vmem:[#allocation2 + $0x2] sm:$0xff]  ;;  %v1978_v57 = vld [vmem:[#allocation2 + $0x14] sm:$0xff]  ;;  %v1977_v59 = vld [vmem:[#allocation2 + $0xc] sm:$0xff] }
  0x2d   :  { %v1937_v58 = vld [vmem:[#allocation2 + $0x3] sm:$0xff] }
  0x2e   :  { %146 = vperm.xlu0 %4550, %v138_v20   ;;  %v1976_v60 = vld [vmem:[#allocation2 + $0x4] sm:$0xff] }
  0x2f   :  { %191 = vperm.xlu1 %4551, %v179_v21   ;;  %v4769_v19 = vld [vmem:[%s5462_s1 + $0x4] ss:$0 sm:$0xff] }
  0x32   :  { %236 = vperm.xlu0 %4550, %v220_v22  }
  0x33   :  { %281 = vperm.xlu1 %4551, %v261_v23  }
  0x36   :  { %186 = vperm.xlu0 %4550, %v178_v24  }
  0x37   :  { %231 = vperm.xlu1 %4551, %v219_v25  }
  0x3a   :  { %276 = vperm.xlu0 %4550, %v260_v26  }
  0x3b   :  { %226 = vperm.xlu1 %4551, %v218_v27  }
  0x3e   :  { %271 = vperm.xlu0 %4550, %v259_v28  }
  0x3f   :  { %266 = vperm.xlu1 %4551, %v258_v29  }
  0x42   :  { %1842 = vperm.xlu0 %4550, %v1823_v38  }
  0x43   :  { %1881 = vperm.xlu1 %4551, %v1862_v39  }
  0x46   :  { %1837 = vperm.xlu0 %4550, %v1822_v43  }
  0x47   :  { %1876 = vperm.xlu1 %4551, %v1861_v44  }
  0x4a   :  { %1920 = vperm.xlu0 %4550, %v1901_v45  }
  0x4b   :  { %1832 = vperm.xlu1 %4551, %v1821_v46  }
  0x4e   :  { %1871 = vperm.xlu0 %4550, %v1860_v47  }
  0x4f   :  { %1915 = vperm.xlu1 %4551, %v1900_v48  }
  0x52   :  { %1959 = vperm.xlu0 %4550, %v1940_v49  }
  0x53   :  { %1827 = vperm.xlu1 %4551, %v1820_v50  }
  0x56   :  { %1866 = vperm.xlu0 %4550, %v1859_v51  }
  0x57   :  { %1910 = vperm.xlu1 %4551, %v1899_v52  }
  0x5a   :  { %1954 = vperm.xlu0 %4550, %v1939_v53  }
  0x5b   :  { %1998 = vperm.xlu1 %4551, %v1979_v54  }
  0x5e   :  { %1905 = vperm.xlu0 %4550, %v1898_v55  }
  0x5f   :  { %1949 = vperm.xlu1 %4551, %v1938_v56  }
  0x62   :  { %1993 = vperm.xlu0 %4550, %v1978_v57  }
  0x63   :  { %1944 = vperm.xlu1 %4551, %v1937_v58  }
  0x66   :  { %1988 = vperm.xlu0 %4550, %v1977_v59  }
  0x67   :  { %1983 = vperm.xlu1 %4551, %v1976_v60  }
  0x95   :  { %v122_v61 = vpop.permute.xlu0 %121 }
  0x96   :  { %v117_v62 = vpop.permute.xlu1 %116  ;;  %v133_v13 = vmul.f32 %v4750_v7, %v122_v61 }
  0x97   :  { %v132_v26 = vmul.f32 %v4750_v7, %v117_v62 }
  0x99   :  { %v162_v63 = vpop.permute.xlu0 %161 }
  0x9a   :  { %v157_v0 = vpop.permute.xlu1 %156  ;;  %v173_v11 = vmul.f32 %v4745_v6, %v162_v63 }
  0x9b   :  { %v172_v23 = vmul.f32 %v4745_v6, %v157_v0 }
  0x9c   :  { %v177_v17 = vadd.f32 %v173_v11, %v133_v13  ;;  %v4802_v11 = vsel %vm69_vm6, 1.0, %v4605_v1 }
  0x9d   :  { %v202_v2 = vpop.permute.xlu0 %201  ;;  %v176_v33 = vadd.f32 %v172_v23, %v132_v26 }
  0x9e   :  { %v112_v3 = vpop.permute.xlu1 %111  ;;  %v213_v14 = vmul.f32 %v4755_v8, %v202_v2 }
  0x9f   :  { %v131_v39 = vmul.f32 %v4750_v7, %v112_v3 }
  0xa0   :  { %v217_v20 = vadd.f32 %v213_v14, %v177_v17 }
  0xa1   :  { %v152_v4 = vpop.permute.xlu0 %151 }
  0xa2   :  { %v197_v5 = vpop.permute.xlu1 %196  ;;  %v171_v34 = vmul.f32 %v4745_v6, %v152_v4 }
  0xa3   :  { %v212_v27 = vmul.f32 %v4755_v8, %v197_v5 }
  0xa4   :  { %v175_v49 = vadd.f32 %v171_v34, %v131_v39 }
  0xa5   :  { %v242_v9 = vpop.permute.xlu0 %241  ;;  %v216_v43 = vadd.f32 %v212_v27, %v176_v33 }
  0xa6   :  { %v107_v10 = vpop.permute.xlu1 %106  ;;  %v253_v18 = vmul.f32 %v4761_v12, %v242_v9 }
  0xa7   :  { %v130_v45 = vmul.f32 %v4750_v7, %v107_v10  ;;  %v4796_v10 = vsel %vm4736_vm5, 1.0, %v4605_v1 }
  0xa8   :  { %v257_v24 = vadd.f32 %v253_v18, %v217_v20 }
  0xa9   :  { %v147_v15 = vpop.permute.xlu0 %146 }
  0xaa   :  { %v192_v16 = vpop.permute.xlu1 %191  ;;  %v170_v38 = vmul.f32 %v4745_v6, %v147_v15 }
  0xab   :  { %v211_v44 = vmul.f32 %v4755_v8, %v192_v16 }
  0xac   :  { %v174_v53 = vadd.f32 %v170_v38, %v130_v45 }
  0xad   :  { %v237_v21 = vpop.permute.xlu0 %236  ;;  %v215_v54 = vadd.f32 %v211_v44, %v175_v49 }
  0xae   :  { %v282_v22 = vpop.permute.xlu1 %281  ;;  %v252_v36 = vmul.f32 %v4761_v12, %v237_v21 }
  0xaf   :  { %v293_v25 = vmul.f32 %v4769_v19, %v282_v22 }
  0xb0   :  { %v256_v50 = vadd.f32 %v252_v36, %v216_v43 }
  0xb1   :  { %v297_v28 = vadd.f32 %v293_v25, %v257_v24  ;;  %v187_v29 = vpop.permute.xlu0 %186 }
  0xb2   :  { %v232_v32 = vpop.permute.xlu1 %231  ;;  %v210_v46 = vmul.f32 %v4755_v8, %v187_v29 }
  0xb3   :  { %4261 = vmatprep.subr.msk.mxu0 %vm305_vm7, %v297_v28  ;;  %4272 = vmatprep.subr.msk.mxu1 %vm305_vm7, %v297_v28  ;;  %v251_v51 = vmul.f32 %v4761_v12, %v232_v32 }
  0xb4   :  { %4262 = vmatpush3.msk.msra.mxu0 %vm305_vm7, %v297_v28  ;;  %4273 = vmatpush3.msk.msra.mxu1 %vm305_vm7, %v297_v28  ;;  %v214_v57 = vadd.f32 %v210_v46, %v174_v53 }
  0xb5   :  { %v277_v47 = vpop.permute.xlu0 %276  ;;  %v255_v60 = vadd.f32 %v251_v51, %v215_v54 }
  0xb6   :  { %v227_v48 = vpop.permute.xlu1 %226  ;;  %v292_v52 = vmul.f32 %v4769_v19, %v277_v47 }
  0xb7   :  { %v250_v56 = vmul.f32 %v4761_v12, %v227_v48 }
  0xb8   :  { %v296_v55 = vadd.f32 %v292_v52, %v256_v50 }
  0xb9   :  { %v272_v58 = vpop.permute.xlu0 %271  ;;  %v254_v63 = vadd.f32 %v250_v56, %v214_v57 }
  0xba   :  { %v267_v59 = vpop.permute.xlu1 %266  ;;  %v291_v61 = vmul.f32 %v4769_v19, %v272_v58  ;;  %4263 = vmatprep.subr.mxu0 %v296_v55  ;;  %4274 = vmatprep.subr.mxu1 %v296_v55 }
  0xbb   :  { %v290_v62 = vmul.f32 %v4769_v19, %v267_v59  ;;  %4264 = vmatpush3.msra.mxu0 %v296_v55  ;;  %4275 = vmatpush3.msra.mxu1 %v296_v55 }
  0xbc   :  { %v295_v0 = vadd.f32 %v291_v61, %v255_v60 }
  0xbd   :  { %v1843_v2 = vpop.permute.xlu0 %1842  ;;  %v294_v4 = vadd.f32 %v290_v62, %v254_v63 }
  0xbe   :  { %v1882_v3 = vpop.permute.xlu1 %1881  ;;  %v1854_v5 = vmul.f32 %v4750_v7, %v1843_v2  ;;  %4265 = vmatprep.subr.mxu0 %v295_v0  ;;  %4276 = vmatprep.subr.mxu1 %v295_v0 }
  0xbf   :  { %v1893_v9 = vmul.f32 %v4745_v6, %v1882_v3  ;;  %4266 = vmatpush3.msra.mxu0 %v295_v0  ;;  %4277 = vmatpush3.msra.mxu1 %v295_v0 }
  0xc0   :  { %4267 = vmatprep.subr.mxu0 %v294_v4  ;;  %4278 = vmatprep.subr.mxu1 %v294_v4 }
  0xc1   :  { %v1897_v13 = vadd.f32 %v1893_v9, %v1854_v5  ;;  %v1838_v14 = vpop.permute.xlu0 %1837  ;;  %4268 = vmatpush3.msra.mxu0 %v294_v4  ;;  %4279 = vmatpush3.msra.mxu1 %v294_v4  ;;  %v3891_v4 = vld [vmem:[%s5464_s3 + $0x78] sm:$0xff]  ;;  %v482_v5 = vld [vmem:[%s5464_s3 + $0x30] sm:$0xff]  ;;  %v3889_v9 = vld [vmem:[%s5464_s3 + $0x68] sm:$0xff] }
  0xc2   :  { %v1877_v15 = vpop.permute.xlu1 %1876  ;;  %v1853_v16 = vmul.f32 %v4750_v7, %v1838_v14  ;;  %4270 = vmatmul.mubr.msk.f32.vlgmr.msra.gmra.mxu0 %vm298_vm4, %v4796_v10  ;;  %4281 = vmatmul.mubr.msk.f32.vlgmr.msra.gmra.mxu1 %vm298_vm4, %v4802_v11  ;;  %v3888_v14 = vld [vmem:[%s5464_s3 + $0x60] sm:$0xff] }
  0xc3   :  { %v1892_v17 = vmul.f32 %v4745_v6, %v1877_v15  ;;  %4283 = vmatprep.subr.mxu0 %v3891_v4  ;;  %v480_v15 = vld [vmem:[%s5464_s3 + $0x20] sm:$0xff] }
  0xc4   :  { %4284 = vmatpush3.msra.mxu0 %v3891_v4  ;;  %v3922_v4 = vld [vmem:[%s5464_s3 + $0x130] sm:$0xff] }
  0xc5   :  { %v1896_v35 = vadd.f32 %v1892_v17, %v1853_v16  ;;  %v1921_v37 = vpop.permute.xlu0 %1920  ;;  %v3887_v16 = vld [vmem:[%s5464_s3 + $0x58] sm:$0xff] }
  0xc6   :  { %v1833_v42 = vpop.permute.xlu1 %1832  ;;  %v1932_v18 = vmul.f32 %v4755_v8, %v1921_v37  ;;  %v479_v17 = vld [vmem:[%s5464_s3 + $0x18] sm:$0xff]  ;;  %v478_v37 = vld [vmem:[%s5464_s3 + $0x10] sm:$0xff] }
  0xc7   :  { %v1852_v23 = vmul.f32 %v4750_v7, %v1833_v42  ;;  %v3885_v42 = vld [vmem:[%s5464_s3 + $0x48] sm:$0xff] }
  0xc8   :  { %v1936_v20 = vadd.f32 %v1932_v18, %v1897_v13  ;;  %v481_v13 = vld [vmem:[%s5464_s3 + $0x28] sm:$0xff] }
  0xc9   :  { %v1872_v21 = vpop.permute.xlu0 %1871  ;;  %v477_v18 = vld [vmem:[%s5464_s3 + $0x8] sm:$0xff] }
  0xca   :  { %v1916_v22 = vpop.permute.xlu1 %1915  ;;  %v1891_v24 = vmul.f32 %v4745_v6, %v1872_v21  ;;  %v476_v21 = vld [vmem:[%s5464_s3] sm:$0xff] }
  0xcb   :  { %v1931_v25 = vmul.f32 %v4755_v8, %v1916_v22  ;;  %v3903_v22 = vld [vmem:[%s5464_s3 + $0xb8] sm:$0xff] }
  0xcc   :  { %v1895_v26 = vadd.f32 %v1891_v24, %v1852_v23  ;;  %v3913_v23 = vld [vmem:[%s5464_s3 + $0xf8] sm:$0xff] }
  0xcd   :  { %v1935_v27 = vadd.f32 %v1931_v25, %v1896_v35  ;;  %v1960_v28 = vpop.permute.xlu0 %1959  ;;  %v3886_v35 = vld [vmem:[%s5464_s3 + $0x50] sm:$0xff]  ;;  %v3868_v25 = vld [vmem:[%s5463_s2] ss:$0 sm:$0xff] }
  0xce   :  { %v1828_v29 = vpop.permute.xlu1 %1827  ;;  %v1971_v32 = vmul.f32 %v4761_v12, %v1960_v28 }
  0xcf   :  { %v1851_v38 = vmul.f32 %v4750_v7, %v1828_v29 }
  0xd0   :  { %v1975_v33 = vadd.f32 %v1971_v32, %v1936_v20  ;;  %v3884_v20 = vld [vmem:[%s5464_s3 + $0x40] sm:$0xff] }
  0xd1   :  { %v1867_v34 = vpop.permute.xlu0 %1866 }
  0xd2   :  { %v1911_v36 = vpop.permute.xlu1 %1910  ;;  %v1890_v39 = vmul.f32 %v4745_v6, %v1867_v34 }
  0xd3   :  { %v1930_v43 = vmul.f32 %v4755_v8, %v1911_v36 }
  0xd4   :  { %v1894_v44 = vadd.f32 %v1890_v39, %v1851_v38 }
  0xd5   :  { %v1934_v45 = vadd.f32 %v1930_v43, %v1895_v26  ;;  %v1955_v46 = vpop.permute.xlu0 %1954 }
  0xd6   :  { %v1999_v47 = vpop.permute.xlu1 %1998  ;;  %v1970_v48 = vmul.f32 %v4761_v12, %v1955_v46  ;;  %v3902_v46 = vld [vmem:[%s5464_s3 + $0xb0] sm:$0xff] }
  0xd7   :  { %v2010_v49 = vmul.f32 %v4769_v19, %v1999_v47  ;;  %v3912_v47 = vld [vmem:[%s5464_s3 + $0xf0] sm:$0xff] }
  0xd8   :  { %v1974_v50 = vadd.f32 %v1970_v48, %v1935_v27 }
  0xd9   :  { %v4820_v51 = vadd.f32 %v2010_v49, %v1975_v33  ;;  %v1906_v52 = vpop.permute.xlu0 %1905 }
  0xda   :  { %v1950_v53 = vpop.permute.xlu1 %1949  ;;  %v1929_v54 = vmul.f32 %v4755_v8, %v1906_v52  ;;  %v3911_v52 = vld [vmem:[%s5464_s3 + $0xe8] sm:$0xff] }
  0xdb   :  { %v1969_v7 = vmul.f32 %v4761_v12, %v1950_v53  ;;  %v3900_v53 = vld [vmem:[%s5464_s3 + $0xa0] sm:$0xff] }
  0xdc   :  { %v1933_v6 = vadd.f32 %v1929_v54, %v1894_v44  ;;  %v3910_v54 = vld [vmem:[%s5464_s3 + $0xe0] sm:$0xff] }
  0xdd   :  { %v1973_v55 = vadd.f32 %v1969_v7, %v1934_v45  ;;  %v1994_v56 = vpop.permute.xlu0 %1993  ;;  %v3899_v7 = vld [vmem:[%s5464_s3 + $0x98] sm:$0xff] }
  0xde   :  { %v1945_v57 = vpop.permute.xlu1 %1944  ;;  %v2009_v58 = vmul.f32 %v4769_v19, %v1994_v56  ;;  %v3908_v56 = vld [vmem:[%s5464_s3 + $0xd0] sm:$0xff] }
  0xdf   :  { %v1968_v59 = vmul.f32 %v4761_v12, %v1945_v57  ;;  %v483_v12 = vld [vmem:[%s5464_s3 + $0x38] sm:$0xff]  ;;  %v3897_v57 = vld [vmem:[%s5464_s3 + $0x88] sm:$0xff] }
  0xe0   :  { %v4826_v60 = vadd.f32 %v2009_v58, %v1974_v50  ;;  %4302 = vmatprep.subr.mxu1 %v483_v12  ;;  %v3901_v50 = vld [vmem:[%s5464_s3 + $0xa8] sm:$0xff] }
  0xe1   :  { %v1972_v61 = vadd.f32 %v1968_v59, %v1933_v6  ;;  %v1989_v62 = vpop.permute.xlu0 %1988  ;;  %4303 = vmatpush3.msra.mxu1 %v483_v12  ;;  %v3909_v6 = vld [vmem:[%s5464_s3 + $0xd8] sm:$0xff]  ;;  %v3907_v58 = vld [vmem:[%s5464_s3 + $0xc8] sm:$0xff]  ;;  %v3896_v59 = vld [vmem:[%s5464_s3 + $0x80] sm:$0xff] }
  0xe2   :  { %v1984_v63 = vpop.permute.xlu1 %1983  ;;  %v2008_v0 = vmul.f32 %v4769_v19, %v1989_v62  ;;  %4304 = vmatprep.subr.mxu1 %v482_v5  ;;  %v3923_v62 = vld [vmem:[%s5464_s3 + $0x138] sm:$0xff]  ;;  %v3921_v12 = vld [vmem:[%s5464_s3 + $0x128] sm:$0xff] }
  0xe3   :  { %v2007_v2 = vmul.f32 %v4769_v19, %v1984_v63  ;;  %v3890_v19 = vld [vmem:[%s5464_s3 + $0x70] sm:$0xff]  ;;  %4305 = vmatpush3.msra.mxu1 %v482_v5  ;;  %v3919_v5 = vld [vmem:[%s5464_s3 + $0x118] sm:$0xff] }
  0xe4   :  { %v4830_v8 = vadd.f32 %v2008_v0, %v1973_v55  ;;  %4285 = vmatprep.subr.mxu0 %v3890_v19  ;;  %4306 = vmatprep.subr.mxu1 %v481_v13  ;;  %v3898_v55 = vld [vmem:[%s5464_s3 + $0x90] sm:$0xff] }
  0xe5   :  { %v4832_v3 = vadd.f32 %v2007_v2, %v1972_v61  ;;  %4286 = vmatpush3.msra.mxu0 %v3890_v19  ;;  %4307 = vmatpush3.msra.mxu1 %v481_v13  ;;  %v3906_v61 = vld [vmem:[%s5464_s3 + $0xc0] sm:$0xff]  ;;  %v3917_v13 = vld [vmem:[%s5464_s3 + $0x108] sm:$0xff] }
  0xe6   :  { %4287 = vmatprep.subr.mxu0 %v3889_v9  ;;  %4308 = vmatprep.subr.mxu1 %v480_v15  ;;  %v3920_v19 = vld [vmem:[%s5464_s3 + $0x120] sm:$0xff] }
  0xe7   :  { %4288 = vmatpush3.msra.mxu0 %v3889_v9  ;;  %4309 = vmatpush3.msra.mxu1 %v480_v15  ;;  %v3918_v9 = vld [vmem:[%s5464_s3 + $0x110] sm:$0xff] }
  0xe8   :  { %4289 = vmatprep.subr.mxu0 %v3888_v14  ;;  %4310 = vmatprep.subr.mxu1 %v479_v17 }
  0xe9   :  { %4290 = vmatpush3.msra.mxu0 %v3888_v14  ;;  %4311 = vmatpush3.msra.mxu1 %v479_v17  ;;  %v3916_v14 = vld [vmem:[%s5464_s3 + $0x100] sm:$0xff]  ;;  %v1121_v17 = vld [vmem:[#allocation6 + $0xf0] sm:$0xff] }
  0xea   :  { %4291 = vmatprep.subr.mxu0 %v3887_v16  ;;  %4312 = vmatprep.subr.mxu1 %v478_v37 }
  0xeb   :  { %4292 = vmatpush3.msra.mxu0 %v3887_v16  ;;  %4313 = vmatpush3.msra.mxu1 %v478_v37  ;;  %v1122_v16 = vld [vmem:[#allocation6 + $0xf8] sm:$0xff]  ;;  %v1119_v37 = vld [vmem:[#allocation6 + $0xe0] sm:$0xff] }
  0xec   :  { %4293 = vmatprep.subr.mxu0 %v3886_v35  ;;  %4314 = vmatprep.subr.mxu1 %v477_v18 }
  0xed   :  { %4294 = vmatpush3.msra.mxu0 %v3886_v35  ;;  %4315 = vmatpush3.msra.mxu1 %v477_v18  ;;  %v1120_v35 = vld [vmem:[#allocation6 + $0xe8] sm:$0xff]  ;;  %v1117_v18 = vld [vmem:[#allocation6 + $0xd0] sm:$0xff] }
  0xee   :  { %4295 = vmatprep.subr.mxu0 %v3885_v42  ;;  %4316 = vmatprep.subr.mxu1 %v476_v21 }
  0xef   :  { %4296 = vmatpush3.msra.mxu0 %v3885_v42  ;;  %4317 = vmatpush3.msra.mxu1 %v476_v21  ;;  %v1118_v42 = vld [vmem:[#allocation6 + $0xd8] sm:$0xff]  ;;  %v1115_v21 = vld [vmem:[#allocation6 + $0xc0] sm:$0xff] }
  0xf0   :  { %4297 = vmatprep.subr.mxu0 %v3884_v20  ;;  %4340 = vmatprep.subr.mxu1 %v3913_v23 }
  0xf1   :  { %4298 = vmatpush3.msra.mxu0 %v3884_v20  ;;  %v1116_v20 = vld [vmem:[#allocation6 + $0xc8] sm:$0xff] }
  0xf2   :  { %4321 = vmatprep.subr.mxu0 %v3903_v22 }
 0x182   :  { %v4271_v24 = vpop.f32.mrf.mxu0  ;;  %v4282_v26 = vpop.f32.mrf.mxu1 }
 0x183   :  { %v466_v27 = vmax.f32 %v4271_v24, %v4282_v26  ;;  %v1112_v24 = vld [vmem:[#allocation6 + $0xa8] sm:$0xff]  ;;  %v1110_v26 = vld [vmem:[#allocation6 + $0x98] sm:$0xff] }
 0x184   :  { %v375_v28 = vpop.f32.mrf.mxu0  ;;  %v456_v29 = vpop.f32.mrf.mxu1 }
 0x185   :  { %v468_v32 = vadd.f32 %v3868_v25, %v466_v27  ;;  %v465_v33 = vmax.f32 %v375_v28, %v456_v29  ;;  %v1109_v27 = vld [vmem:[#allocation6 + $0x90] sm:$0xff]  ;;  %v1108_v28 = vld [vmem:[#allocation6 + $0x88] sm:$0xff]  ;;  %v1107_v29 = vld [vmem:[#allocation6 + $0x80] sm:$0xff] }
 0x187   :  { %v470_v34 = vmax.f32 %v468_v32, 0.0  ;;  %v467_v36 = vadd.f32 %v3868_v25, %v465_v33  ;;  %v1111_v25 = vld [vmem:[#allocation6 + $0xa0] sm:$0xff] }
 0x189   :  { %473 = vst.msk [vmem:[#allocation3 + $0x9] sm:$0x3f] %vm472_vm9, %v470_v34  ;;  %v469_v38 = vmax.f32 %v467_v36, 0.0 }
 0x18b   :  { %471 = vst.msk [vmem:[#allocation3 + $0x1] sm:$0xff] %vm79_vm8, %v469_v38 }
 0x190   :  { %v485_v45 = vld [vmem:[#allocation3 + $0x9] sm:$0xf] }
 0x191   :  { %v658_v63 = vld [vmem:[#allocation3 + $0xa] sm:$0xf] }
 0x192   :  { %v484_v39 = vld [vmem:[#allocation3 + $0x1] sm:$0xff]  ;;  %v752_v0 = vld [vmem:[#allocation3 + $0xb] sm:$0xf] }
 0x193   :  { %v474_v43 = vld [vmem:[#allocation3] sm:$0xff]  ;;  %v475_v44 = vld [vmem:[#allocation3 + $0x8] sm:$0xf]  ;;  %4299 = vmatprep.mubr.msk.f32.mxu0 %vm79_vm8, %v484_v39  ;;  %v846_v15 = vld [vmem:[#allocation3 + $0xc] sm:$0xf] }
 0x194   :  { %4318 = vmatprep.mubr.msk.f32.mxu1 %vm79_vm8, %v474_v43  ;;  %4300 = vmatmul.mubr.msk.f32.vlgmr.msra.gmra.mxu0 %vm79_vm8, %v485_v45  ;;  %v657_v48 = vld [vmem:[#allocation3 + $0x2] sm:$0xff] }
 0x195   :  { %4319 = vmatmul.mubr.msk.f32.vlgmr.msra.gmra.mxu1 %vm79_vm8, %v475_v44  ;;  %4322 = vmatpush3.msra.mxu0 %v3903_v22  ;;  %v751_v49 = vld [vmem:[#allocation3 + $0x3] sm:$0xff]  ;;  %v1114_v22 = vld [vmem:[#allocation6 + $0xb8] sm:$0xff] }
 0x196   :  { %4341 = vmatpush3.msra.mxu1 %v3913_v23  ;;  %4323 = vmatprep.subr.mxu0 %v3902_v46  ;;  %v845_v2 = vld [vmem:[#allocation3 + $0x4] sm:$0xff]  ;;  %v1113_v23 = vld [vmem:[#allocation6 + $0xb0] sm:$0xff] }
 0x197   :  { %4337 = vmatprep.mubr.msk.f32.mxu0 %vm79_vm8, %v657_v48  ;;  %4342 = vmatprep.subr.mxu1 %v3912_v47 }
 0x198   :  { %4356 = vmatprep.mubr.msk.f32.mxu1 %vm79_vm8, %v751_v49  ;;  %4324 = vmatpush3.msra.mxu0 %v3902_v46 }
 0x199   :  { %4343 = vmatpush3.msra.mxu1 %v3912_v47  ;;  %4325 = vmatprep.subr.mxu0 %v3901_v50 }
 0x19a   :  { %4344 = vmatprep.subr.mxu1 %v3911_v52  ;;  %4326 = vmatpush3.msra.mxu0 %v3901_v50 }
 0x19b   :  { %4345 = vmatpush3.msra.mxu1 %v3911_v52  ;;  %4327 = vmatprep.subr.mxu0 %v3900_v53 }
 0x19c   :  { %4346 = vmatprep.subr.mxu1 %v3910_v54  ;;  %4328 = vmatpush3.msra.mxu0 %v3900_v53 }
 0x19d   :  { %4347 = vmatpush3.msra.mxu1 %v3910_v54  ;;  %4329 = vmatprep.subr.mxu0 %v3899_v7 }
 0x19e   :  { %4348 = vmatprep.subr.mxu1 %v3909_v6  ;;  %4330 = vmatpush3.msra.mxu0 %v3899_v7 }
 0x19f   :  { %4349 = vmatpush3.msra.mxu1 %v3909_v6  ;;  %4331 = vmatprep.subr.mxu0 %v3898_v55  ;;  %v1156_v6 = vld [vmem:[#allocation6 + $0x1f8] sm:$0xff] }
 0x1a0   :  { %4350 = vmatprep.subr.mxu1 %v3908_v56  ;;  %4332 = vmatpush3.msra.mxu0 %v3898_v55  ;;  %v1155_v55 = vld [vmem:[#allocation6 + $0x1f0] sm:$0xff] }
 0x1a1   :  { %4351 = vmatpush3.msra.mxu1 %v3908_v56  ;;  %4333 = vmatprep.subr.mxu0 %v3897_v57  ;;  %v1154_v56 = vld [vmem:[#allocation6 + $0x1e8] sm:$0xff] }
 0x1a2   :  { %4352 = vmatprep.subr.mxu1 %v3907_v58  ;;  %4334 = vmatpush3.msra.mxu0 %v3897_v57  ;;  %v1153_v57 = vld [vmem:[#allocation6 + $0x1e0] sm:$0xff] }
 0x1a3   :  { %4353 = vmatpush3.msra.mxu1 %v3907_v58  ;;  %4335 = vmatprep.subr.mxu0 %v3896_v59  ;;  %v1152_v58 = vld [vmem:[#allocation6 + $0x1d8] sm:$0xff] }
 0x1a4   :  { %4354 = vmatprep.subr.mxu1 %v3906_v61  ;;  %4336 = vmatpush3.msra.mxu0 %v3896_v59  ;;  %v1151_v59 = vld [vmem:[#allocation6 + $0x1d0] sm:$0xff] }
 0x1a5   :  { %4355 = vmatpush3.msra.mxu1 %v3906_v61  ;;  %4338 = vmatmul.mubr.msk.f32.vlgmr.msra.gmra.mxu0 %vm79_vm8, %v658_v63  ;;  %v1150_v61 = vld [vmem:[#allocation6 + $0x1c8] sm:$0xff]  ;;  %v1148_v63 = vld [vmem:[#allocation6 + $0x1b8] sm:$0xff] }
 0x1a6   :  { %4357 = vmatmul.mubr.msk.f32.vlgmr.msra.gmra.mxu1 %vm79_vm8, %v752_v0  ;;  %4359 = vmatprep.subr.mxu0 %v3923_v62  ;;  %v1147_v0 = vld [vmem:[#allocation6 + $0x1b0] sm:$0xff] }
 0x1a7   :  { %4375 = vmatprep.mubr.msk.f32.mxu0 %vm79_vm8, %v845_v2  ;;  %4360 = vmatpush3.msra.mxu0 %v3923_v62  ;;  %v1149_v62 = vld [vmem:[#allocation6 + $0x1c0] sm:$0xff]  ;;  %v1146_v2 = vld [vmem:[#allocation6 + $0x1a8] sm:$0xff] }
 0x1a8   :  { %4378 = vmatprep.subr.mxu1 %v4605_v1  ;;  %4361 = vmatprep.subr.mxu0 %v3922_v4 }
 0x1a9   :  { %4362 = vmatpush3.msra.mxu0 %v3922_v4  ;;  %4382 = vmatprep.mubr.msk.f32.mxu1 %vm4606_vm10, %v4605_v1  ;;  %v1145_v4 = vld [vmem:[#allocation6 + $0x1a0] sm:$0xff] }
 0x1aa   :  { %4363 = vmatprep.subr.mxu0 %v3921_v12 }
 0x1ab   :  { %4364 = vmatpush3.msra.mxu0 %v3921_v12  ;;  %v1144_v12 = vld [vmem:[#allocation6 + $0x198] sm:$0xff] }
 0x1ac   :  { %4365 = vmatprep.subr.mxu0 %v3920_v19 }
 0x1ad   :  { %4366 = vmatpush3.msra.mxu0 %v3920_v19  ;;  %v1143_v19 = vld [vmem:[#allocation6 + $0x190] sm:$0xff] }
 0x1ae   :  { %4367 = vmatprep.subr.mxu0 %v3919_v5 }
 0x1af   :  { %4368 = vmatpush3.msra.mxu0 %v3919_v5  ;;  %v1142_v5 = vld [vmem:[#allocation6 + $0x188] sm:$0xff] }
 0x1b0   :  { %4369 = vmatprep.subr.mxu0 %v3918_v9 }
 0x1b1   :  { %4370 = vmatpush3.msra.mxu0 %v3918_v9  ;;  %v1141_v9 = vld [vmem:[#allocation6 + $0x180] sm:$0xff] }
 0x1b2   :  { %4371 = vmatprep.subr.mxu0 %v3917_v13 }
 0x1b3   :  { %4372 = vmatpush3.msra.mxu0 %v3917_v13  ;;  %v1140_v13 = vld [vmem:[#allocation6 + $0x178] sm:$0xff] }
 0x1b4   :  { %4373 = vmatprep.subr.mxu0 %v3916_v14 }
 0x1b5   :  { %4374 = vmatpush3.msra.mxu0 %v3916_v14  ;;  %v1106_v14 = vld [vmem:[#allocation6 + $0x78] sm:$0xff] }
 0x1b6   :  { %4376 = vmatmul.mubr.msk.f32.vlgmr.msra.gmra.mxu0 %vm79_vm8, %v846_v15  ;;  %1228 = vmatprep.subr.mxu0 %v1122_v16  ;;  %v1139_v15 = vld [vmem:[#allocation6 + $0x170] sm:$0xff] }
 0x1b7   :  { %1292 = vmatprep.mubr.f32.mxu0 %v4605_v1  ;;  %1229 = vmatpush1.msra.mxu0 %v1121_v17  ;;  %v1105_v16 = vld [vmem:[#allocation6 + $0x70] sm:$0xff]  ;;  %v1138_v17 = vld [vmem:[#allocation6 + $0x168] sm:$0xff] }
 0x1b8   :  { %1230 = vmatprep.subr.mxu0 %v1120_v35  ;;  %v1104_v35 = vld [vmem:[#allocation6 + $0x68] sm:$0xff] }
 0x1b9   :  { %1231 = vmatpush1.msra.mxu0 %v1119_v37  ;;  %v1137_v37 = vld [vmem:[#allocation6 + $0x160] sm:$0xff] }
 0x1ba   :  { %1232 = vmatprep.subr.mxu0 %v1118_v42  ;;  %v1103_v42 = vld [vmem:[#allocation6 + $0x60] sm:$0xff] }
 0x1bb   :  { %1233 = vmatpush1.msra.mxu0 %v1117_v18  ;;  %v1136_v18 = vld [vmem:[#allocation6 + $0x158] sm:$0xff] }
 0x1bc   :  { %1234 = vmatprep.subr.mxu0 %v1116_v20  ;;  %v1102_v20 = vld [vmem:[#allocation6 + $0x58] sm:$0xff] }
 0x1bd   :  { %1235 = vmatpush1.msra.mxu0 %v1115_v21  ;;  %v1135_v21 = vld [vmem:[#allocation6 + $0x150] sm:$0xff] }
 0x1be   :  { %1236 = vmatprep.subr.mxu0 %v1114_v22  ;;  %v1101_v22 = vld [vmem:[#allocation6 + $0x50] sm:$0xff] }
 0x1bf   :  { %1237 = vmatpush1.msra.mxu0 %v1113_v23  ;;  %v1134_v23 = vld [vmem:[#allocation6 + $0x148] sm:$0xff] }
 0x1c0   :  { %1238 = vmatprep.subr.mxu0 %v1112_v24  ;;  %v1100_v24 = vld [vmem:[#allocation6 + $0x48] sm:$0xff] }
 0x1c1   :  { %1239 = vmatpush1.msra.mxu0 %v1111_v25  ;;  %v1133_v25 = vld [vmem:[#allocation6 + $0x140] sm:$0xff] }
 0x1c2   :  { %1240 = vmatprep.subr.mxu0 %v1110_v26  ;;  %v1099_v26 = vld [vmem:[#allocation6 + $0x40] sm:$0xff] }
 0x1c3   :  { %1241 = vmatpush1.msra.mxu0 %v1109_v27  ;;  %v1132_v27 = vld [vmem:[#allocation6 + $0x138] sm:$0xff] }
 0x1c4   :  { %1242 = vmatprep.subr.mxu0 %v1108_v28  ;;  %v1098_v28 = vld [vmem:[#allocation6 + $0x38] sm:$0xff] }
 0x1c5   :  { %1243 = vmatpush1.msra.mxu0 %v1107_v29  ;;  %v1131_v29 = vld [vmem:[#allocation6 + $0x130] sm:$0xff] }
 0x1c6   :  { %1244 = vmatprep.subr.mxu0 %v1106_v14  ;;  %v1325_v14 = vld [vmem:[#allocation6 + $0x2c0] sm:$0xff] }
 0x1c7   :  { %1245 = vmatpush1.msra.mxu0 %v1105_v16  ;;  %v1324_v16 = vld [vmem:[#allocation6 + $0x2b8] sm:$0xff] }
 0x1c8   :  { %1246 = vmatprep.subr.mxu0 %v1104_v35  ;;  %v1323_v35 = vld [vmem:[#allocation6 + $0x2b0] sm:$0xff] }
 0x1c9   :  { %1247 = vmatpush1.msra.mxu0 %v1103_v42  ;;  %v1322_v42 = vld [vmem:[#allocation6 + $0x2a8] sm:$0xff] }
 0x1ca   :  { %1248 = vmatprep.subr.mxu0 %v1102_v20  ;;  %v1321_v20 = vld [vmem:[#allocation6 + $0x2a0] sm:$0xff] }
 0x1cb   :  { %1249 = vmatpush1.msra.mxu0 %v1101_v22  ;;  %v1320_v22 = vld [vmem:[#allocation6 + $0x298] sm:$0xff] }
 0x1cc   :  { %1250 = vmatprep.subr.mxu0 %v1100_v24  ;;  %v1319_v24 = vld [vmem:[#allocation6 + $0x290] sm:$0xff] }
 0x1cd   :  { %1251 = vmatpush1.msra.mxu0 %v1099_v26  ;;  %v1318_v26 = vld [vmem:[#allocation6 + $0x288] sm:$0xff] }
 0x1ce   :  { %1252 = vmatprep.subr.mxu0 %v1098_v28  ;;  %v1317_v28 = vld [vmem:[#allocation6 + $0x280] sm:$0xff] }
 0x254   :  { %v4301_v32 = vpop.f32.mrf.mxu0 }
 0x255   :  { %v4320_v33 = vpop.f32.mrf.mxu1 }
 0x256   :  { %v567_v34 = vpop.f32.mrf.mxu0  ;;  %v654_v39 = vadd.f32 %v4320_v33, %v4301_v32  ;;  %v1097_v32 = vld [vmem:[#allocation6 + $0x30] sm:$0xff]  ;;  %v1130_v33 = vld [vmem:[#allocation6 + $0x128] sm:$0xff] }
 0x257   :  { %v648_v38 = vpop.f32.mrf.mxu1  ;;  %1253 = vmatpush1.msra.mxu0 %v1097_v32  ;;  %v1316_v32 = vld [vmem:[#allocation6 + $0x278] sm:$0xff] }
 0x258   :  { %v649_v44 = vadd.f32 %v648_v38, %v567_v34  ;;  %v1096_v34 = vld [vmem:[#allocation6 + $0x28] sm:$0xff]  ;;  %v1095_v38 = vld [vmem:[#allocation6 + $0x20] sm:$0xff] }
 0x259   :  { %1254 = vmatprep.subr.mxu0 %v1096_v34  ;;  %v1315_v34 = vld [vmem:[#allocation6 + $0x270] sm:$0xff] }
 0x25a   :  { %1255 = vmatpush1.msra.mxu0 %v1095_v38  ;;  %v1314_v38 = vld [vmem:[#allocation6 + $0x268] sm:$0xff] }
 0x265   :  { %v4339_v36 = vpop.f32.mrf.mxu0 }
 0x266   :  { %v750_v45 = vadd.f32 %v4339_v36, %v654_v39  ;;  %v4358_v46 = vpop.f32.mrf.mxu1  ;;  %v1129_v36 = vld [vmem:[#allocation6 + $0x120] sm:$0xff]  ;;  %v1128_v39 = vld [vmem:[#allocation6 + $0x118] sm:$0xff] }
 0x267   :  { %v740_v43 = vpop.f32.mrf.mxu0 }
 0x268   :  { %v749_v47 = vadd.f32 %v740_v43, %v649_v44  ;;  %v844_v48 = vadd.f32 %v4358_v46, %v750_v45  ;;  %v834_v49 = vpop.f32.mrf.mxu1  ;;  %v1094_v43 = vld [vmem:[#allocation6 + $0x18] sm:$0xff]  ;;  %v1127_v44 = vld [vmem:[#allocation6 + $0x110] sm:$0xff]  ;;  %v1126_v46 = vld [vmem:[#allocation6 + $0x108] sm:$0xff] }
 0x269   :  { %v1093_v45 = vld [vmem:[#allocation6 + $0x10] sm:$0xff]  ;;  %1256 = vmatprep.subr.mxu0 %v1094_v43  ;;  %v1313_v43 = vld [vmem:[#allocation6 + $0x260] sm:$0xff] }
 0x26a   :  { %v843_v52 = vadd.f32 %v834_v49, %v749_v47  ;;  %v1092_v47 = vld [vmem:[#allocation6 + $0x8] sm:$0xff]  ;;  %v1091_v49 = vld [vmem:[#allocation6] sm:$0xff]  ;;  %1257 = vmatpush1.msra.mxu0 %v1093_v45  ;;  %v1312_v45 = vld [vmem:[#allocation6 + $0x258] sm:$0xff] }
 0x26b   :  { %1258 = vmatprep.subr.mxu0 %v1092_v47  ;;  %v1311_v47 = vld [vmem:[#allocation6 + $0x250] sm:$0xff] }
 0x26c   :  { %1259 = vmatpush1.msra.mxu0 %v1091_v49  ;;  %v1310_v49 = vld [vmem:[#allocation6 + $0x248] sm:$0xff] }
 0x276   :  { %v4377_v50 = vpop.f32.mrf.mxu0 }
 0x277   :  { %v938_v53 = vadd.f32 %v4377_v50, %v844_v48  ;;  %v1125_v48 = vld [vmem:[#allocation6 + $0x100] sm:$0xff]  ;;  %v1332_v50 = vld [vmem:[#allocation6 + $0x2f8] sm:$0xff] }
 0x278   :  { %v928_v54 = vpop.f32.mrf.mxu0 }
 0x279   :  { %v937_v7 = vadd.f32 %v928_v54, %v843_v52  ;;  %4379 = vmatpush3.msk.msra.mxu1 %vm305_vm7, %v938_v53  ;;  %v1439_v52 = vld [vmem:[#allocation6 + $0x3f8] sm:$0xff] }
 0x27a   :  { %4380 = vmatprep.subr.mxu1 %v4605_v1  ;;  %1440 = vmatprep.subr.mxu0 %v1439_v52  ;;  %v1309_v52 = vld [vmem:[#allocation6 + $0x240] sm:$0xff] }
 0x27b   :  { %4381 = vmatpush3.msra.mxu1 %v937_v7 }
 0x27c   :  { %4383 = vmatmul.mubr.msk.f32.vlgmr.msra.gmra.mxu1 %vm939_vm11, %v4726_v40  ;;  %4385 = vmatprep.subr.mxu1 %v4605_v1 }
 0x27d   :  { %4386 = vmatpush3.msk.msra.mxu1 %vm305_vm7, %v938_v53  ;;  %4389 = vmatprep.mubr.msk.f32.mxu1 %vm4606_vm10, %v4605_v1 }
 0x27e   :  { %4387 = vmatprep.subr.mxu1 %v4605_v1 }
 0x27f   :  { %4388 = vmatpush3.msra.mxu1 %v937_v7 }
 0x280   :  { %4390 = vmatmul.mubr.msk.f32.vlgmr.msra.gmra.mxu1 %vm939_vm11, %v4729_v41  ;;  %1157 = vmatprep.subr.mxu1 %v1156_v6 }
 0x281   :  { %1158 = vmatpush1.msra.mxu1 %v1155_v55  ;;  %1221 = vmatprep.mubr.f32.mxu1 %v4605_v1 }
 0x282   :  { %1159 = vmatprep.subr.mxu1 %v1154_v56 }
 0x283   :  { %1160 = vmatpush1.msra.mxu1 %v1153_v57  ;;  %v1331_v57 = vld [vmem:[#allocation6 + $0x2f0] sm:$0xff] }
 0x284   :  { %1161 = vmatprep.subr.mxu1 %v1152_v58  ;;  %v1438_v58 = vld [vmem:[#allocation6 + $0x3f0] sm:$0xff] }
 0x285   :  { %1162 = vmatpush1.msra.mxu1 %v1151_v59  ;;  %v1330_v59 = vld [vmem:[#allocation6 + $0x2e8] sm:$0xff] }
 0x286   :  { %1163 = vmatprep.subr.mxu1 %v1150_v61 }
 0x287   :  { %1164 = vmatpush1.msra.mxu1 %v1149_v62 }
 0x288   :  { %1165 = vmatprep.subr.mxu1 %v1148_v63  ;;  %v1437_v63 = vld [vmem:[#allocation6 + $0x3e8] sm:$0xff] }
 0x289   :  { %1166 = vmatpush1.msra.mxu1 %v1147_v0  ;;  %v1329_v0 = vld [vmem:[#allocation6 + $0x2e0] sm:$0xff] }
 0x28a   :  { %1167 = vmatprep.subr.mxu1 %v1146_v2  ;;  %v1436_v2 = vld [vmem:[#allocation6 + $0x3e0] sm:$0xff] }
 0x28b   :  { %1168 = vmatpush1.msra.mxu1 %v1145_v4  ;;  %v1328_v4 = vld [vmem:[#allocation6 + $0x2d8] sm:$0xff] }
 0x28c   :  { %1169 = vmatprep.subr.mxu1 %v1144_v12  ;;  %v1435_v12 = vld [vmem:[#allocation6 + $0x3d8] sm:$0xff] }
 0x28d   :  { %1170 = vmatpush1.msra.mxu1 %v1143_v19  ;;  %v1327_v19 = vld [vmem:[#allocation6 + $0x2d0] sm:$0xff] }
 0x28e   :  { %1171 = vmatprep.subr.mxu1 %v1142_v5  ;;  %v1434_v5 = vld [vmem:[#allocation6 + $0x3d0] sm:$0xff] }
 0x28f   :  { %1172 = vmatpush1.msra.mxu1 %v1141_v9  ;;  %v1326_v9 = vld [vmem:[#allocation6 + $0x2c8] sm:$0xff] }
 0x290   :  { %1173 = vmatprep.subr.mxu1 %v1140_v13  ;;  %v1433_v13 = vld [vmem:[#allocation6 + $0x3c8] sm:$0xff] }
 0x291   :  { %1174 = vmatpush1.msra.mxu1 %v1139_v15  ;;  %v1432_v15 = vld [vmem:[#allocation6 + $0x3c0] sm:$0xff] }
 0x292   :  { %1175 = vmatprep.subr.mxu1 %v1138_v17  ;;  %v1431_v17 = vld [vmem:[#allocation6 + $0x3b8] sm:$0xff] }
 0x293   :  { %1176 = vmatpush1.msra.mxu1 %v1137_v37  ;;  %v1430_v37 = vld [vmem:[#allocation6 + $0x3b0] sm:$0xff] }
 0x294   :  { %1177 = vmatprep.subr.mxu1 %v1136_v18  ;;  %v1429_v18 = vld [vmem:[#allocation6 + $0x3a8] sm:$0xff] }
 0x295   :  { %1178 = vmatpush1.msra.mxu1 %v1135_v21  ;;  %v1428_v21 = vld [vmem:[#allocation6 + $0x3a0] sm:$0xff] }
 0x296   :  { %1179 = vmatprep.subr.mxu1 %v1134_v23  ;;  %v1427_v23 = vld [vmem:[#allocation6 + $0x398] sm:$0xff] }
 0x297   :  { %1180 = vmatpush1.msra.mxu1 %v1133_v25  ;;  %v1426_v25 = vld [vmem:[#allocation6 + $0x390] sm:$0xff] }
 0x298   :  { %1181 = vmatprep.subr.mxu1 %v1132_v27  ;;  %v1425_v27 = vld [vmem:[#allocation6 + $0x388] sm:$0xff] }
 0x299   :  { %1182 = vmatpush1.msra.mxu1 %v1131_v29  ;;  %v1424_v29 = vld [vmem:[#allocation6 + $0x380] sm:$0xff] }
 0x29a   :  { %1183 = vmatprep.subr.mxu1 %v1130_v33  ;;  %v1423_v33 = vld [vmem:[#allocation6 + $0x378] sm:$0xff] }
 0x29b   :  { %1184 = vmatpush1.msra.mxu1 %v1129_v36  ;;  %v1422_v36 = vld [vmem:[#allocation6 + $0x370] sm:$0xff] }
 0x29c   :  { %1185 = vmatprep.subr.mxu1 %v1128_v39  ;;  %v1421_v39 = vld [vmem:[#allocation6 + $0x368] sm:$0xff] }
 0x29d   :  { %1186 = vmatpush1.msra.mxu1 %v1127_v44  ;;  %v1420_v44 = vld [vmem:[#allocation6 + $0x360] sm:$0xff] }
 0x29e   :  { %1187 = vmatprep.subr.mxu1 %v1126_v46  ;;  %v1419_v46 = vld [vmem:[#allocation6 + $0x358] sm:$0xff] }
 0x29f   :  { %1188 = vmatpush1.msra.mxu1 %v1125_v48  ;;  %v1418_v48 = vld [vmem:[#allocation6 + $0x350] sm:$0xff] }
 0x2a0   :  { %1333 = vmatprep.subr.mxu1 %v1332_v50  ;;  %v1417_v50 = vld [vmem:[#allocation6 + $0x348] sm:$0xff] }
 0x33c   :  { %v1011_v53 = vpop.f32.mrf.mxu1 }
 0x33e   :  { %v4384_v54 = vpop.f32.mrf.mxu1 }
 0x33f   :  { %v1308_v54 = vld [vmem:[#allocation6 + $0x238] sm:$0xff] }
 0x340   :  { %v1083_v7 = vpop.f32.mrf.mxu1 }
 0x341   :  { %v1087_v6 = vmax.f32 %v1011_v53, %v1083_v7  ;;  %v1416_v53 = vld [vmem:[#allocation6 + $0x340] sm:$0xff]  ;;  %v1415_v7 = vld [vmem:[#allocation6 + $0x338] sm:$0xff] }
 0x342   :  { %v4391_v55 = vpop.f32.mrf.mxu1 }
 0x343   :  { %v1088_v56 = vmax.f32 %v1087_v6, 0.0  ;;  %v1307_v6 = vld [vmem:[#allocation6 + $0x230] sm:$0xff] }
 0x344   :  { %v1414_v55 = vld [vmem:[#allocation6 + $0x330] sm:$0xff] }
 0x345   :  { %1089 = vst [vmem:[#allocation4 + $0x1] sm:$0x3f] %v1088_v56  ;;  %v1306_v56 = vld [vmem:[#allocation6 + $0x228] sm:$0xff] }
 0x34c   :  { %v1123_v61 = vld [vmem:[#allocation4 + $0x1] sm:$0xf] }
 0x34d   :  { %v1090_v62 = vld [vmem:[#allocation4] sm:$0xf]  ;;  %1222 = vmatmul.mubr.f32.vlgmr.msra.gmra.mxu1 %v1123_v61  ;;  %v1304_v61 = vld [vmem:[#allocation6 + $0x218] sm:$0xff] }
 0x34e   :  { %1293 = vmatmul.mubr.f32.vlgmr.msra.gmra.mxu0 %v1090_v62  ;;  %1334 = vmatpush1.msra.mxu1 %v1331_v57  ;;  %v1413_v57 = vld [vmem:[#allocation6 + $0x328] sm:$0xff]  ;;  %v1411_v62 = vld [vmem:[#allocation6 + $0x318] sm:$0xff] }
 0x34f   :  { %1441 = vmatpush1.msra.mxu0 %v1438_v58  ;;  %1335 = vmatprep.subr.mxu1 %v1330_v59  ;;  %v1305_v58 = vld [vmem:[#allocation6 + $0x220] sm:$0xff] }
 0x350   :  { %1442 = vmatprep.subr.mxu0 %v1437_v63  ;;  %1336 = vmatpush1.msra.mxu1 %v1329_v0  ;;  %v1412_v59 = vld [vmem:[#allocation6 + $0x320] sm:$0xff]  ;;  %v1303_v63 = vld [vmem:[#allocation6 + $0x210] sm:$0xff] }
 0x351   :  { %1443 = vmatpush1.msra.mxu0 %v1436_v2  ;;  %1337 = vmatprep.subr.mxu1 %v1328_v4  ;;  %v1410_v0 = vld [vmem:[#allocation6 + $0x310] sm:$0xff]  ;;  %v1302_v2 = vld [vmem:[#allocation6 + $0x208] sm:$0xff] }
 0x352   :  { %1444 = vmatprep.subr.mxu0 %v1435_v12  ;;  %1338 = vmatpush1.msra.mxu1 %v1327_v19  ;;  %v1409_v4 = vld [vmem:[#allocation6 + $0x308] sm:$0xff]  ;;  %v1301_v12 = vld [vmem:[#allocation6 + $0x200] sm:$0xff] }
 0x353   :  { %1445 = vmatpush1.msra.mxu0 %v1434_v5  ;;  %1339 = vmatprep.subr.mxu1 %v1326_v9  ;;  %v1408_v19 = vld [vmem:[#allocation6 + $0x300] sm:$0xff]  ;;  %v1546_v5 = vld [vmem:[#allocation6 + $0x4f8] sm:$0xff]  ;;  %v1299_v9 = vld [vmem:[#allocation4 + $0x2] sm:$0xf] }
 0x354   :  { %1446 = vmatprep.subr.mxu0 %v1433_v13  ;;  %1340 = vmatpush1.msra.mxu1 %v1325_v14  ;;  %v1406_v13 = vld [vmem:[#allocation4 + $0x3] sm:$0xf] }
 0x355   :  { %1447 = vmatpush1.msra.mxu0 %v1432_v15  ;;  %1341 = vmatprep.subr.mxu1 %v1324_v16  ;;  %v1545_v14 = vld [vmem:[#allocation6 + $0x4f0] sm:$0xff]  ;;  %v1544_v15 = vld [vmem:[#allocation6 + $0x4e8] sm:$0xff]  ;;  %v1543_v16 = vld [vmem:[#allocation6 + $0x4e0] sm:$0xff] }
 0x356   :  { %1448 = vmatprep.subr.mxu0 %v1431_v17  ;;  %1342 = vmatpush1.msra.mxu1 %v1323_v35  ;;  %v1542_v17 = vld [vmem:[#allocation6 + $0x4d8] sm:$0xff]  ;;  %v1541_v35 = vld [vmem:[#allocation6 + $0x4d0] sm:$0xff] }
 0x357   :  { %1449 = vmatpush1.msra.mxu0 %v1430_v37  ;;  %1343 = vmatprep.subr.mxu1 %v1322_v42  ;;  %v1540_v37 = vld [vmem:[#allocation6 + $0x4c8] sm:$0xff]  ;;  %v1539_v42 = vld [vmem:[#allocation6 + $0x4c0] sm:$0xff] }
 0x358   :  { %1450 = vmatprep.subr.mxu0 %v1429_v18  ;;  %1344 = vmatpush1.msra.mxu1 %v1321_v20  ;;  %v1538_v18 = vld [vmem:[#allocation6 + $0x4b8] sm:$0xff]  ;;  %v1537_v20 = vld [vmem:[#allocation6 + $0x4b0] sm:$0xff] }
 0x359   :  { %1451 = vmatpush1.msra.mxu0 %v1428_v21  ;;  %1345 = vmatprep.subr.mxu1 %v1320_v22  ;;  %v1536_v21 = vld [vmem:[#allocation6 + $0x4a8] sm:$0xff]  ;;  %v1535_v22 = vld [vmem:[#allocation6 + $0x4a0] sm:$0xff] }
 0x35a   :  { %1452 = vmatprep.subr.mxu0 %v1427_v23  ;;  %1346 = vmatpush1.msra.mxu1 %v1319_v24  ;;  %v1534_v23 = vld [vmem:[#allocation6 + $0x498] sm:$0xff]  ;;  %v1533_v24 = vld [vmem:[#allocation6 + $0x490] sm:$0xff] }
 0x35b   :  { %1453 = vmatpush1.msra.mxu0 %v1426_v25  ;;  %1347 = vmatprep.subr.mxu1 %v1318_v26  ;;  %v1532_v25 = vld [vmem:[#allocation6 + $0x488] sm:$0xff]  ;;  %v1531_v26 = vld [vmem:[#allocation6 + $0x480] sm:$0xff] }
 0x35c   :  { %1454 = vmatprep.subr.mxu0 %v1425_v27  ;;  %1348 = vmatpush1.msra.mxu1 %v1317_v28  ;;  %v1530_v27 = vld [vmem:[#allocation6 + $0x478] sm:$0xff]  ;;  %v1529_v28 = vld [vmem:[#allocation6 + $0x470] sm:$0xff] }
 0x35d   :  { %1455 = vmatpush1.msra.mxu0 %v1424_v29  ;;  %1349 = vmatprep.subr.mxu1 %v1316_v32  ;;  %v1528_v29 = vld [vmem:[#allocation6 + $0x468] sm:$0xff]  ;;  %v1527_v32 = vld [vmem:[#allocation6 + $0x460] sm:$0xff] }
 0x35e   :  { %1456 = vmatprep.subr.mxu0 %v1423_v33  ;;  %1350 = vmatpush1.msra.mxu1 %v1315_v34  ;;  %v1526_v33 = vld [vmem:[#allocation6 + $0x458] sm:$0xff]  ;;  %v1525_v34 = vld [vmem:[#allocation6 + $0x450] sm:$0xff] }
 0x35f   :  { %1457 = vmatpush1.msra.mxu0 %v1422_v36  ;;  %1351 = vmatprep.subr.mxu1 %v1314_v38  ;;  %v1524_v36 = vld [vmem:[#allocation6 + $0x448] sm:$0xff]  ;;  %v1523_v38 = vld [vmem:[#allocation6 + $0x440] sm:$0xff] }
 0x360   :  { %1458 = vmatprep.subr.mxu0 %v1421_v39  ;;  %1352 = vmatpush1.msra.mxu1 %v1313_v43  ;;  %v1522_v39 = vld [vmem:[#allocation6 + $0x438] sm:$0xff]  ;;  %v1521_v43 = vld [vmem:[#allocation6 + $0x430] sm:$0xff] }
 0x361   :  { %1459 = vmatpush1.msra.mxu0 %v1420_v44  ;;  %1353 = vmatprep.subr.mxu1 %v1312_v45  ;;  %v1520_v44 = vld [vmem:[#allocation6 + $0x428] sm:$0xff]  ;;  %v1519_v45 = vld [vmem:[#allocation6 + $0x420] sm:$0xff] }
 0x362   :  { %1460 = vmatprep.subr.mxu0 %v1419_v46  ;;  %1354 = vmatpush1.msra.mxu1 %v1311_v47  ;;  %v1518_v46 = vld [vmem:[#allocation6 + $0x418] sm:$0xff]  ;;  %v1517_v47 = vld [vmem:[#allocation6 + $0x410] sm:$0xff] }
 0x363   :  { %1461 = vmatpush1.msra.mxu0 %v1418_v48  ;;  %1355 = vmatprep.subr.mxu1 %v1310_v49  ;;  %v1516_v48 = vld [vmem:[#allocation6 + $0x408] sm:$0xff]  ;;  %v1515_v49 = vld [vmem:[#allocation6 + $0x400] sm:$0xff] }
 0x364   :  { %1462 = vmatprep.subr.mxu0 %v1417_v50  ;;  %1356 = vmatpush1.msra.mxu1 %v1309_v52  ;;  %v1513_v50 = vld [vmem:[#allocation4 + $0x4] sm:$0xf] }
 0x365   :  { %1463 = vmatpush1.msra.mxu0 %v1416_v53  ;;  %1357 = vmatprep.subr.mxu1 %v1308_v54 }
 0x366   :  { %1464 = vmatprep.subr.mxu0 %v1415_v7  ;;  %1358 = vmatpush1.msra.mxu1 %v1307_v6 }
 0x367   :  { %1465 = vmatpush1.msra.mxu0 %v1414_v55  ;;  %1359 = vmatprep.subr.mxu1 %v1306_v56 }
 0x368   :  { %1466 = vmatprep.subr.mxu0 %v1413_v57  ;;  %1360 = vmatpush1.msra.mxu1 %v1305_v58 }
 0x369   :  { %1467 = vmatpush1.msra.mxu0 %v1412_v59  ;;  %1361 = vmatprep.subr.mxu1 %v1304_v61 }
 0x36a   :  { %1468 = vmatprep.subr.mxu0 %v1411_v62  ;;  %1362 = vmatpush1.msra.mxu1 %v1303_v63 }
 0x36b   :  { %1469 = vmatpush1.msra.mxu0 %v1410_v0  ;;  %1363 = vmatprep.subr.mxu1 %v1302_v2 }
 0x36c   :  { %1470 = vmatprep.subr.mxu0 %v1409_v4  ;;  %1364 = vmatpush1.msra.mxu1 %v1301_v12 }
 0x36d   :  { %1397 = vmatprep.mubr.f32.mxu1 %v4605_v1  ;;  %1471 = vmatpush1.msra.mxu0 %v1408_v19 }
 0x36e   :  { %1504 = vmatprep.mubr.f32.mxu0 %v4605_v1  ;;  %1398 = vmatmul.mubr.f32.vlgmr.msra.gmra.mxu1 %v1299_v9  ;;  %v2182_v9 = vld [vmem:[%s5464_s3 + $0x20] sm:$0xff] }
 0x36f   :  { %1505 = vmatmul.mubr.f32.vlgmr.msra.gmra.mxu0 %v1406_v13  ;;  %1547 = vmatprep.subr.mxu1 %v1546_v5  ;;  %v3959_v5 = vld [vmem:[%s5464_s3 + $0x60] sm:$0xff]  ;;  %v3958_v13 = vld [vmem:[%s5464_s3 + $0x58] sm:$0xff] }
 0x370   :  { %1611 = vmatprep.mubr.f32.mxu1 %v4605_v1  ;;  %1548 = vmatpush1.msra.mxu1 %v1545_v14  ;;  %v2181_v14 = vld [vmem:[%s5464_s3 + $0x18] sm:$0xff] }
 0x371   :  { %1693 = vmatprep.mubr.f32.mxu0 %v4605_v1  ;;  %1549 = vmatprep.subr.mxu1 %v1544_v15  ;;  %v3957_v15 = vld [vmem:[%s5464_s3 + $0x50] sm:$0xff] }
 0x372   :  { %1550 = vmatpush1.msra.mxu1 %v1543_v16  ;;  %v2180_v16 = vld [vmem:[%s5464_s3 + $0x10] sm:$0xff] }
 0x373   :  { %1551 = vmatprep.subr.mxu1 %v1542_v17  ;;  %v3956_v17 = vld [vmem:[%s5464_s3 + $0x48] sm:$0xff] }
 0x374   :  { %1552 = vmatpush1.msra.mxu1 %v1541_v35  ;;  %v2179_v35 = vld [vmem:[%s5464_s3 + $0x8] sm:$0xff] }
 0x375   :  { %1553 = vmatprep.subr.mxu1 %v1540_v37  ;;  %v3955_v37 = vld [vmem:[%s5464_s3 + $0x40] sm:$0xff] }
 0x376   :  { %1554 = vmatpush1.msra.mxu1 %v1539_v42  ;;  %v2178_v42 = vld [vmem:[%s5464_s3] sm:$0xff] }
 0x377   :  { %1555 = vmatprep.subr.mxu1 %v1538_v18  ;;  %v3974_v18 = vld [vmem:[%s5464_s3 + $0xb8] sm:$0xff] }
 0x378   :  { %1556 = vmatpush1.msra.mxu1 %v1537_v20  ;;  %v3984_v20 = vld [vmem:[%s5464_s3 + $0xf8] sm:$0xff] }
 0x379   :  { %1557 = vmatprep.subr.mxu1 %v1536_v21 }
 0x37a   :  { %1558 = vmatpush1.msra.mxu1 %v1535_v22  ;;  %v4607_v22 = vmov 1966171168  }
 0x37b   :  { %1559 = vmatprep.subr.mxu1 %v1534_v23  ;;  %v1781_v23 = vunpack.c.l.s4 %v4607_v22  ;;  %v2814_v22 = vld [vmem:[#allocation6 + $0xf0] sm:$0xff] }
 0x37c   :  { %1560 = vmatpush1.msra.mxu1 %v1533_v24 }
 0x37d   :  { %1561 = vmatprep.subr.mxu1 %v1532_v25 }
 0x37e   :  { %1562 = vmatpush1.msra.mxu1 %v1531_v26  ;;  %v1782_v26 = vunpack.c.0.s8 %v1781_v23  ;;  %v2813_v23 = vld [vmem:[#allocation6 + $0xe8] sm:$0xff] }
 0x37f   :  { %1563 = vmatprep.subr.mxu1 %v1530_v27 }
 0x380   :  { %1564 = vmatpush1.msra.mxu1 %v1529_v28 }
 0x381   :  { %1565 = vmatprep.subr.mxu1 %v1528_v29 }
 0x382   :  { %1566 = vmatpush1.msra.mxu1 %v1527_v32  ;;  %v5085_v32 = vsub.s32 %v1782_v26, %v4714_v31  ;;  %v2810_v26 = vld [vmem:[#allocation6 + $0xd0] sm:$0xff] }
 0x383   :  { %1567 = vmatprep.subr.mxu1 %v1526_v33 }
 0x384   :  { %1568 = vmatpush1.msra.mxu1 %v1525_v34 }
 0x385   :  { %1569 = vmatprep.subr.mxu1 %v1524_v36 }
 0x386   :  { %1570 = vmatpush1.msra.mxu1 %v1523_v38 }
 0x387   :  { %1571 = vmatprep.subr.mxu1 %v1522_v39  ;;  %v3751_v39 = vld [vmem:[%s5470_s9 + $0x28] sm:$0xff] }
 0x388   :  { %1572 = vmatpush1.msra.mxu1 %v1521_v43 }
 0x389   :  { %1573 = vmatprep.subr.mxu1 %v1520_v44 }
 0x38a   :  { %1574 = vmatpush1.msra.mxu1 %v1519_v45 }
 0x38b   :  { %1575 = vmatprep.subr.mxu1 %v1518_v46 }
 0x38c   :  { %1576 = vmatpush1.msra.mxu1 %v1517_v47 }
 0x38d   :  { %1577 = vmatprep.subr.mxu1 %v1516_v48 }
 0x38e   :  { %1578 = vmatpush1.msra.mxu1 %v1515_v49 }
 0x38f   :  { %1612 = vmatmul.mubr.f32.vlgmr.msra.gmra.mxu1 %v1513_v50 }
 0x40d   :  { %v1223_v52 = vpop.f32.mrf.mxu1 }
 0x40e   :  { %v1294_v53 = vpop.f32.mrf.mxu0 }
 0x40f   :  { %v1225_v54 = vpop.f32.mrf.mxu1  ;;  %v1295_v57 = vadd.f32 %v1294_v53, %v1223_v52 }
 0x410   :  { %v1296_v6 = vpop.f32.mrf.mxu0 }
 0x411   :  { %v1297_v56 = vadd.f32 %v1296_v6, %v1225_v54 }
 0x42e   :  { %v1399_v7 = vpop.f32.mrf.mxu1 }
 0x42f   :  { %v1506_v58 = vpop.f32.mrf.mxu0  ;;  %v1404_v61 = vadd.f32 %v1399_v7, %v1295_v57 }
 0x430   :  { %v1401_v55 = vpop.f32.mrf.mxu1 }
 0x431   :  { %v1405_v59 = vadd.f32 %v1401_v55, %v1297_v56  ;;  %v1508_v62 = vpop.f32.mrf.mxu0  ;;  %v1511_v2 = vadd.f32 %v1506_v58, %v1404_v61  ;;  %v3973_v58 = vld [vmem:[%s5464_s3 + $0xb0] sm:$0xff] }
 0x433   :  { %v1512_v0 = vadd.f32 %v1508_v62, %v1405_v59  ;;  %v3983_v59 = vld [vmem:[%s5464_s3 + $0xf0] sm:$0xff] }
 0x44f   :  { %v1613_v63 = vpop.f32.mrf.mxu1 }
 0x450   :  { %v1618_v19 = vadd.f32 %v1613_v63, %v1511_v2  ;;  %v3972_v63 = vld [vmem:[%s5464_s3 + $0xa8] sm:$0xff]  ;;  %v3971_v2 = vld [vmem:[%s5464_s3 + $0xa0] sm:$0xff] }
 0x451   :  { %v1615_v4 = vpop.f32.mrf.mxu1 }
 0x452   :  { %v1619_v12 = vadd.f32 %v1615_v4, %v1512_v0  ;;  %v3982_v0 = vld [vmem:[%s5464_s3 + $0xe8] sm:$0xff]  ;;  %v3981_v4 = vld [vmem:[%s5464_s3 + $0xe0] sm:$0xff] }
 0x454   :  { %3930 = vmatprep.subr.msk.mxu0 %vm305_vm7, %v1619_v12 }
 0x455   :  { %3931 = vmatpush1.msk.msra.mxu0 %vm305_vm7, %v1618_v19 }
 0x456   :  { %3932 = vmatmul.mubr.msk.f32.vlgmr.msra.gmra.mxu0 %vm1620_vm12, %v4726_v40  ;;  %3933 = vmatprep.subr.msk.mxu0 %vm305_vm7, %v1619_v12  ;;  %v3970_v12 = vld [vmem:[%s5464_s3 + $0x98] sm:$0xff] }
 0x457   :  { %3934 = vmatpush1.msk.msra.mxu0 %vm305_vm7, %v1618_v19  ;;  %1766 = vmatprep.mubr.f32.mxu0 %v4605_v1  ;;  %v3980_v19 = vld [vmem:[%s5464_s3 + $0xd8] sm:$0xff] }
 0x458   :  { %4392 = vmatprep.subr.msk.mxu0 %vm305_vm7, %v4820_v51 }
 0x45a   :  { %3935 = vmatmul.mubr.msk.f32.vlgmr.msra.gmra.mxu0 %vm1620_vm12, %v4729_v41 }
 0x45b   :  { %4393 = vmatpush3.msk.msra.mxu0 %vm305_vm7, %v4820_v51  ;;  %4400 = vmatprep.mubr.msk.f32.mxu0 %vm298_vm4, %v4726_v40 }
 0x45c   :  { %4394 = vmatprep.subr.mxu0 %v4826_v60 }
 0x45d   :  { %4395 = vmatpush3.msra.mxu0 %v4826_v60 }
 0x45e   :  { %4396 = vmatprep.subr.mxu0 %v4830_v8 }
 0x45f   :  { %4397 = vmatpush3.msra.mxu0 %v4830_v8 }
 0x460   :  { %4398 = vmatprep.subr.mxu0 %v4832_v3 }
 0x461   :  { %4399 = vmatpush3.msra.mxu0 %v4832_v3 }
 0x462   :  { %4401 = vmatmul.mubr.msk.f32.vlgmr.msra.gmra.mxu0 %vm298_vm4, %v4796_v10  ;;  %4403 = vmatprep.subr.msk.mxu0 %vm305_vm7, %v4820_v51  ;;  %v3962_v10 = vld [vmem:[%s5464_s3 + $0x78] sm:$0xff] }
 0x463   :  { %4404 = vmatpush3.msk.msra.mxu0 %vm305_vm7, %v4820_v51  ;;  %4411 = vmatprep.mubr.msk.f32.mxu0 %vm298_vm4, %v4729_v41  ;;  %v2185_v51 = vld [vmem:[%s5464_s3 + $0x38] sm:$0xff] }
 0x464   :  { %4405 = vmatprep.subr.mxu0 %v4826_v60  ;;  %4433 = vmatprep.subr.mxu1 %v2185_v51 }
 0x465   :  { %4406 = vmatpush3.msra.mxu0 %v4826_v60  ;;  %4434 = vmatpush3.msra.mxu1 %v2185_v51  ;;  %v3961_v60 = vld [vmem:[%s5464_s3 + $0x70] sm:$0xff] }
 0x466   :  { %4407 = vmatprep.subr.mxu0 %v4830_v8  ;;  %v3979_v51 = vld [vmem:[%s5464_s3 + $0xd0] sm:$0xff] }
 0x467   :  { %4408 = vmatpush3.msra.mxu0 %v4830_v8  ;;  %v3960_v8 = vld [vmem:[%s5464_s3 + $0x68] sm:$0xff] }
 0x468   :  { %4409 = vmatprep.subr.mxu0 %v4832_v3 }
 0x469   :  { %4410 = vmatpush3.msra.mxu0 %v4832_v3  ;;  %v2183_v3 = vld [vmem:[%s5464_s3 + $0x28] sm:$0xff] }
 0x46a   :  { %4412 = vmatmul.mubr.msk.f32.vlgmr.msra.gmra.mxu0 %vm298_vm4, %v4802_v11  ;;  %4414 = vmatprep.subr.mxu0 %v3962_v10  ;;  %v2184_v11 = vld [vmem:[%s5464_s3 + $0x30] sm:$0xff] }
 0x46b   :  { %4415 = vmatpush3.msra.mxu0 %v3962_v10  ;;  %4435 = vmatprep.subr.mxu1 %v2184_v11  ;;  %v3969_v10 = vld [vmem:[%s5464_s3 + $0x90] sm:$0xff] }
 0x46c   :  { %4416 = vmatprep.subr.mxu0 %v3961_v60  ;;  %4436 = vmatpush3.msra.mxu1 %v2184_v11  ;;  %v3978_v11 = vld [vmem:[%s5464_s3 + $0xc8] sm:$0xff] }
 0x46d   :  { %4417 = vmatpush3.msra.mxu0 %v3961_v60  ;;  %4437 = vmatprep.subr.mxu1 %v2183_v3  ;;  %v3968_v60 = vld [vmem:[%s5464_s3 + $0x88] sm:$0xff] }
 0x46e   :  { %4418 = vmatprep.subr.mxu0 %v3960_v8  ;;  %4438 = vmatpush3.msra.mxu1 %v2183_v3  ;;  %v3977_v3 = vld [vmem:[%s5464_s3 + $0xc0] sm:$0xff] }
 0x46f   :  { %4419 = vmatpush3.msra.mxu0 %v3960_v8  ;;  %4439 = vmatprep.subr.mxu1 %v2182_v9  ;;  %v3967_v8 = vld [vmem:[%s5464_s3 + $0x80] sm:$0xff] }
 0x470   :  { %4420 = vmatprep.subr.mxu0 %v3959_v5  ;;  %4440 = vmatpush3.msra.mxu1 %v2182_v9 }
 0x471   :  { %4421 = vmatpush3.msra.mxu0 %v3959_v5  ;;  %4441 = vmatprep.subr.mxu1 %v2181_v14  ;;  %v3994_v5 = vld [vmem:[%s5464_s3 + $0x138] sm:$0xff] }
 0x472   :  { %4422 = vmatprep.subr.mxu0 %v3958_v13  ;;  %4442 = vmatpush3.msra.mxu1 %v2181_v14 }
 0x473   :  { %4423 = vmatpush3.msra.mxu0 %v3958_v13  ;;  %4443 = vmatprep.subr.mxu1 %v2180_v16 }
 0x474   :  { %4424 = vmatprep.subr.mxu0 %v3957_v15  ;;  %4444 = vmatpush3.msra.mxu1 %v2180_v16  ;;  %v3992_v16 = vld [vmem:[%s5464_s3 + $0x128] sm:$0xff] }
 0x475   :  { %4425 = vmatpush3.msra.mxu0 %v3957_v15  ;;  %4445 = vmatprep.subr.mxu1 %v2179_v35  ;;  %v3993_v15 = vld [vmem:[%s5464_s3 + $0x130] sm:$0xff] }
 0x476   :  { %4426 = vmatprep.subr.mxu0 %v3956_v17  ;;  %4446 = vmatpush3.msra.mxu1 %v2179_v35  ;;  %v3990_v35 = vld [vmem:[%s5464_s3 + $0x118] sm:$0xff] }
 0x477   :  { %4427 = vmatpush3.msra.mxu0 %v3956_v17  ;;  %4447 = vmatprep.subr.mxu1 %v2178_v42  ;;  %v3991_v17 = vld [vmem:[%s5464_s3 + $0x120] sm:$0xff] }
 0x478   :  { %4428 = vmatprep.subr.mxu0 %v3955_v37  ;;  %4448 = vmatpush3.msra.mxu1 %v2178_v42  ;;  %v3988_v42 = vld [vmem:[%s5464_s3 + $0x108] sm:$0xff] }
 0x479   :  { %4429 = vmatpush3.msra.mxu0 %v3955_v37  ;;  %4471 = vmatprep.subr.mxu1 %v3984_v20  ;;  %v3989_v37 = vld [vmem:[%s5464_s3 + $0x110] sm:$0xff] }
 0x47a   :  { %4452 = vmatprep.subr.mxu0 %v3974_v18 }
 0x516   :  { %v1695_v21 = vpop.f32.mrf.mxu0 }
 0x518   :  { %v1697_v24 = vpop.f32.mrf.mxu0 }
 0x51a   :  { %v1768_v25 = vpop.f32.mrf.mxu0 }
 0x51b   :  { %v1773_v27 = vmax.f32 %v1695_v21, %v1768_v25  ;;  %v2815_v21 = vld [vmem:[#allocation6 + $0xf8] sm:$0xff] }
 0x51c   :  { %v1770_v28 = vpop.f32.mrf.mxu0  ;;  %v2811_v25 = vld [vmem:[#allocation6 + $0xd8] sm:$0xff] }
 0x51d   :  { %v1774_v29 = vmax.f32 %v1697_v24, %v1770_v28  ;;  %v1775_v33 = vmax.f32 %v1773_v27, 0.0  ;;  %v2812_v24 = vld [vmem:[#allocation6 + $0xe0] sm:$0xff]  ;;  %v2809_v27 = vld [vmem:[#allocation6 + $0xc8] sm:$0xff] }
 0x51e   :  { %v2808_v28 = vld [vmem:[#allocation6 + $0xc0] sm:$0xff] }
 0x51f   :  { %v1776_v34 = vmax.f32 %v1774_v29, 0.0  ;;  %v2807_v29 = vld [vmem:[#allocation6 + $0xb8] sm:$0xff] }
 0x521   :  { %v1779_v36 = vcombine.low %v1775_v33, %v1776_v34  ;;  %v2806_v33 = vld [vmem:[#allocation6 + $0xb0] sm:$0xff]  ;;  %v2805_v34 = vld [vmem:[#allocation6 + $0xa8] sm:$0xff] }
 0x522   :  { %v4402_v43 = vpop.f32.mrf.mxu0 }
 0x523   :  { %v1786_v38 = vrot.slane %v1779_v36, %v5085_v32  ;;  %v2804_v36 = vld [vmem:[#allocation6 + $0xa0] sm:$0xff] }
 0x524   :  { %v2084_v46 = vpop.f32.mrf.mxu0 }
 0x525   :  { %v1793_v44 = vrot.slane %v1786_v38, %v5085_v32  ;;  %v1800_v45 = vcombine.high %v1786_v38, %v1786_v38  ;;  %v2803_v38 = vld [vmem:[#allocation6 + $0x98] sm:$0xff] }
 0x527   :  { %1799 = vst.msk [vmem:[#allocation5] ss:$2 sm:$0x3] %vm5089_vm13, %v1793_v44  ;;  %v1807_v31 = vrot.slane %v1800_v45, %v5085_v32  ;;  %v2801_v44 = vld [vmem:[#allocation6 + $0x88] sm:$0xff]  ;;  %v2800_v45 = vld [vmem:[#allocation6 + $0x80] sm:$0xff] }
 0x529   :  { %1810 = vst.msk [vmem:[#allocation5 + $0x4] ss:$2 sm:$0x3] %vm5089_vm13, %v1807_v31 }
 0x52a   :  { %v4413_v47 = vpop.f32.mrf.mxu0 }
 0x52b   :  { %v2169_v48 = vmax.f32 %v4402_v43, %v4413_v47  ;;  %v2802_v43 = vld [vmem:[#allocation6 + $0x90] sm:$0xff] }
 0x52c   :  { %v2159_v49 = vpop.f32.mrf.mxu0 }
 0x52d   :  { %v2171_v50 = vadd.f32 %v4556_v30, %v2169_v48  ;;  %v2168_v52 = vmax.f32 %v2084_v46, %v2159_v49 }
 0x52f   :  { %v2173_v53 = vmax.f32 %v2171_v50, 0.0  ;;  %v2170_v54 = vadd.f32 %v4556_v30, %v2168_v52 }
 0x531   :  { %2175 = vst.msk [vmem:[#allocation3 + $0x9] sm:$0x3f] %vm472_vm9, %v2173_v53  ;;  %v2172_v7 = vmax.f32 %v2170_v54, 0.0 }
 0x533   :  { %2174 = vst.msk [vmem:[#allocation3 + $0x1] sm:$0xff] %vm79_vm8, %v2172_v7 }
 0x538   :  { %v2187_v57 = vld [vmem:[#allocation3 + $0x9] sm:$0xf] }
 0x539   :  { %v2359_v9 = vld [vmem:[#allocation3 + $0xa] sm:$0xf] }
 0x53a   :  { %v2186_v6 = vld [vmem:[#allocation3 + $0x1] sm:$0xff]  ;;  %v2452_v13 = vld [vmem:[#allocation3 + $0xb] sm:$0xf] }
 0x53b   :  { %v2176_v55 = vld [vmem:[#allocation3] sm:$0xff]  ;;  %v2177_v56 = vld [vmem:[#allocation3 + $0x8] sm:$0xf]  ;;  %4430 = vmatprep.mubr.msk.f32.mxu0 %vm79_vm8, %v2186_v6 }
 0x53c   :  { %4449 = vmatprep.mubr.msk.f32.mxu1 %vm79_vm8, %v2176_v55  ;;  %4431 = vmatmul.mubr.msk.f32.vlgmr.msra.gmra.mxu0 %vm79_vm8, %v2187_v57  ;;  %v2358_v61 = vld [vmem:[#allocation3 + $0x2] sm:$0xff] }
 0x53d   :  { %4450 = vmatmul.mubr.msk.f32.vlgmr.msra.gmra.mxu1 %vm79_vm8, %v2177_v56  ;;  %4453 = vmatpush3.msra.mxu0 %v3974_v18  ;;  %v2451_v62 = vld [vmem:[#allocation3 + $0x3] sm:$0xff] }
 0x53e   :  { %4472 = vmatpush3.msra.mxu1 %v3984_v20  ;;  %4454 = vmatprep.subr.mxu0 %v3973_v58  ;;  %v2544_v14 = vld [vmem:[#allocation3 + $0x4] sm:$0xff]  ;;  %v2545_v20 = vld [vmem:[#allocation3 + $0xc] sm:$0xf] }
 0x53f   :  { %4468 = vmatprep.mubr.msk.f32.mxu0 %vm79_vm8, %v2358_v61  ;;  %4473 = vmatprep.subr.mxu1 %v3983_v59  ;;  %v3987_v18 = vld [vmem:[%s5464_s3 + $0x100] sm:$0xff] }
 0x540   :  { %4487 = vmatprep.mubr.msk.f32.mxu1 %vm79_vm8, %v2451_v62  ;;  %4455 = vmatpush3.msra.mxu0 %v3973_v58  ;;  %v2848_v62 = vld [vmem:[#allocation6 + $0x1f8] sm:$0xff] }
 0x541   :  { %4474 = vmatpush3.msra.mxu1 %v3983_v59  ;;  %4456 = vmatprep.subr.mxu0 %v3972_v63 }
 0x542   :  { %4475 = vmatprep.subr.mxu1 %v3982_v0  ;;  %4457 = vmatpush3.msra.mxu0 %v3972_v63  ;;  %v2847_v63 = vld [vmem:[#allocation6 + $0x1f0] sm:$0xff] }
 0x543   :  { %4476 = vmatpush3.msra.mxu1 %v3982_v0  ;;  %4458 = vmatprep.subr.mxu0 %v3971_v2  ;;  %v2846_v0 = vld [vmem:[#allocation6 + $0x1e8] sm:$0xff] }
 0x544   :  { %4477 = vmatprep.subr.mxu1 %v3981_v4  ;;  %4459 = vmatpush3.msra.mxu0 %v3971_v2  ;;  %v2845_v2 = vld [vmem:[#allocation6 + $0x1e0] sm:$0xff] }
 0x545   :  { %4478 = vmatpush3.msra.mxu1 %v3981_v4  ;;  %4460 = vmatprep.subr.mxu0 %v3970_v12  ;;  %v2844_v4 = vld [vmem:[#allocation6 + $0x1d8] sm:$0xff] }
 0x546   :  { %4479 = vmatprep.subr.mxu1 %v3980_v19  ;;  %4461 = vmatpush3.msra.mxu0 %v3970_v12  ;;  %v2843_v12 = vld [vmem:[#allocation6 + $0x1d0] sm:$0xff] }
 0x547   :  { %4480 = vmatpush3.msra.mxu1 %v3980_v19  ;;  %4462 = vmatprep.subr.mxu0 %v3969_v10  ;;  %v2842_v19 = vld [vmem:[#allocation6 + $0x1c8] sm:$0xff] }
 0x548   :  { %4481 = vmatprep.subr.mxu1 %v3979_v51  ;;  %4463 = vmatpush3.msra.mxu0 %v3969_v10  ;;  %v2841_v10 = vld [vmem:[#allocation6 + $0x1c0] sm:$0xff] }
 0x549   :  { %4482 = vmatpush3.msra.mxu1 %v3979_v51  ;;  %4464 = vmatprep.subr.mxu0 %v3968_v60  ;;  %v2840_v51 = vld [vmem:[#allocation6 + $0x1b8] sm:$0xff] }
 0x54a   :  { %4483 = vmatprep.subr.mxu1 %v3978_v11  ;;  %4465 = vmatpush3.msra.mxu0 %v3968_v60  ;;  %v2839_v60 = vld [vmem:[#allocation6 + $0x1b0] sm:$0xff] }
 0x54b   :  { %4484 = vmatpush3.msra.mxu1 %v3978_v11  ;;  %4466 = vmatprep.subr.mxu0 %v3967_v8  ;;  %v2838_v11 = vld [vmem:[#allocation6 + $0x1a8] sm:$0xff] }
 0x54c   :  { %4485 = vmatprep.subr.mxu1 %v3977_v3  ;;  %4467 = vmatpush3.msra.mxu0 %v3967_v8  ;;  %v2837_v8 = vld [vmem:[#allocation6 + $0x1a0] sm:$0xff] }
 0x54d   :  { %4486 = vmatpush3.msra.mxu1 %v3977_v3  ;;  %4469 = vmatmul.mubr.msk.f32.vlgmr.msra.gmra.mxu0 %vm79_vm8, %v2359_v9  ;;  %v2836_v3 = vld [vmem:[#allocation6 + $0x198] sm:$0xff]  ;;  %v2834_v9 = vld [vmem:[#allocation6 + $0x188] sm:$0xff] }
 0x54e   :  { %4488 = vmatmul.mubr.msk.f32.vlgmr.msra.gmra.mxu1 %vm79_vm8, %v2452_v13  ;;  %4490 = vmatprep.subr.mxu0 %v3994_v5  ;;  %v2833_v13 = vld [vmem:[#allocation6 + $0x180] sm:$0xff] }
 0x54f   :  { %4506 = vmatprep.mubr.msk.f32.mxu0 %vm79_vm8, %v2544_v14  ;;  %4491 = vmatpush3.msra.mxu0 %v3994_v5  ;;  %v2835_v5 = vld [vmem:[#allocation6 + $0x190] sm:$0xff]  ;;  %v2832_v14 = vld [vmem:[#allocation6 + $0x178] sm:$0xff] }
 0x550   :  { %4509 = vmatprep.subr.mxu1 %v4605_v1  ;;  %4492 = vmatprep.subr.mxu0 %v3993_v15 }
 0x551   :  { %4513 = vmatprep.mubr.msk.f32.mxu1 %vm4606_vm10, %v4605_v1  ;;  %4493 = vmatpush3.msra.mxu0 %v3993_v15  ;;  %v2799_v15 = vld [vmem:[#allocation6 + $0x78] sm:$0xff] }
 0x552   :  { %4494 = vmatprep.subr.mxu0 %v3992_v16 }
 0x553   :  { %4495 = vmatpush3.msra.mxu0 %v3992_v16  ;;  %v2831_v16 = vld [vmem:[#allocation6 + $0x170] sm:$0xff] }
 0x554   :  { %4496 = vmatprep.subr.mxu0 %v3991_v17 }
 0x555   :  { %4497 = vmatpush3.msra.mxu0 %v3991_v17  ;;  %v2798_v17 = vld [vmem:[#allocation6 + $0x70] sm:$0xff] }
 0x556   :  { %4498 = vmatprep.subr.mxu0 %v3990_v35 }
 0x557   :  { %4499 = vmatpush3.msra.mxu0 %v3990_v35  ;;  %v2830_v35 = vld [vmem:[#allocation6 + $0x168] sm:$0xff] }
 0x558   :  { %4500 = vmatprep.subr.mxu0 %v3989_v37 }
 0x559   :  { %4501 = vmatpush3.msra.mxu0 %v3989_v37  ;;  %v2797_v37 = vld [vmem:[#allocation6 + $0x68] sm:$0xff] }
 0x55a   :  { %4502 = vmatprep.subr.mxu0 %v3988_v42 }
 0x55b   :  { %4503 = vmatpush3.msra.mxu0 %v3988_v42  ;;  %v2829_v42 = vld [vmem:[#allocation6 + $0x160] sm:$0xff] }
 0x55c   :  { %4504 = vmatprep.subr.mxu0 %v3987_v18 }
 0x55d   :  { %4505 = vmatpush3.msra.mxu0 %v3987_v18  ;;  %v2796_v18 = vld [vmem:[#allocation6 + $0x60] sm:$0xff] }
 0x55e   :  { %4507 = vmatmul.mubr.msk.f32.vlgmr.msra.gmra.mxu0 %vm79_vm8, %v2545_v20  ;;  %2920 = vmatprep.subr.mxu0 %v2815_v21  ;;  %v2828_v20 = vld [vmem:[#allocation6 + $0x158] sm:$0xff] }
 0x55f   :  { %2984 = vmatprep.mubr.f32.mxu0 %v4605_v1  ;;  %2921 = vmatpush1.msra.mxu0 %v2814_v22  ;;  %v2795_v21 = vld [vmem:[#allocation6 + $0x58] sm:$0xff]  ;;  %v2827_v22 = vld [vmem:[#allocation6 + $0x150] sm:$0xff] }
 0x560   :  { %2922 = vmatprep.subr.mxu0 %v2813_v23  ;;  %v2794_v23 = vld [vmem:[#allocation6 + $0x50] sm:$0xff] }
 0x561   :  { %2923 = vmatpush1.msra.mxu0 %v2812_v24  ;;  %v2826_v24 = vld [vmem:[#allocation6 + $0x148] sm:$0xff] }
 0x562   :  { %2924 = vmatprep.subr.mxu0 %v2811_v25  ;;  %v2793_v25 = vld [vmem:[#allocation6 + $0x48] sm:$0xff] }
 0x563   :  { %2925 = vmatpush1.msra.mxu0 %v2810_v26  ;;  %v2825_v26 = vld [vmem:[#allocation6 + $0x140] sm:$0xff] }
 0x564   :  { %2926 = vmatprep.subr.mxu0 %v2809_v27  ;;  %v2792_v27 = vld [vmem:[#allocation6 + $0x40] sm:$0xff] }
 0x565   :  { %2927 = vmatpush1.msra.mxu0 %v2808_v28  ;;  %v2824_v28 = vld [vmem:[#allocation6 + $0x138] sm:$0xff] }
 0x566   :  { %2928 = vmatprep.subr.mxu0 %v2807_v29  ;;  %v2791_v29 = vld [vmem:[#allocation6 + $0x38] sm:$0xff] }
 0x567   :  { %2929 = vmatpush1.msra.mxu0 %v2806_v33  ;;  %v2823_v33 = vld [vmem:[#allocation6 + $0x130] sm:$0xff] }
 0x568   :  { %2930 = vmatprep.subr.mxu0 %v2805_v34  ;;  %v2790_v34 = vld [vmem:[#allocation6 + $0x30] sm:$0xff] }
 0x569   :  { %2931 = vmatpush1.msra.mxu0 %v2804_v36  ;;  %v2822_v36 = vld [vmem:[#allocation6 + $0x128] sm:$0xff] }
 0x56a   :  { %2932 = vmatprep.subr.mxu0 %v2803_v38  ;;  %v2789_v38 = vld [vmem:[#allocation6 + $0x28] sm:$0xff] }
 0x56b   :  { %2933 = vmatpush1.msra.mxu0 %v2802_v43  ;;  %v2821_v43 = vld [vmem:[#allocation6 + $0x120] sm:$0xff] }
 0x56c   :  { %2934 = vmatprep.subr.mxu0 %v2801_v44  ;;  %v2788_v44 = vld [vmem:[#allocation6 + $0x20] sm:$0xff] }
 0x56d   :  { %2935 = vmatpush1.msra.mxu0 %v2800_v45  ;;  %v2820_v45 = vld [vmem:[#allocation6 + $0x118] sm:$0xff] }
 0x56e   :  { %2936 = vmatprep.subr.mxu0 %v2799_v15  ;;  %v3013_v15 = vld [vmem:[#allocation6 + $0x2a8] sm:$0xff] }
 0x56f   :  { %2937 = vmatpush1.msra.mxu0 %v2798_v17  ;;  %v3012_v17 = vld [vmem:[#allocation6 + $0x2a0] sm:$0xff] }
 0x570   :  { %2938 = vmatprep.subr.mxu0 %v2797_v37  ;;  %v3011_v37 = vld [vmem:[#allocation6 + $0x298] sm:$0xff] }
 0x571   :  { %2939 = vmatpush1.msra.mxu0 %v2796_v18  ;;  %v3010_v18 = vld [vmem:[#allocation6 + $0x290] sm:$0xff] }
 0x572   :  { %2940 = vmatprep.subr.mxu0 %v2795_v21  ;;  %v3009_v21 = vld [vmem:[#allocation6 + $0x288] sm:$0xff] }
 0x573   :  { %2941 = vmatpush1.msra.mxu0 %v2794_v23  ;;  %v3008_v23 = vld [vmem:[#allocation6 + $0x280] sm:$0xff] }
 0x574   :  { %2942 = vmatprep.subr.mxu0 %v2793_v25  ;;  %v3007_v25 = vld [vmem:[#allocation6 + $0x278] sm:$0xff] }
 0x575   :  { %2943 = vmatpush1.msra.mxu0 %v2792_v27  ;;  %v3006_v27 = vld [vmem:[#allocation6 + $0x270] sm:$0xff] }
 0x576   :  { %2944 = vmatprep.subr.mxu0 %v2791_v29  ;;  %v3005_v29 = vld [vmem:[#allocation6 + $0x268] sm:$0xff] }
 0x577   :  { %2945 = vmatpush1.msra.mxu0 %v2790_v34  ;;  %v3004_v34 = vld [vmem:[#allocation6 + $0x260] sm:$0xff] }
 0x578   :  { %2946 = vmatprep.subr.mxu0 %v2789_v38  ;;  %v3003_v38 = vld [vmem:[#allocation6 + $0x258] sm:$0xff] }
 0x579   :  { %2947 = vmatpush1.msra.mxu0 %v2788_v44  ;;  %v3002_v44 = vld [vmem:[#allocation6 + $0x250] sm:$0xff] }
 0x5fc   :  { %v4432_v31 = vpop.f32.mrf.mxu0 }
 0x5fd   :  { %v4451_v46 = vpop.f32.mrf.mxu1 }
 0x5fe   :  { %v2268_v47 = vpop.f32.mrf.mxu0  ;;  %v2355_v30 = vadd.f32 %v4451_v46, %v4432_v31  ;;  %v2787_v31 = vld [vmem:[#allocation6 + $0x18] sm:$0xff]  ;;  %v2819_v46 = vld [vmem:[#allocation6 + $0x110] sm:$0xff] }
 0x5ff   :  { %v2349_v49 = vpop.f32.mrf.mxu1  ;;  %2948 = vmatprep.subr.mxu0 %v2787_v31  ;;  %v3001_v31 = vld [vmem:[#allocation6 + $0x248] sm:$0xff] }
 0x600   :  { %v2350_v52 = vadd.f32 %v2349_v49, %v2268_v47  ;;  %v2786_v47 = vld [vmem:[#allocation6 + $0x10] sm:$0xff]  ;;  %v2785_v49 = vld [vmem:[#allocation6 + $0x8] sm:$0xff] }
 0x601   :  { %2949 = vmatpush1.msra.mxu0 %v2786_v47  ;;  %v3000_v47 = vld [vmem:[#allocation6 + $0x240] sm:$0xff] }
 0x602   :  { %2950 = vmatprep.subr.mxu0 %v2785_v49  ;;  %v2999_v49 = vld [vmem:[#allocation6 + $0x238] sm:$0xff] }
 0x60d   :  { %v4470_v48 = vpop.f32.mrf.mxu0 }
 0x60e   :  { %v2450_v53 = vadd.f32 %v4470_v48, %v2355_v30  ;;  %v4489_v54 = vpop.f32.mrf.mxu1  ;;  %v2818_v48 = vld [vmem:[#allocation6 + $0x108] sm:$0xff]  ;;  %v2817_v30 = vld [vmem:[#allocation6 + $0x100] sm:$0xff] }
 0x60f   :  { %v2440_v50 = vpop.f32.mrf.mxu0 }
 0x610   :  { %v2449_v7 = vadd.f32 %v2440_v50, %v2350_v52  ;;  %v2543_v6 = vadd.f32 %v4489_v54, %v2450_v53  ;;  %v2533_v55 = vpop.f32.mrf.mxu1  ;;  %v2784_v50 = vld [vmem:[#allocation6] sm:$0xff]  ;;  %v3023_v52 = vld [vmem:[#allocation6 + $0x2f8] sm:$0xff] }
 0x611   :  { %v3129_v53 = vld [vmem:[#allocation6 + $0x3f8] sm:$0xff]  ;;  %2951 = vmatpush1.msra.mxu0 %v2784_v50  ;;  %v2998_v50 = vld [vmem:[#allocation6 + $0x230] sm:$0xff] }
 0x612   :  { %v2542_v57 = vadd.f32 %v2533_v55, %v2449_v7  ;;  %3130 = vmatprep.subr.mxu0 %v3129_v53  ;;  %v2997_v53 = vld [vmem:[#allocation6 + $0x228] sm:$0xff] }
 0x61e   :  { %v4508_v56 = vpop.f32.mrf.mxu0 }
 0x61f   :  { %v2636_v58 = vadd.f32 %v4508_v56, %v2543_v6 }
 0x620   :  { %v2626_v59 = vpop.f32.mrf.mxu0 }
 0x621   :  { %v2635_v61 = vadd.f32 %v2626_v59, %v2542_v57  ;;  %4510 = vmatpush3.msk.msra.mxu1 %vm305_vm7, %v2636_v58  ;;  %v3128_v59 = vld [vmem:[#allocation6 + $0x3f0] sm:$0xff] }
 0x622   :  { %4511 = vmatprep.subr.mxu1 %v4605_v1 }
 0x623   :  { %4512 = vmatpush3.msra.mxu1 %v2635_v61 }
 0x624   :  { %4514 = vmatmul.mubr.msk.f32.vlgmr.msra.gmra.mxu1 %vm939_vm11, %v4726_v40  ;;  %4516 = vmatprep.subr.mxu1 %v4605_v1 }
 0x625   :  { %4517 = vmatpush3.msk.msra.mxu1 %vm305_vm7, %v2636_v58  ;;  %4520 = vmatprep.mubr.msk.f32.mxu1 %vm4606_vm10, %v4605_v1  ;;  %v3022_v58 = vld [vmem:[#allocation6 + $0x2f0] sm:$0xff] }
 0x626   :  { %4518 = vmatprep.subr.mxu1 %v4605_v1 }
 0x627   :  { %4519 = vmatpush3.msra.mxu1 %v2635_v61  ;;  %v3021_v61 = vld [vmem:[#allocation6 + $0x2e8] sm:$0xff] }
 0x628   :  { %4521 = vmatmul.mubr.msk.f32.vlgmr.msra.gmra.mxu1 %vm939_vm11, %v4729_v41  ;;  %2849 = vmatprep.subr.mxu1 %v2848_v62 }
 0x629   :  { %2850 = vmatpush1.msra.mxu1 %v2847_v63  ;;  %2913 = vmatprep.mubr.f32.mxu1 %v4605_v1 }
 0x62a   :  { %2851 = vmatprep.subr.mxu1 %v2846_v0  ;;  %v3127_v0 = vld [vmem:[#allocation6 + $0x3e8] sm:$0xff] }
 0x62b   :  { %2852 = vmatpush1.msra.mxu1 %v2845_v2  ;;  %v3020_v2 = vld [vmem:[#allocation6 + $0x2e0] sm:$0xff] }
 0x62c   :  { %2853 = vmatprep.subr.mxu1 %v2844_v4  ;;  %v3126_v4 = vld [vmem:[#allocation6 + $0x3e0] sm:$0xff] }
 0x62d   :  { %2854 = vmatpush1.msra.mxu1 %v2843_v12  ;;  %v3019_v12 = vld [vmem:[#allocation6 + $0x2d8] sm:$0xff] }
 0x62e   :  { %2855 = vmatprep.subr.mxu1 %v2842_v19  ;;  %v3125_v19 = vld [vmem:[#allocation6 + $0x3d8] sm:$0xff] }
 0x62f   :  { %2856 = vmatpush1.msra.mxu1 %v2841_v10  ;;  %v3018_v10 = vld [vmem:[#allocation6 + $0x2d0] sm:$0xff] }
 0x630   :  { %2857 = vmatprep.subr.mxu1 %v2840_v51  ;;  %v3124_v51 = vld [vmem:[#allocation6 + $0x3d0] sm:$0xff] }
 0x631   :  { %2858 = vmatpush1.msra.mxu1 %v2839_v60  ;;  %v3017_v60 = vld [vmem:[#allocation6 + $0x2c8] sm:$0xff] }
 0x632   :  { %2859 = vmatprep.subr.mxu1 %v2838_v11  ;;  %v3123_v11 = vld [vmem:[#allocation6 + $0x3c8] sm:$0xff] }
 0x633   :  { %2860 = vmatpush1.msra.mxu1 %v2837_v8  ;;  %v3016_v8 = vld [vmem:[#allocation6 + $0x2c0] sm:$0xff] }
 0x634   :  { %2861 = vmatprep.subr.mxu1 %v2836_v3  ;;  %v3122_v3 = vld [vmem:[#allocation6 + $0x3c0] sm:$0xff] }
 0x635   :  { %2862 = vmatpush1.msra.mxu1 %v2835_v5  ;;  %v3015_v5 = vld [vmem:[#allocation6 + $0x2b8] sm:$0xff] }
 0x636   :  { %2863 = vmatprep.subr.mxu1 %v2834_v9  ;;  %v3121_v9 = vld [vmem:[#allocation6 + $0x3b8] sm:$0xff] }
 0x637   :  { %2864 = vmatpush1.msra.mxu1 %v2833_v13  ;;  %v3014_v13 = vld [vmem:[#allocation6 + $0x2b0] sm:$0xff] }
 0x638   :  { %2865 = vmatprep.subr.mxu1 %v2832_v14  ;;  %v3120_v14 = vld [vmem:[#allocation6 + $0x3b0] sm:$0xff] }
 0x639   :  { %2866 = vmatpush1.msra.mxu1 %v2831_v16  ;;  %v3119_v16 = vld [vmem:[#allocation6 + $0x3a8] sm:$0xff] }
 0x63a   :  { %2867 = vmatprep.subr.mxu1 %v2830_v35  ;;  %v3118_v35 = vld [vmem:[#allocation6 + $0x3a0] sm:$0xff] }
 0x63b   :  { %2868 = vmatpush1.msra.mxu1 %v2829_v42  ;;  %v3117_v42 = vld [vmem:[#allocation6 + $0x398] sm:$0xff] }
 0x63c   :  { %2869 = vmatprep.subr.mxu1 %v2828_v20  ;;  %v3116_v20 = vld [vmem:[#allocation6 + $0x390] sm:$0xff] }
 0x63d   :  { %2870 = vmatpush1.msra.mxu1 %v2827_v22  ;;  %v3115_v22 = vld [vmem:[#allocation6 + $0x388] sm:$0xff] }
 0x63e   :  { %2871 = vmatprep.subr.mxu1 %v2826_v24  ;;  %v3114_v24 = vld [vmem:[#allocation6 + $0x380] sm:$0xff] }
 0x63f   :  { %2872 = vmatpush1.msra.mxu1 %v2825_v26  ;;  %v3113_v26 = vld [vmem:[#allocation6 + $0x378] sm:$0xff] }
 0x640   :  { %2873 = vmatprep.subr.mxu1 %v2824_v28  ;;  %v3112_v28 = vld [vmem:[#allocation6 + $0x370] sm:$0xff] }
 0x641   :  { %2874 = vmatpush1.msra.mxu1 %v2823_v33  ;;  %v3111_v33 = vld [vmem:[#allocation6 + $0x368] sm:$0xff] }
 0x642   :  { %2875 = vmatprep.subr.mxu1 %v2822_v36  ;;  %v3110_v36 = vld [vmem:[#allocation6 + $0x360] sm:$0xff] }
 0x643   :  { %2876 = vmatpush1.msra.mxu1 %v2821_v43  ;;  %v3109_v43 = vld [vmem:[#allocation6 + $0x358] sm:$0xff] }
 0x644   :  { %2877 = vmatprep.subr.mxu1 %v2820_v45  ;;  %v3108_v45 = vld [vmem:[#allocation6 + $0x350] sm:$0xff] }
 0x645   :  { %2878 = vmatpush1.msra.mxu1 %v2819_v46  ;;  %v3107_v46 = vld [vmem:[#allocation6 + $0x348] sm:$0xff] }
 0x646   :  { %2879 = vmatprep.subr.mxu1 %v2818_v48  ;;  %v3106_v48 = vld [vmem:[#allocation6 + $0x340] sm:$0xff] }
 0x647   :  { %2880 = vmatpush1.msra.mxu1 %v2817_v30  ;;  %v3105_v30 = vld [vmem:[#allocation6 + $0x338] sm:$0xff] }
 0x648   :  { %3024 = vmatprep.subr.mxu1 %v3023_v52  ;;  %v3104_v52 = vld [vmem:[#allocation6 + $0x330] sm:$0xff] }
 0x6e4   :  { %v2706_v54 = vpop.f32.mrf.mxu1 }
 0x6e6   :  { %v4515_v7 = vpop.f32.mrf.mxu1 }
 0x6e7   :  { %v2996_v7 = vld [vmem:[#allocation6 + $0x220] sm:$0xff] }
 0x6e8   :  { %v2776_v6 = vpop.f32.mrf.mxu1 }
 0x6e9   :  { %v2780_v55 = vmax.f32 %v2706_v54, %v2776_v6  ;;  %v3103_v54 = vld [vmem:[#allocation6 + $0x328] sm:$0xff]  ;;  %v3102_v6 = vld [vmem:[#allocation6 + $0x320] sm:$0xff] }
 0x6ea   :  { %v4522_v56 = vpop.f32.mrf.mxu1 }
 0x6eb   :  { %v2781_v57 = vmax.f32 %v2780_v55, 0.0  ;;  %v2995_v55 = vld [vmem:[#allocation6 + $0x218] sm:$0xff] }
 0x6ec   :  { %v3101_v56 = vld [vmem:[#allocation6 + $0x318] sm:$0xff] }
 0x6ed   :  { %2782 = vst [vmem:[#allocation4 + $0x1] sm:$0x3f] %v2781_v57  ;;  %v2994_v57 = vld [vmem:[#allocation6 + $0x210] sm:$0xff] }
 0x6f4   :  { %v2816_v62 = vld [vmem:[#allocation4 + $0x1] sm:$0xf] }
 0x6f5   :  { %v2783_v63 = vld [vmem:[#allocation4] sm:$0xf]  ;;  %2914 = vmatmul.mubr.f32.vlgmr.msra.gmra.mxu1 %v2816_v62  ;;  %v2992_v62 = vld [vmem:[#allocation6 + $0x200] sm:$0xff] }
 0x6f6   :  { %2985 = vmatmul.mubr.f32.vlgmr.msra.gmra.mxu0 %v2783_v63  ;;  %3025 = vmatpush1.msra.mxu1 %v3022_v58  ;;  %v3100_v58 = vld [vmem:[#allocation6 + $0x310] sm:$0xff]  ;;  %v3098_v63 = vld [vmem:[#allocation6 + $0x300] sm:$0xff] }
 0x6f7   :  { %3131 = vmatpush1.msra.mxu0 %v3128_v59  ;;  %3026 = vmatprep.subr.mxu1 %v3021_v61  ;;  %v2993_v59 = vld [vmem:[#allocation6 + $0x208] sm:$0xff] }
 0x6f8   :  { %3132 = vmatprep.subr.mxu0 %v3127_v0  ;;  %3027 = vmatpush1.msra.mxu1 %v3020_v2  ;;  %v3099_v61 = vld [vmem:[#allocation6 + $0x308] sm:$0xff]  ;;  %v3235_v0 = vld [vmem:[#allocation6 + $0x4f8] sm:$0xff]  ;;  %v2991_v2 = vld [vmem:[#allocation4 + $0x2] sm:$0xf] }
 0x6f9   :  { %3133 = vmatpush1.msra.mxu0 %v3126_v4  ;;  %3028 = vmatprep.subr.mxu1 %v3019_v12  ;;  %v3097_v4 = vld [vmem:[#allocation4 + $0x3] sm:$0xf] }
 0x6fa   :  { %3134 = vmatprep.subr.mxu0 %v3125_v19  ;;  %3029 = vmatpush1.msra.mxu1 %v3018_v10  ;;  %v3234_v12 = vld [vmem:[#allocation6 + $0x4f0] sm:$0xff]  ;;  %v3233_v19 = vld [vmem:[#allocation6 + $0x4e8] sm:$0xff]  ;;  %v3232_v10 = vld [vmem:[#allocation6 + $0x4e0] sm:$0xff] }
 0x6fb   :  { %3135 = vmatpush1.msra.mxu0 %v3124_v51  ;;  %3030 = vmatprep.subr.mxu1 %v3017_v60  ;;  %v3231_v51 = vld [vmem:[#allocation6 + $0x4d8] sm:$0xff]  ;;  %v3230_v60 = vld [vmem:[#allocation6 + $0x4d0] sm:$0xff] }
 0x6fc   :  { %3136 = vmatprep.subr.mxu0 %v3123_v11  ;;  %3031 = vmatpush1.msra.mxu1 %v3016_v8  ;;  %v3229_v11 = vld [vmem:[#allocation6 + $0x4c8] sm:$0xff]  ;;  %v3228_v8 = vld [vmem:[#allocation6 + $0x4c0] sm:$0xff] }
 0x6fd   :  { %3137 = vmatpush1.msra.mxu0 %v3122_v3  ;;  %3032 = vmatprep.subr.mxu1 %v3015_v5  ;;  %v3227_v3 = vld [vmem:[#allocation6 + $0x4b8] sm:$0xff]  ;;  %v3226_v5 = vld [vmem:[#allocation6 + $0x4b0] sm:$0xff] }
 0x6fe   :  { %3138 = vmatprep.subr.mxu0 %v3121_v9  ;;  %3033 = vmatpush1.msra.mxu1 %v3014_v13  ;;  %v3225_v9 = vld [vmem:[#allocation6 + $0x4a8] sm:$0xff]  ;;  %v3224_v13 = vld [vmem:[#allocation6 + $0x4a0] sm:$0xff] }
 0x6ff   :  { %3139 = vmatpush1.msra.mxu0 %v3120_v14  ;;  %3034 = vmatprep.subr.mxu1 %v3013_v15  ;;  %v3223_v14 = vld [vmem:[#allocation6 + $0x498] sm:$0xff]  ;;  %v3222_v15 = vld [vmem:[#allocation6 + $0x490] sm:$0xff] }
 0x700   :  { %3140 = vmatprep.subr.mxu0 %v3119_v16  ;;  %3035 = vmatpush1.msra.mxu1 %v3012_v17  ;;  %v3221_v16 = vld [vmem:[#allocation6 + $0x488] sm:$0xff]  ;;  %v3220_v17 = vld [vmem:[#allocation6 + $0x480] sm:$0xff] }
 0x701   :  { %3141 = vmatpush1.msra.mxu0 %v3118_v35  ;;  %3036 = vmatprep.subr.mxu1 %v3011_v37  ;;  %v3219_v35 = vld [vmem:[#allocation6 + $0x478] sm:$0xff]  ;;  %v3218_v37 = vld [vmem:[#allocation6 + $0x470] sm:$0xff] }
 0x702   :  { %3142 = vmatprep.subr.mxu0 %v3117_v42  ;;  %3037 = vmatpush1.msra.mxu1 %v3010_v18  ;;  %v3217_v42 = vld [vmem:[#allocation6 + $0x468] sm:$0xff]  ;;  %v3216_v18 = vld [vmem:[#allocation6 + $0x460] sm:$0xff] }
 0x703   :  { %3143 = vmatpush1.msra.mxu0 %v3116_v20  ;;  %3038 = vmatprep.subr.mxu1 %v3009_v21  ;;  %v3215_v20 = vld [vmem:[#allocation6 + $0x458] sm:$0xff]  ;;  %v3214_v21 = vld [vmem:[#allocation6 + $0x450] sm:$0xff] }
 0x704   :  { %3144 = vmatprep.subr.mxu0 %v3115_v22  ;;  %3039 = vmatpush1.msra.mxu1 %v3008_v23  ;;  %v3213_v22 = vld [vmem:[#allocation6 + $0x448] sm:$0xff]  ;;  %v3212_v23 = vld [vmem:[#allocation6 + $0x440] sm:$0xff] }
 0x705   :  { %3145 = vmatpush1.msra.mxu0 %v3114_v24  ;;  %3040 = vmatprep.subr.mxu1 %v3007_v25  ;;  %v3211_v24 = vld [vmem:[#allocation6 + $0x438] sm:$0xff]  ;;  %v3210_v25 = vld [vmem:[#allocation6 + $0x430] sm:$0xff] }
 0x706   :  { %3146 = vmatprep.subr.mxu0 %v3113_v26  ;;  %3041 = vmatpush1.msra.mxu1 %v3006_v27  ;;  %v3209_v26 = vld [vmem:[#allocation6 + $0x428] sm:$0xff]  ;;  %v3208_v27 = vld [vmem:[#allocation6 + $0x420] sm:$0xff] }
 0x707   :  { %3147 = vmatpush1.msra.mxu0 %v3112_v28  ;;  %3042 = vmatprep.subr.mxu1 %v3005_v29  ;;  %v3207_v28 = vld [vmem:[#allocation6 + $0x418] sm:$0xff]  ;;  %v3206_v29 = vld [vmem:[#allocation6 + $0x410] sm:$0xff] }
 0x708   :  { %3148 = vmatprep.subr.mxu0 %v3111_v33  ;;  %3043 = vmatpush1.msra.mxu1 %v3004_v34  ;;  %v3205_v33 = vld [vmem:[#allocation6 + $0x408] sm:$0xff]  ;;  %v3204_v34 = vld [vmem:[#allocation6 + $0x400] sm:$0xff] }
 0x709   :  { %3149 = vmatpush1.msra.mxu0 %v3110_v36  ;;  %3044 = vmatprep.subr.mxu1 %v3003_v38  ;;  %v3203_v36 = vld [vmem:[#allocation4 + $0x4] sm:$0xf]  ;;  %v3524_v38 = vld [vmem:[%s5466_s5 + $0xf8] sm:$0xff] }
 0x70a   :  { %3150 = vmatprep.subr.mxu0 %v3109_v43  ;;  %3045 = vmatpush1.msra.mxu1 %v3002_v44  ;;  %v3508_v43 = vld [vmem:[%s5466_s5 + $0x78] sm:$0xff]  ;;  %v3523_v44 = vld [vmem:[%s5466_s5 + $0xf0] sm:$0xff] }
 0x70b   :  { %3151 = vmatpush1.msra.mxu0 %v3108_v45  ;;  %3046 = vmatprep.subr.mxu1 %v3001_v31  ;;  %v3507_v45 = vld [vmem:[%s5466_s5 + $0x70] sm:$0xff] }
 0x70c   :  { %3152 = vmatprep.subr.mxu0 %v3107_v46  ;;  %3047 = vmatpush1.msra.mxu1 %v3000_v47 }
 0x70d   :  { %3153 = vmatpush1.msra.mxu0 %v3106_v48  ;;  %3048 = vmatprep.subr.mxu1 %v2999_v49 }
 0x70e   :  { %3154 = vmatprep.subr.mxu0 %v3105_v30  ;;  %3049 = vmatpush1.msra.mxu1 %v2998_v50 }
 0x70f   :  { %3155 = vmatpush1.msra.mxu0 %v3104_v52  ;;  %3050 = vmatprep.subr.mxu1 %v2997_v53 }
 0x710   :  { %3156 = vmatprep.subr.mxu0 %v3103_v54  ;;  %3051 = vmatpush1.msra.mxu1 %v2996_v7 }
 0x711   :  { %3157 = vmatpush1.msra.mxu0 %v3102_v6  ;;  %3052 = vmatprep.subr.mxu1 %v2995_v55 }
 0x712   :  { %3158 = vmatprep.subr.mxu0 %v3101_v56  ;;  %3053 = vmatpush1.msra.mxu1 %v2994_v57 }
 0x713   :  { %3159 = vmatpush1.msra.mxu0 %v3100_v58  ;;  %3054 = vmatprep.subr.mxu1 %v2993_v59 }
 0x714   :  { %3160 = vmatprep.subr.mxu0 %v3099_v61  ;;  %3055 = vmatpush1.msra.mxu1 %v2992_v62  ;;  %v4038_v62 = vld [vmem:[%s5466_s5 + $0x1f8] sm:$0xff] }
 0x715   :  { %3088 = vmatprep.mubr.f32.mxu1 %v4605_v1  ;;  %3161 = vmatpush1.msra.mxu0 %v3098_v63  ;;  %v4022_v63 = vld [vmem:[%s5466_s5 + $0x178] sm:$0xff] }
 0x716   :  { %3194 = vmatprep.mubr.f32.mxu0 %v4605_v1  ;;  %3089 = vmatmul.mubr.f32.vlgmr.msra.gmra.mxu1 %v2991_v2  ;;  %v4021_v2 = vld [vmem:[%s5466_s5 + $0x170] sm:$0xff] }
 0x717   :  { %3195 = vmatmul.mubr.f32.vlgmr.msra.gmra.mxu0 %v3097_v4  ;;  %3236 = vmatprep.subr.mxu1 %v3235_v0  ;;  %v4037_v0 = vld [vmem:[%s5466_s5 + $0x1f0] sm:$0xff]  ;;  %v3506_v4 = vld [vmem:[%s5466_s5 + $0x68] sm:$0xff] }
 0x718   :  { %3300 = vmatprep.mubr.f32.mxu1 %v4605_v1  ;;  %3237 = vmatpush1.msra.mxu1 %v3234_v12  ;;  %v3521_v12 = vld [vmem:[%s5466_s5 + $0xe0] sm:$0xff] }
 0x719   :  { %3379 = vmatprep.mubr.f32.mxu0 %v4605_v1  ;;  %3238 = vmatprep.subr.mxu1 %v3233_v19  ;;  %v4020_v19 = vld [vmem:[%s5466_s5 + $0x168] sm:$0xff] }
 0x71a   :  { %3239 = vmatpush1.msra.mxu1 %v3232_v10  ;;  %v3505_v10 = vld [vmem:[%s5466_s5 + $0x60] sm:$0xff] }
 0x71b   :  { %3240 = vmatprep.subr.mxu1 %v3231_v51  ;;  %v4035_v51 = vld [vmem:[%s5466_s5 + $0x1e0] sm:$0xff] }
 0x71c   :  { %3241 = vmatpush1.msra.mxu1 %v3230_v60  ;;  %v3520_v60 = vld [vmem:[%s5466_s5 + $0xd8] sm:$0xff] }
 0x71d   :  { %3242 = vmatprep.subr.mxu1 %v3229_v11  ;;  %v4019_v11 = vld [vmem:[%s5466_s5 + $0x160] sm:$0xff] }
 0x71e   :  { %3243 = vmatpush1.msra.mxu1 %v3228_v8  ;;  %v3504_v8 = vld [vmem:[%s5466_s5 + $0x58] sm:$0xff] }
 0x71f   :  { %3244 = vmatprep.subr.mxu1 %v3227_v3  ;;  %v4034_v3 = vld [vmem:[%s5466_s5 + $0x1d8] sm:$0xff] }
 0x720   :  { %3245 = vmatpush1.msra.mxu1 %v3226_v5  ;;  %v3519_v5 = vld [vmem:[%s5466_s5 + $0xd0] sm:$0xff] }
 0x721   :  { %3246 = vmatprep.subr.mxu1 %v3225_v9  ;;  %v4018_v9 = vld [vmem:[%s5466_s5 + $0x158] sm:$0xff] }
 0x722   :  { %3247 = vmatpush1.msra.mxu1 %v3224_v13  ;;  %v3503_v13 = vld [vmem:[%s5466_s5 + $0x50] sm:$0xff] }
 0x723   :  { %3248 = vmatprep.subr.mxu1 %v3223_v14  ;;  %v4033_v14 = vld [vmem:[%s5466_s5 + $0x1d0] sm:$0xff] }
 0x724   :  { %3249 = vmatpush1.msra.mxu1 %v3222_v15  ;;  %v3518_v15 = vld [vmem:[%s5466_s5 + $0xc8] sm:$0xff] }
 0x725   :  { %3250 = vmatprep.subr.mxu1 %v3221_v16  ;;  %v4017_v16 = vld [vmem:[%s5466_s5 + $0x150] sm:$0xff] }
 0x726   :  { %3251 = vmatpush1.msra.mxu1 %v3220_v17  ;;  %v3502_v17 = vld [vmem:[%s5466_s5 + $0x48] sm:$0xff] }
 0x727   :  { %3252 = vmatprep.subr.mxu1 %v3219_v35  ;;  %v4032_v35 = vld [vmem:[%s5466_s5 + $0x1c8] sm:$0xff] }
 0x728   :  { %3253 = vmatpush1.msra.mxu1 %v3218_v37  ;;  %v3517_v37 = vld [vmem:[%s5466_s5 + $0xc0] sm:$0xff] }
 0x729   :  { %3254 = vmatprep.subr.mxu1 %v3217_v42  ;;  %v4016_v42 = vld [vmem:[%s5466_s5 + $0x148] sm:$0xff] }
 0x72a   :  { %3255 = vmatpush1.msra.mxu1 %v3216_v18  ;;  %v3501_v18 = vld [vmem:[%s5466_s5 + $0x40] sm:$0xff] }
 0x72b   :  { %3256 = vmatprep.subr.mxu1 %v3215_v20  ;;  %v4031_v20 = vld [vmem:[%s5466_s5 + $0x1c0] sm:$0xff] }
 0x72c   :  { %3257 = vmatpush1.msra.mxu1 %v3214_v21  ;;  %v3516_v21 = vld [vmem:[%s5466_s5 + $0xb8] sm:$0xff] }
 0x72d   :  { %3258 = vmatprep.subr.mxu1 %v3213_v22  ;;  %v4015_v22 = vld [vmem:[%s5466_s5 + $0x140] sm:$0xff] }
 0x72e   :  { %3259 = vmatpush1.msra.mxu1 %v3212_v23  ;;  %v3500_v23 = vld [vmem:[%s5466_s5 + $0x38] sm:$0xff] }
 0x72f   :  { %3260 = vmatprep.subr.mxu1 %v3211_v24  ;;  %v4030_v24 = vld [vmem:[%s5466_s5 + $0x1b8] sm:$0xff] }
 0x730   :  { %3261 = vmatpush1.msra.mxu1 %v3210_v25  ;;  %v3515_v25 = vld [vmem:[%s5466_s5 + $0xb0] sm:$0xff] }
 0x731   :  { %3262 = vmatprep.subr.mxu1 %v3209_v26  ;;  %v4014_v26 = vld [vmem:[%s5466_s5 + $0x138] sm:$0xff] }
 0x732   :  { %3263 = vmatpush1.msra.mxu1 %v3208_v27  ;;  %v3499_v27 = vld [vmem:[%s5466_s5 + $0x30] sm:$0xff] }
 0x733   :  { %3264 = vmatprep.subr.mxu1 %v3207_v28  ;;  %v4029_v28 = vld [vmem:[%s5466_s5 + $0x1b0] sm:$0xff] }
 0x734   :  { %3265 = vmatpush1.msra.mxu1 %v3206_v29  ;;  %v3514_v29 = vld [vmem:[%s5466_s5 + $0xa8] sm:$0xff] }
 0x735   :  { %3266 = vmatprep.subr.mxu1 %v3205_v33  ;;  %v4013_v33 = vld [vmem:[%s5466_s5 + $0x130] sm:$0xff] }
 0x736   :  { %3267 = vmatpush1.msra.mxu1 %v3204_v34  ;;  %v3498_v34 = vld [vmem:[%s5466_s5 + $0x28] sm:$0xff] }
 0x737   :  { %3301 = vmatmul.mubr.f32.vlgmr.msra.gmra.mxu1 %v3203_v36  ;;  %4217 = vmatprep.subr.mxu1 %v3524_v38  ;;  %v4028_v36 = vld [vmem:[%s5466_s5 + $0x1a8] sm:$0xff]  ;;  %v3513_v38 = vld [vmem:[%s5466_s5 + $0xa0] sm:$0xff] }
 0x738   :  { %4218 = vmatpush3.msra.mxu1 %v3508_v43  ;;  %v4012_v43 = vld [vmem:[%s5466_s5 + $0x128] sm:$0xff] }
 0x739   :  { %4219 = vmatprep.subr.mxu1 %v3523_v44  ;;  %v3497_v44 = vld [vmem:[%s5466_s5 + $0x20] sm:$0xff] }
 0x73a   :  { %4220 = vmatpush3.msra.mxu1 %v3507_v45  ;;  %v4027_v45 = vld [vmem:[%s5466_s5 + $0x1a0] sm:$0xff] }
 0x7b5   :  { %v2915_v31 = vpop.f32.mrf.mxu1 }
 0x7b6   :  { %v2986_v46 = vpop.f32.mrf.mxu0 }
 0x7b7   :  { %v2917_v47 = vpop.f32.mrf.mxu1  ;;  %v2987_v52 = vadd.f32 %v2986_v46, %v2915_v31  ;;  %v3512_v31 = vld [vmem:[%s5466_s5 + $0x98] sm:$0xff]  ;;  %v4011_v46 = vld [vmem:[%s5466_s5 + $0x120] sm:$0xff] }
 0x7b8   :  { %v2988_v49 = vpop.f32.mrf.mxu0 }
 0x7b9   :  { %v2989_v50 = vadd.f32 %v2988_v49, %v2917_v47  ;;  %v3496_v47 = vld [vmem:[%s5466_s5 + $0x18] sm:$0xff]  ;;  %v3511_v49 = vld [vmem:[%s5466_s5 + $0x90] sm:$0xff] }
 0x7d6   :  { %v3090_v48 = vpop.f32.mrf.mxu1 }
 0x7d7   :  { %v3196_v53 = vpop.f32.mrf.mxu0  ;;  %v3095_v7 = vadd.f32 %v3090_v48, %v2987_v52  ;;  %v4026_v48 = vld [vmem:[%s5466_s5 + $0x198] sm:$0xff]  ;;  %v4025_v52 = vld [vmem:[%s5466_s5 + $0x190] sm:$0xff] }
 0x7d8   :  { %v3092_v30 = vpop.f32.mrf.mxu1 }
 0x7d9   :  { %v3096_v54 = vadd.f32 %v3092_v30, %v2989_v50  ;;  %v3198_v6 = vpop.f32.mrf.mxu0  ;;  %v3201_v57 = vadd.f32 %v3196_v53, %v3095_v7  ;;  %v4010_v30 = vld [vmem:[%s5466_s5 + $0x118] sm:$0xff]  ;;  %v3495_v50 = vld [vmem:[%s5466_s5 + $0x10] sm:$0xff]  ;;  %v3510_v53 = vld [vmem:[%s5466_s5 + $0x88] sm:$0xff] }
 0x7da   :  { %v3494_v7 = vld [vmem:[%s5466_s5 + $0x8] sm:$0xff] }
 0x7db   :  { %v3202_v56 = vadd.f32 %v3198_v6, %v3096_v54  ;;  %v4009_v54 = vld [vmem:[%s5466_s5 + $0x110] sm:$0xff]  ;;  %v4024_v6 = vld [vmem:[%s5466_s5 + $0x188] sm:$0xff] }
 0x7f7   :  { %v3302_v55 = vpop.f32.mrf.mxu1 }
 0x7f8   :  { %v3307_v61 = vadd.f32 %v3302_v55, %v3201_v57  ;;  %v3509_v55 = vld [vmem:[%s5466_s5 + $0x80] sm:$0xff] }
 0x7f9   :  { %v3304_v58 = vpop.f32.mrf.mxu1  ;;  %v3493_v57 = vld [vmem:[%s5466_s5] sm:$0xff] }
 0x7fa   :  { %v3308_v59 = vadd.f32 %v3304_v58, %v3202_v56  ;;  %v4008_v56 = vld [vmem:[%s5466_s5 + $0x108] sm:$0xff]  ;;  %v4023_v58 = vld [vmem:[%s5466_s5 + $0x180] sm:$0xff] }
 0x7fc   :  { %4001 = vmatprep.subr.msk.mxu0 %vm305_vm7, %v3308_v59 }
 0x7fd   :  { %4002 = vmatpush1.msk.msra.mxu0 %vm305_vm7, %v3307_v61 }
 0x7fe   :  { %4003 = vmatmul.mubr.msk.f32.vlgmr.msra.gmra.mxu0 %vm1620_vm12, %v4726_v40  ;;  %4004 = vmatprep.subr.msk.mxu0 %vm305_vm7, %v3308_v59  ;;  %v3522_v40 = vld [vmem:[%s5466_s5 + $0xe8] sm:$0xff]  ;;  %v4007_v59 = vld [vmem:[%s5466_s5 + $0x100] sm:$0xff] }
 0x7ff   :  { %4005 = vmatpush1.msk.msra.mxu0 %vm305_vm7, %v3307_v61  ;;  %3450 = vmatprep.mubr.f32.mxu0 %v4605_v1 }
 0x800   :  { %4182 = vmatprep.subr.mxu0 %v4038_v62  ;;  %4221 = vmatprep.subr.mxu1 %v3522_v40 }
 0x801   :  { %4222 = vmatpush3.msra.mxu1 %v3506_v4 }
 0x802   :  { %4006 = vmatmul.mubr.msk.f32.vlgmr.msra.gmra.mxu0 %vm1620_vm12, %v4729_v41  ;;  %v4036_v41 = vld [vmem:[%s5466_s5 + $0x1e8] sm:$0xff]  ;;  %4223 = vmatprep.subr.mxu1 %v3521_v12 }
 0x803   :  { %4183 = vmatpush3.msra.mxu0 %v4022_v63  ;;  %4224 = vmatpush3.msra.mxu1 %v3505_v10 }
 0x804   :  { %4184 = vmatprep.subr.mxu0 %v4037_v0  ;;  %4225 = vmatprep.subr.mxu1 %v3520_v60 }
 0x805   :  { %4185 = vmatpush3.msra.mxu0 %v4021_v2  ;;  %4226 = vmatpush3.msra.mxu1 %v3504_v8 }
 0x806   :  { %4186 = vmatprep.subr.mxu0 %v4036_v41  ;;  %4227 = vmatprep.subr.mxu1 %v3519_v5 }
 0x807   :  { %4187 = vmatpush3.msra.mxu0 %v4020_v19  ;;  %4228 = vmatpush3.msra.mxu1 %v3503_v13  ;;  %v3750_v13 = vld [vmem:[%s5470_s9 + $0x20] sm:$0xff] }
 0x808   :  { %4188 = vmatprep.subr.mxu0 %v4035_v51  ;;  %4229 = vmatprep.subr.mxu1 %v3518_v15  ;;  %v3748_v15 = vld [vmem:[%s5470_s9 + $0x10] sm:$0xff] }
 0x809   :  { %4189 = vmatpush3.msra.mxu0 %v4019_v11  ;;  %4230 = vmatpush3.msra.mxu1 %v3502_v17  ;;  %v3746_v17 = vld [vmem:[%s5470_s9] sm:$0xff] }
 0x80a   :  { %4190 = vmatprep.subr.mxu0 %v4034_v3  ;;  %4231 = vmatprep.subr.mxu1 %v3517_v37 }
 0x80b   :  { %4191 = vmatpush3.msra.mxu0 %v4018_v9  ;;  %4232 = vmatpush3.msra.mxu1 %v3501_v18  ;;  %v3753_v9 = vld [vmem:[%s5470_s9 + $0x38] sm:$0xff] }
 0x80c   :  { %4192 = vmatprep.subr.mxu0 %v4033_v14  ;;  %4233 = vmatprep.subr.mxu1 %v3516_v21  ;;  %v3749_v14 = vld [vmem:[%s5470_s9 + $0x18] sm:$0xff] }
 0x80d   :  { %4193 = vmatpush3.msra.mxu0 %v4017_v16  ;;  %4234 = vmatpush3.msra.mxu1 %v3500_v23  ;;  %v3747_v16 = vld [vmem:[%s5470_s9 + $0x8] sm:$0xff] }
 0x80e   :  { %4194 = vmatprep.subr.mxu0 %v4032_v35  ;;  %4235 = vmatprep.subr.mxu1 %v3515_v25  ;;  %v4043_v25 = vld [vmem:[%s5469_s8] ss:$0 sm:$0xff] }
 0x80f   :  { %4195 = vmatpush3.msra.mxu0 %v4016_v42  ;;  %4236 = vmatpush3.msra.mxu1 %v3499_v27 }
 0x810   :  { %4196 = vmatprep.subr.mxu0 %v4031_v20  ;;  %4237 = vmatprep.subr.mxu1 %v3514_v29  ;;  %v4044_v29 = vld [vmem:[%s5471_s10] ss:$0 sm:$0xff] }
 0x811   :  { %4197 = vmatpush3.msra.mxu0 %v4015_v22  ;;  %4238 = vmatpush3.msra.mxu1 %v3498_v34  ;;  %v4041_v22 = vld [vmem:[%s5467_s6] ss:$0 sm:$0xff]  ;;  %s4608_s6 = smov [#allocation9]  }
 0x812   :  { %4198 = vmatprep.subr.mxu0 %v4030_v24  ;;  %4239 = vmatprep.subr.mxu1 %v3513_v38 }
 0x813   :  { %4199 = vmatpush3.msra.mxu0 %v4014_v26  ;;  %4240 = vmatpush3.msra.mxu1 %v3497_v44 }
 0x814   :  { %4200 = vmatprep.subr.mxu0 %v4029_v28  ;;  %4241 = vmatprep.subr.mxu1 %v3512_v31 }
 0x815   :  { %4201 = vmatpush3.msra.mxu0 %v4013_v33  ;;  %4242 = vmatpush3.msra.mxu1 %v3496_v47 }
 0x816   :  { %4202 = vmatprep.subr.mxu0 %v4028_v36  ;;  %4243 = vmatprep.subr.mxu1 %v3511_v49 }
 0x817   :  { %4203 = vmatpush3.msra.mxu0 %v4012_v43  ;;  %4244 = vmatpush3.msra.mxu1 %v3495_v50 }
 0x818   :  { %4204 = vmatprep.subr.mxu0 %v4027_v45  ;;  %4245 = vmatprep.subr.mxu1 %v3510_v53 }
 0x819   :  { %4205 = vmatpush3.msra.mxu0 %v4011_v46  ;;  %4246 = vmatpush3.msra.mxu1 %v3494_v7 }
 0x81a   :  { %4206 = vmatprep.subr.mxu0 %v4026_v48  ;;  %4247 = vmatprep.subr.mxu1 %v3509_v55 }
 0x81b   :  { %4207 = vmatpush3.msra.mxu0 %v4010_v30  ;;  %4248 = vmatpush3.msra.mxu1 %v3493_v57 }
 0x81c   :  { %4208 = vmatprep.subr.mxu0 %v4025_v52 }
 0x81d   :  { %4209 = vmatpush3.msra.mxu0 %v4009_v54 }
 0x81e   :  { %4210 = vmatprep.subr.mxu0 %v4024_v6 }
 0x81f   :  { %4211 = vmatpush3.msra.mxu0 %v4008_v56 }
 0x820   :  { %4212 = vmatprep.subr.mxu0 %v4023_v58 }
 0x821   :  { %4213 = vmatpush3.msra.mxu0 %v4007_v59 }
 0x822   :  { %4523 = vmatprep.subr.mxu0 %v4605_v1 }
 0x8be   :  { %v3381_v61 = vpop.f32.mrf.mxu0 }
 0x8c0   :  { %v3383_v62 = vpop.f32.mrf.mxu0 }
 0x8c2   :  { %v3452_v63 = vpop.f32.mrf.mxu0 }
 0x8c3   :  { %v3457_v0 = vmax.f32 %v3381_v61, %v3452_v63 }
 0x8c4   :  { %v3454_v40 = vpop.f32.mrf.mxu0 }
 0x8c5   :  { %v3458_v2 = vmax.f32 %v3383_v62, %v3454_v40  ;;  %v3459_v4 = vmax.f32 %v3457_v0, 0.0 }
 0x8c7   :  { %v3460_v41 = vmax.f32 %v3458_v2, 0.0 }
 0x8c9   :  { %v3463_v12 = vcombine.low %v3459_v4, %v3460_v41 }
 0x8cb   :  { %v3470_v19 = vrot.slane %v3463_v12, %v5085_v32 }
 0x8cd   :  { %v3477_v10 = vrot.slane %v3470_v19, %v5085_v32  ;;  %v3481_v51 = vcombine.high %v3470_v19, %v3470_v19 }
 0x8cf   :  { %3480 = vst.msk [vmem:[#allocation5 + $0x1] ss:$2 sm:$0x3] %vm5089_vm13, %v3477_v10  ;;  %v3488_v60 = vrot.slane %v3481_v51, %v5085_v32  ;;  %v3752_v32 = vld [vmem:[%s5470_s9 + $0x30] sm:$0xff] }
 0x8d1   :  { %3491 = vst.msk [vmem:[#allocation5 + $0x5] ss:$2 sm:$0x3] %vm5089_vm13, %v3488_v60 }
 0x8d6   :  { %v4040_v11 = vld.sshfl [vmem:[#allocation5] sm:$0x33 pattern:$0x76325410] }
 0x8d7   :  { %v3648_v8 = vcombine.high %v4040_v11, %v4040_v11 }
 0x8d8   :  { %v4039_v3 = vld.sshfl [vmem:[#allocation5 + $0x4] sm:$0x33 pattern:$0x76325410] }
 0x8d9   :  { %3715 = vmatprep.mubr.f32.mxu1 %v3648_v8  ;;  %v3567_v5 = vcombine.high %v4039_v3, %v4039_v3 }
 0x8da   :  { %3716 = vmatmul.mubr.f32.vlgmr.msra.gmra.mxu1 %v4040_v11 }
 0x8db   :  { %3634 = vmatprep.mubr.f32.mxu0 %v3567_v5 }
 0x8dc   :  { %3635 = vmatmul.mubr.f32.vlgmr.msra.gmra.mxu0 %v4039_v3 }
 0x8dd   :  { %4539 = vmatprep.mubr.msk.f32.mxu0 %vm4606_vm10, %v4605_v1  ;;  %4524 = vmatpush3.msra.mxu0 %v3753_v9 }
 0x8de   :  { %4525 = vmatprep.subr.mxu0 %v4605_v1 }
 0x8df   :  { %4526 = vmatpush3.msra.mxu0 %v3752_v32 }
 0x8e0   :  { %4527 = vmatprep.subr.mxu0 %v4605_v1 }
 0x8e1   :  { %4528 = vmatpush3.msra.mxu0 %v3751_v39 }
 0x8e2   :  { %4529 = vmatprep.subr.mxu0 %v4605_v1 }
 0x8e3   :  { %4530 = vmatpush3.msra.mxu0 %v3750_v13 }
 0x8e4   :  { %4531 = vmatprep.subr.mxu0 %v4605_v1 }
 0x8e5   :  { %4532 = vmatpush3.msra.mxu0 %v3749_v14 }
 0x8e6   :  { %4533 = vmatprep.subr.mxu0 %v4605_v1 }
 0x8e7   :  { %4534 = vmatpush3.msra.mxu0 %v3748_v15 }
 0x8e8   :  { %4535 = vmatprep.subr.mxu0 %v4605_v1 }
 0x8e9   :  { %4536 = vmatpush3.msra.mxu0 %v3747_v16 }
 0x8ea   :  { %4537 = vmatprep.subr.mxu0 %v4605_v1  ;;  %v4042_v1 = vld [vmem:[%s5468_s7] ss:$0 sm:$0xff]  ;;  %s3854_s7 = sshll.u32 %s4608_s6, 4  ;;  %s3855_s7 = int_to_ptr.vmem [resolvable:$true] %s3854_s7 }
 0x8eb   :  { %4538 = vmatpush3.msra.mxu0 %v3746_v17  ;;  %s4577_s8 = scalar_lea.vmem %s3855_s7, 32  ;;  %p4582_p6 = scmp.lt.s32.totalorder %s3855_s7, %s3855_s7 }
 0x8ec   :  { %p4578_p5 = scmp.ne.s32.totalorder %s3855_s7, %s4577_s8  ;;  %p4583_p7 = scmp.lt.s32.totalorder %s4577_s8, %s4577_s8 }
 0x8ee   :  { %p4584_p8 = por %p4583_p7, %p4582_p6 }
 0x8f0   :  { %p4585_p9 = pnand %p4584_p8, %p4578_p5 }
 0x99a   :  { %v4249_v35 = vpop.f32.mrf.mxu1 }
 0x99c   :  { %v4214_v37 = vpop.f32.mrf.mxu0  ;;  %v4250_v42 = vpop.f32.mrf.mxu1 }
 0x99d   :  { %v4251_v20 = vadd.f32 %v4250_v42, %v4249_v35 }
 0x99e   :  { %v4215_v18 = vpop.f32.mrf.mxu0 }
 0x99f   :  { %v4216_v21 = vadd.f32 %v4215_v18, %v4214_v37 }
 0x9a1   :  { %v3718_v23 = vadd.f32 %v4251_v20, %v4216_v21 }
 0x9a3   :  { %v3728_v24 = vadd.f32 %v4041_v22, %v3718_v23 }
 0x9a5   :  { %v3736_v26 = vmul.f32 %v4042_v1, %v3728_v24 }
 0x9a7   :  { %v3744_v27 = vadd.f32 %v4043_v25, %v3736_v26 }
 0x9a9   :  { %v3745_v28 = vmax.f32 %v3744_v27, 0.0 }
 0x9ab   :  { %4540 = vmatmul.mubr.msk.f32.vlgmr.msra.gmra.mxu0 %vm79_vm8, %v3745_v28 }
 0xa6b   :  { %v3830_v33 = vpop.f32.mrf.mxu0 }
 0xa6c   :  { %v3831_v34 = vadd.f32 %v4044_v29, %v3830_v33 }
 0xa6d   :  { %v4541_v36 = vpop.f32.mrf.mxu0 }
 0xa6e   :  { %v3835_v38 = vsel %vm3834_vm14, %v3831_v34, -inf }
 0xa6f   :  { %3836 = vmax.xlane.f32.xlu0 %v3835_v38 }
 0xaf8   :  { %v3837_v43 = vpop.xlane.xlu0 %3836 }
 0xaf9   :  { %v3838_v44 = vsub.f32 %v3831_v34, %v3837_v43 }
 0xafb   :  { %v3839_v45 = vmul.f32 1.442695, %v3838_v44 }
 0xafd   :  { %4552 = vpow2.f32 %v3839_v45 }
 0xb0a   :  { %v4553_v31 = vpop.eup %4552 }
 0xb0b   :  { %v3841_v46 = vsel %vm3834_vm14, %v4553_v31, 0.0 }
 0xb0c   :  { %3842 = vadd.xlane.f32.xlu1 %v3841_v46 }
 0xb95   :  { %v3843_v47 = vpop.xlane.xlu1 %3842 }
 0xb96   :  { %4554 = vlog2.f32 %v3843_v47 }
 0xba3   :  { %v4555_v48 = vpop.eup %4554 }
 0xba4   :  { %v3845_v49 = vmul.f32 0.6931472, %v4555_v48 }
 0xba6   :  { %v3846_v30 = vsub.f32 %v3838_v44, %v3845_v49 }
 0xba8   :  { %3847 = vst.msk [vmem:[#allocation9] sm:$0x3] %vm3834_vm14, %v3846_v30 }
 0xba9   :  { %4588 = shalt.err (!%p4585_p9)
}
 0xbaa   :  { %3857 = dma.vmem_to_hbm [thread:$0]  %s3855_s7, 32, %s5472_s11, [#allocation8]  }
 0xbab   :  { %4599 = dma.done.wait [#allocation8], 32  }
 0xbac   :  { %4600 = vsyncadd [#allocation8], 4294967264 }
 0xbad   :  { %3861 = vsyncpa [#allocation7], 1 }
 0xbae   :  { %3862 = vsyncpa [#allocation8], 1 }

</bundles_post_ra>
